<compile_context>
chip_gen: v7x
topology: tpu7x:2x2x1
jax: 0.10.0
libtpu: 0.0.40
codegen_flags: <defaults>
</compile_context>

<pallas_src>
import math

import jax
import jax.numpy as jnp
from jax.experimental import pallas as pl
from jax.experimental.pallas import tpu as pltpu

# ----------------------------- configuration --------------------------------
EMBED_DIM     = 32          # output feature dim
OUT_PAD       = 128         # lane-padded output width (EMBED_DIM -> 128)
IMAGE_SIZE    = (32, 32)    # (H, W)
PATCH         = 8
STRIDE        = 8           # == PATCH (conv == patch matmul)
VISION_WIDTH  = 64
VISION_LAYERS = 2
VISION_HEADS  = VISION_WIDTH // 64   # = 1
CONTEXT_LEN   = 8
VOCAB_SIZE    = 100
VOCAB_PAD     = 128         # vocab padded so one-hot GEMM has K=128 (MXU aligned)
TEXT_WIDTH    = 64
TEXT_LAYERS   = 2
TEXT_HEADS    = TEXT_WIDTH // 64     # = 1
LN_EPS        = 1e-5

NUM_X       = (IMAGE_SIZE[1] - PATCH) // STRIDE + 1
NUM_Y       = (IMAGE_SIZE[0] - PATCH) // STRIDE + 1
NUM_PATCHES = NUM_X * NUM_Y          # 16
N_TOKENS_V  = NUM_PATCHES + 1        # 17 valid vision tokens (cls + patches)
SEQ_V_PAD   = 24                     # vision sequence padded to multiple of 8
PATCH_FEAT  = 3 * PATCH * PATCH      # 192
NEG_INF     = -1e9                   # finite "masked" value (robust vs -inf)

# packed per-layer vector-slab row indices (shape (L, 9, D))
LN1_G, LN1_B, B_Q, B_K, B_V, B_OUT, LN2_G, LN2_B, B_PJ = range(9)

# TODO(synk): attention below is specialized to n_head == 1 (width // 64 == 1 at
# these sizes); a folded multi-head path would be needed for larger widths.
assert VISION_HEADS == 1 and TEXT_HEADS == 1


# --------------------------- in-kernel helpers -------------------------------
def _ln_rows(x, g, b):
    """LayerNorm over the last dim of a (rows, dim) f32 matrix."""
    mu = jnp.mean(x, axis=-1, keepdims=True)
    xc = x - mu
    var = jnp.mean(xc * xc, axis=-1, keepdims=True)
    return xc * jax.lax.rsqrt(var + LN_EPS) * g + b


def _resblock(xf, bsz, seq, dim, bias, vec, b_fc, w_q, w_k, w_v, w_out, w_fc, w_pj):
    """Single-head pre-LN ResidualAttentionBlock on a flattened (bsz*seq, dim) activation.

    vec:  (9, dim) packed per-layer vector slab (LN gains/biases + attn/MLP biases)
    b_fc: (1, 4*dim)
    """
    # ---- attention branch: x + out_proj(softmax(q k^T / sqrt(d) + bias) v) ----
    h = _ln_rows(xf, vec[LN1_G:LN1_G + 1], vec[LN1_B:LN1_B + 1])
    # three separate dots -> no cross-lane column slicing of a (.., 3D) result
    q = (jnp.dot(h, w_q, preferred_element_type=jnp.float32)
         + vec[B_Q:B_Q + 1]).reshape(bsz, seq, dim)
    k = (jnp.dot(h, w_k, preferred_element_type=jnp.float32)
         + vec[B_K:B_K + 1]).reshape(bsz, seq, dim)
    v = (jnp.dot(h, w_v, preferred_element_type=jnp.float32)
         + vec[B_V:B_V + 1]).reshape(bsz, seq, dim)
    sc = jnp.einsum('bqd,bkd->bqk', q, k,
                    preferred_element_type=jnp.float32) * (1.0 / math.sqrt(dim))
    sc = sc + bias
    m = jnp.max(sc, axis=-1, keepdims=True)
    e = jnp.exp(sc - m)
    p = e * pl.reciprocal(jnp.sum(e, axis=-1, keepdims=True), approx=True)
    ctx = jnp.einsum('bqk,bkd->bqd', p, v,
                     preferred_element_type=jnp.float32).reshape(bsz * seq, dim)
    xf = xf + jnp.dot(ctx, w_out, preferred_element_type=jnp.float32) + vec[B_OUT:B_OUT + 1]

    # ---- MLP branch with QuickGELU ----
    h2 = _ln_rows(xf, vec[LN2_G:LN2_G + 1], vec[LN2_B:LN2_B + 1])
    h2 = jnp.dot(h2, w_fc, preferred_element_type=jnp.float32) + b_fc
    h2 = h2 * jax.nn.sigmoid(1.702 * h2)          # QuickGELU
    h2 = jnp.dot(h2, w_pj, preferred_element_type=jnp.float32) + vec[B_PJ:B_PJ + 1]
    return xf + h2


# ------------------------------ fused kernel ---------------------------------
def _clip_fused_kernel(
        # ---- vision tower inputs ----
        patches_ref, vpos_ref, vconv_ref, vln_ref, vproj_ref,
        v_vecs_ref, v_bfc_ref, v_wqkv_ref, v_wout_ref, v_wfc_ref, v_wpj_ref,
        # ---- text tower inputs ----
        ids_ref, temb_ref, tpos_ref, tln_ref, tproj_ref,
        t_vecs_ref, t_bfc_ref, t_wqkv_ref, t_wout_ref, t_wfc_ref, t_wpj_ref,
        # ---- output (lane-padded to 128) ----
        o_ref):
    tower = pl.program_id(0)

    # --------------- vision tower (grid step 0) ---------------
    @pl.when(tower == 0)
    def _vision():
        bsz, seq, cpp = patches_ref.shape
        dim = vconv_ref.shape[1]
        # patch embedding (Conv2d k=stride=P, no bias) as one flat matmul
        pe = jnp.dot(patches_ref[...].reshape(bsz * seq, cpp), vconv_ref[...],
                     preferred_element_type=jnp.float32)
        # row 0 is the cls slot (zero patch); vpos already contains cls+pos folded in
        x = pe.reshape(bsz, seq, dim) + vpos_ref[...]
        vln = vln_ref[...]                                # (4, D): pre_g, pre_b, post_g, post_b
        xf = _ln_rows(x.reshape(bsz * seq, dim), vln[0:1], vln[1:2])   # ln_pre
        # key-padding bias: padded key columns (>= N_TOKENS_V) masked out
        kpos = jax.lax.broadcasted_iota(jnp.int32, (1, 1, seq), 2)
        bias = jnp.where(kpos < N_TOKENS_V, 0.0, NEG_INF).astype(jnp.float32)
        for li in range(VISION_LAYERS):                   # static loop over layers
            xf = _resblock(xf, bsz, seq, dim, bias,
                           v_vecs_ref[li], v_bfc_ref[li],
                           v_wqkv_ref[li, 0], v_wqkv_ref[li, 1], v_wqkv_ref[li, 2],
                           v_wout_ref[li], v_wfc_ref[li], v_wpj_ref[li])
        xf = _ln_rows(xf, vln[2:3], vln[3:4])             # ln_post
        cls_tok = xf.reshape(bsz, seq, dim)[:, 0, :]      # (B, D)
        o_ref[...] = jnp.dot(cls_tok, vproj_ref[...],     # (B, 128) lane-dense store
                             preferred_element_type=jnp.float32)[None]

    # --------------- text tower (grid step 1) ---------------
    @pl.when(tower == 1)
    def _text():
        bsz, seq = ids_ref.shape
        vocab, dim = temb_ref.shape                       # (128, D), vocab padded
        ids = ids_ref[...]                                # (B, L) int32
        # token embedding as one-hot matmul (K = 128, MXU aligned)
        viota = jax.lax.broadcasted_iota(jnp.int32, (bsz, seq, vocab), 2)
        onehot = (viota == ids[:, :, None]).astype(jnp.float32)
        emb = jnp.dot(onehot.reshape(bsz * seq, vocab), temb_ref[...],
                      preferred_element_type=jnp.float32)
        x = emb.reshape(bsz, seq, dim) + tpos_ref[...]
        xf = x.reshape(bsz * seq, dim)
        # causal mask (strict upper triangle masked)
        r = jax.lax.broadcasted_iota(jnp.int32, (1, seq, seq), 1)
        c = jax.lax.broadcasted_iota(jnp.int32, (1, seq, seq), 2)
        bias = jnp.where(c > r, NEG_INF, 0.0).astype(jnp.float32)
        for li in range(TEXT_LAYERS):                     # static loop over layers
            xf = _resblock(xf, bsz, seq, dim, bias,
                           t_vecs_ref[li], t_bfc_ref[li],
                           t_wqkv_ref[li, 0], t_wqkv_ref[li, 1], t_wqkv_ref[li, 2],
                           t_wout_ref[li], t_wfc_ref[li], t_wpj_ref[li])
        tln = tln_ref[...]                                # (2, D): final_g, final_b
        xf = _ln_rows(xf, tln[0:1], tln[1:2])             # ln_final
        x3 = xf.reshape(bsz, seq, dim)
        # EOS pooling: first position holding the max token id (ids.argmax(-1)),
        # id comparison kept in int32 for robustness.
        max_id = jnp.max(ids, axis=-1, keepdims=True)                      # int32
        posf = jax.lax.broadcasted_iota(jnp.int32, (bsz, seq), 1).astype(jnp.float32)
        masked_pos = jnp.where(ids == max_id, posf, float(seq))
        eos_pos = jnp.min(masked_pos, axis=-1, keepdims=True)
        sel = (posf == eos_pos).astype(jnp.float32)       # (B, L) one-hot row select
        pooled = jnp.sum(sel[:, :, None] * x3, axis=1)    # (B, D)
        o_ref[...] = jnp.dot(pooled, tproj_ref[...],      # (B, 128) lane-dense store
                             preferred_element_type=jnp.float32)[None]


# ------------------------- parameter initialization --------------------------
def _normal(key, shape, std):
    return std * jax.random.normal(key, shape, jnp.float32)


def _init_blocks(key, d, n_layers, attn_std, proj_std, fc_std):
    ones = jnp.ones((1, d), jnp.float32)
    zeros = jnp.zeros((1, d), jnp.float32)

    def one(k):
        ks = jax.random.split(k, 6)
        # vector slab rows: ln1_g, ln1_b, b_q, b_k, b_v, b_out, ln2_g, ln2_b, b_proj
        vecs = jnp.concatenate(
            [ones, zeros, zeros, zeros, zeros, zeros, ones, zeros, zeros], axis=0)
        return {
            'vecs': vecs,                                          # (9, d)
            'b_fc': jnp.zeros((1, 4 * d), jnp.float32),            # (1, 4d)
            # weights stored transposed for right-multiplication: y = x @ W
            'w_qkv': jnp.stack([_normal(ks[0], (d, d), attn_std),  # (3, d, d)
                                _normal(ks[1], (d, d), attn_std),
                                _normal(ks[2], (d, d), attn_std)], axis=0),
            'w_out': _normal(ks[3], (d, d), proj_std),
            'w_fc': _normal(ks[4], (d, 4 * d), fc_std),
            'w_proj': _normal(ks[5], (4 * d, d), proj_std),
        }
    layers = [one(k) for k in jax.random.split(key, n_layers)]
    # stack each parameter along a leading "layer" axis -> one kernel input per type
    return {name: jnp.stack([lyr[name] for lyr in layers], axis=0)
            for name in layers[0]}


def init_params(key):
    kv, kt = jax.random.split(key)
    onesv = jnp.ones((1, VISION_WIDTH), jnp.float32)
    zerosv = jnp.zeros((1, VISION_WIDTH), jnp.float32)

    # ---- vision tower ----
    vscale = VISION_WIDTH ** (-0.5)
    v_attn_std = VISION_WIDTH ** (-0.5)
    v_proj_std = (VISION_WIDTH ** (-0.5)) * ((2 * VISION_LAYERS) ** (-0.5))
    v_fc_std = (2 * VISION_WIDTH) ** (-0.5)
    vks = jax.random.split(kv, 5)
    conv_w = _normal(vks[0], (VISION_WIDTH, 3, PATCH, PATCH), 0.02)
    cls = _normal(vks[1], (1, VISION_WIDTH), vscale)
    pos = _normal(vks[2], (N_TOKENS_V, VISION_WIDTH), vscale)
    # positional base folded at init: row 0 = cls + pos[0]; rows 1..16 = pos[1:]; pads 0
    pos_base = jnp.concatenate(
        [cls + pos[0:1], pos[1:],
         jnp.zeros((SEQ_V_PAD - N_TOKENS_V, VISION_WIDTH), jnp.float32)],
        axis=0)[None]                                               # (1, 24, 64)
    proj = _normal(vks[3], (VISION_WIDTH, EMBED_DIM), vscale)
    vision = {
        'conv_w': conv_w.reshape(VISION_WIDTH, -1).T,               # (Cin*P*P, width)
        'pos_base': pos_base,
        'ln': jnp.concatenate([onesv, zerosv, onesv, zerosv], 0),   # pre_g, pre_b, post_g, post_b
        'proj': jnp.pad(proj, ((0, 0), (0, OUT_PAD - EMBED_DIM))),  # lane-padded (64, 128)
        'blocks': _init_blocks(vks[4], VISION_WIDTH, VISION_LAYERS,
                               v_attn_std, v_proj_std, v_fc_std),
    }

    # ---- text tower ----
    t_attn_std = TEXT_WIDTH ** (-0.5)
    t_proj_std = (TEXT_WIDTH ** (-0.5)) * ((2 * TEXT_LAYERS) ** (-0.5))
    t_fc_std = (2 * TEXT_WIDTH) ** (-0.5)
    tks = jax.random.split(kt, 4)
    temb = _normal(tks[0], (VOCAB_SIZE, TEXT_WIDTH), 0.02)
    tproj = _normal(tks[2], (TEXT_WIDTH, EMBED_DIM), TEXT_WIDTH ** (-0.5))
    text = {
        'token_emb': jnp.pad(temb, ((0, VOCAB_PAD - VOCAB_SIZE), (0, 0))),  # (128, 64)
        'pos': _normal(tks[1], (1, CONTEXT_LEN, TEXT_WIDTH), 0.01),
        'ln': jnp.concatenate([onesv, zerosv], 0),                   # final_g, final_b
        'proj': jnp.pad(tproj, ((0, 0), (0, OUT_PAD - EMBED_DIM))),  # lane-padded (64, 128)
        'blocks': _init_blocks(tks[3], TEXT_WIDTH, TEXT_LAYERS,
                               t_attn_std, t_proj_std, t_fc_std),
    }
    return {'vision': vision, 'text': text}


# ------------------------------- forward pass --------------------------------
def _extract_patches(img):
    """img: (B, 3, H, W) NCHW -> (B, N, 3*P*P), same flattening as the Conv2d weight."""
    B, C, H, W = img.shape
    Hp, Wp = H // PATCH, W // PATCH
    x = img.reshape(B, C, Hp, PATCH, Wp, PATCH)
    x = x.transpose(0, 2, 4, 1, 3, 5)          # (B, Hp, Wp, C, P, P)
    return x.reshape(B, Hp * Wp, C * PATCH * PATCH)


def _const_spec(arr):
    """Whole-array VMEM block, constant index across the 1-D grid (fetched once)."""
    zeros = (0,) * arr.ndim
    return pl.BlockSpec(arr.shape, lambda i, _z=zeros: _z)


@jax.jit
def clip2text_reid_forward(image, text, params):
    vp, tp = params['vision'], params['text']
    vb, tb = vp['blocks'], tp['blocks']

    patches = _extract_patches(image.astype(jnp.float32))      # (B, 16, 192)
    B = patches.shape[0]
    # pad to (B, SEQ_V_PAD, 192): row 0 is the cls slot (zero patch), tail rows padding
    patches_pad = jnp.pad(
        patches, ((0, 0), (1, SEQ_V_PAD - 1 - NUM_PATCHES), (0, 0)))

    args = (
        # vision tower (11 inputs)
        patches_pad, vp['pos_base'], vp['conv_w'], vp['ln'], vp['proj'],
        vb['vecs'], vb['b_fc'], vb['w_qkv'], vb['w_out'], vb['w_fc'], vb['w_proj'],
        # text tower (11 inputs)
        text.astype(jnp.int32), tp['token_emb'], tp['pos'], tp['ln'], tp['proj'],
        tb['vecs'], tb['b_fc'], tb['w_qkv'], tb['w_out'], tb['w_fc'], tb['w_proj'],
    )

    out = pl.pallas_call(
        _clip_fused_kernel,
        out_shape=jax.ShapeDtypeStruct((2, B, OUT_PAD), jnp.float32),
        grid=(2,),                                  # step 0: image, step 1: text
        in_specs=[_const_spec(a) for a in args],
        out_specs=pl.BlockSpec((1, B, OUT_PAD), lambda i: (i, 0, 0)),
        compiler_params=pltpu.CompilerParams(
            dimension_semantics=("parallel",)),     # towers on separate TCs on v7x
    )(*args)
    # slice the lane-padded 128-wide result back to EMBED_DIM
    return out[0, :, :EMBED_DIM], out[1, :, :EMBED_DIM]


# ----------------------------------- main ------------------------------------
if __name__ == "__main__":
    key = jax.random.PRNGKey(0)
    k_param, k_img, k_txt = jax.random.split(key, 3)

    params = init_params(k_param)

    B = 2
    image = jax.random.normal(k_img, (B, 3, IMAGE_SIZE[0], IMAGE_SIZE[1]),
                              dtype=jnp.float32)
    text = jax.random.randint(k_txt, (B, CONTEXT_LEN), 0, VOCAB_SIZE,
                              dtype=jnp.int32)

    image_features, text_features = clip2text_reid_forward(image, text, params)
    jax.block_until_ready((image_features, text_features))

    assert image_features.shape == (B, EMBED_DIM)
    assert text_features.shape == (B, EMBED_DIM)
    assert bool(jnp.all(jnp.isfinite(image_features)))
    assert bool(jnp.all(jnp.isfinite(text_features)))
    print("KERNEL_OK")
</pallas_src>

<mosaic_0001>
module attributes {stable_mosaic.version = 11 : i64} {
  func.func @_clip_fused_kernel(%arg0: i32, %arg1: memref<2x24x192xf32, #tpu.memory_space<vmem>>, %arg2: memref<1x24x64xf32, #tpu.memory_space<vmem>>, %arg3: memref<192x64xf32, #tpu.memory_space<vmem>>, %arg4: memref<4x64xf32, #tpu.memory_space<vmem>>, %arg5: memref<64x128xf32, #tpu.memory_space<vmem>>, %arg6: memref<2x9x64xf32, #tpu.memory_space<vmem>>, %arg7: memref<2x1x256xf32, #tpu.memory_space<vmem>>, %arg8: memref<2x3x64x64xf32, #tpu.memory_space<vmem>>, %arg9: memref<2x64x64xf32, #tpu.memory_space<vmem>>, %arg10: memref<2x64x256xf32, #tpu.memory_space<vmem>>, %arg11: memref<2x256x64xf32, #tpu.memory_space<vmem>>, %arg12: memref<2x8xi32, #tpu.memory_space<vmem>>, %arg13: memref<128x64xf32, #tpu.memory_space<vmem>>, %arg14: memref<1x8x64xf32, #tpu.memory_space<vmem>>, %arg15: memref<2x64xf32, #tpu.memory_space<vmem>>, %arg16: memref<64x128xf32, #tpu.memory_space<vmem>>, %arg17: memref<2x9x64xf32, #tpu.memory_space<vmem>>, %arg18: memref<2x1x256xf32, #tpu.memory_space<vmem>>, %arg19: memref<2x3x64x64xf32, #tpu.memory_space<vmem>>, %arg20: memref<2x64x64xf32, #tpu.memory_space<vmem>>, %arg21: memref<2x64x256xf32, #tpu.memory_space<vmem>>, %arg22: memref<2x256x64xf32, #tpu.memory_space<vmem>>, %arg23: memref<1x2x128xf32, #tpu.memory_space<vmem>>) attributes {dimension_semantics = [#tpu.dimension_semantics<parallel>], iteration_bounds = array<i64: 2>, scalar_prefetch = 0 : i64, scratch_operands = 0 : i64, tpu.core_type = #tpu.core_type<tc>, window_params = [{pipeline_mode = #tpu.pipeline_mode<synchronous>, transform_indices = @transform_0, window_bounds = array<i64: 2, 24, 192>}, {pipeline_mode = #tpu.pipeline_mode<synchronous>, transform_indices = @transform_1, window_bounds = array<i64: 1, 24, 64>}, {pipeline_mode = #tpu.pipeline_mode<synchronous>, transform_indices = @transform_2, window_bounds = array<i64: 192, 64>}, {pipeline_mode = #tpu.pipeline_mode<synchronous>, transform_indices = @transform_3, window_bounds = array<i64: 4, 64>}, {pipeline_mode = #tpu.pipeline_mode<synchronous>, transform_indices = @transform_4, window_bounds = array<i64: 64, 128>}, {pipeline_mode = #tpu.pipeline_mode<synchronous>, transform_indices = @transform_5, window_bounds = array<i64: 2, 9, 64>}, {pipeline_mode = #tpu.pipeline_mode<synchronous>, transform_indices = @transform_6, window_bounds = array<i64: 2, 1, 256>}, {pipeline_mode = #tpu.pipeline_mode<synchronous>, transform_indices = @transform_7, window_bounds = array<i64: 2, 3, 64, 64>}, {pipeline_mode = #tpu.pipeline_mode<synchronous>, transform_indices = @transform_8, window_bounds = array<i64: 2, 64, 64>}, {pipeline_mode = #tpu.pipeline_mode<synchronous>, transform_indices = @transform_9, window_bounds = array<i64: 2, 64, 256>}, {pipeline_mode = #tpu.pipeline_mode<synchronous>, transform_indices = @transform_10, window_bounds = array<i64: 2, 256, 64>}, {pipeline_mode = #tpu.pipeline_mode<synchronous>, transform_indices = @transform_11, window_bounds = array<i64: 2, 8>}, {pipeline_mode = #tpu.pipeline_mode<synchronous>, transform_indices = @transform_12, window_bounds = array<i64: 128, 64>}, {pipeline_mode = #tpu.pipeline_mode<synchronous>, transform_indices = @transform_13, window_bounds = array<i64: 1, 8, 64>}, {pipeline_mode = #tpu.pipeline_mode<synchronous>, transform_indices = @transform_14, window_bounds = array<i64: 2, 64>}, {pipeline_mode = #tpu.pipeline_mode<synchronous>, transform_indices = @transform_15, window_bounds = array<i64: 64, 128>}, {pipeline_mode = #tpu.pipeline_mode<synchronous>, transform_indices = @transform_16, window_bounds = array<i64: 2, 9, 64>}, {pipeline_mode = #tpu.pipeline_mode<synchronous>, transform_indices = @transform_17, window_bounds = array<i64: 2, 1, 256>}, {pipeline_mode = #tpu.pipeline_mode<synchronous>, transform_indices = @transform_18, window_bounds = array<i64: 2, 3, 64, 64>}, {pipeline_mode = #tpu.pipeline_mode<synchronous>, transform_indices = @transform_19, window_bounds = array<i64: 2, 64, 64>}, {pipeline_mode = #tpu.pipeline_mode<synchronous>, transform_indices = @transform_20, window_bounds = array<i64: 2, 64, 256>}, {pipeline_mode = #tpu.pipeline_mode<synchronous>, transform_indices = @transform_21, window_bounds = array<i64: 2, 256, 64>}, {transform_indices = @transform_22, window_bounds = array<i64: 1, 2, 128>}]} {
    %c0_i32 = arith.constant 0 : i32
    %0 = arith.cmpi eq, %arg0, %c0_i32 : i32
    %1 = arith.extui %0 : i1 to i32
    %c0_i32_0 = arith.constant 0 : i32
    %2 = arith.cmpi ne, %1, %c0_i32_0 : i32
    scf.if %2 {
      %c0 = arith.constant 0 : index
      %c0_2 = arith.constant 0 : index
      %c0_3 = arith.constant 0 : index
      %6 = vector.load %arg1[%c0, %c0_2, %c0_3] : memref<2x24x192xf32, #tpu.memory_space<vmem>>, vector<2x24x192xf32>
      %7 = vector.shape_cast %6 : vector<2x24x192xf32> to vector<48x192xf32>
      %c0_4 = arith.constant 0 : index
      %c0_5 = arith.constant 0 : index
      %8 = vector.load %arg3[%c0_4, %c0_5] : memref<192x64xf32, #tpu.memory_space<vmem>>, vector<192x64xf32>
      %cst = arith.constant dense<0.000000e+00> : vector<48x64xf32>
      %9 = tpu.matmul %7, %8, %cst {dimension_numbers = #tpu.dot_dimension_numbers<[1], [0], [0], [1], [0, 0, 1, 1], [], []>} : vector<48x192xf32>, vector<192x64xf32>, vector<48x64xf32> -> vector<48x64xf32>
      %10 = vector.shape_cast %9 : vector<48x64xf32> to vector<2x24x64xf32>
      %c0_6 = arith.constant 0 : index
      %c0_7 = arith.constant 0 : index
      %c0_8 = arith.constant 0 : index
      %11 = vector.load %arg2[%c0_6, %c0_7, %c0_8] : memref<1x24x64xf32, #tpu.memory_space<vmem>>, vector<1x24x64xf32>
      %12 = vector.broadcast %11 : vector<1x24x64xf32> to vector<2x24x64xf32>
      %13 = arith.addf %10, %12 : vector<2x24x64xf32>
      %c0_9 = arith.constant 0 : index
      %c0_10 = arith.constant 0 : index
      %14 = vector.load %arg4[%c0_9, %c0_10] : memref<4x64xf32, #tpu.memory_space<vmem>>, vector<4x64xf32>
      %15 = vector.shape_cast %13 : vector<2x24x64xf32> to vector<48x64xf32>
      %16 = vector.extract_strided_slice %14 {offsets = [0, 0], sizes = [1, 64], strides = [1, 1]} : vector<4x64xf32> to vector<1x64xf32>
      %17 = vector.extract_strided_slice %14 {offsets = [1, 0], sizes = [1, 64], strides = [1, 1]} : vector<4x64xf32> to vector<1x64xf32>
      %cst_11 = arith.constant dense<0.000000e+00> : vector<48xf32>
      %18 = vector.multi_reduction <add>, %15, %cst_11 [1] : vector<48x64xf32> to vector<48xf32>
      %19 = vector.shape_cast %18 : vector<48xf32> to vector<48x1xf32>
      %cst_12 = arith.constant 6.400000e+01 : f32
      %20 = vector.broadcast %cst_12 : f32 to vector<48x1xf32>
      %21 = arith.divf %19, %20 : vector<48x1xf32>
      %22 = vector.broadcast %21 : vector<48x1xf32> to vector<48x64xf32>
      %23 = arith.subf %15, %22 : vector<48x64xf32>
      %24 = arith.mulf %23, %23 : vector<48x64xf32>
      %cst_13 = arith.constant dense<0.000000e+00> : vector<48xf32>
      %25 = vector.multi_reduction <add>, %24, %cst_13 [1] : vector<48x64xf32> to vector<48xf32>
      %26 = vector.shape_cast %25 : vector<48xf32> to vector<48x1xf32>
      %cst_14 = arith.constant 6.400000e+01 : f32
      %27 = vector.broadcast %cst_14 : f32 to vector<48x1xf32>
      %28 = arith.divf %26, %27 : vector<48x1xf32>
      %cst_15 = arith.constant 9.99999974E-6 : f32
      %29 = vector.broadcast %cst_15 : f32 to vector<48x1xf32>
      %30 = arith.addf %28, %29 : vector<48x1xf32>
      %31 = math.rsqrt %30 : vector<48x1xf32>
      %32 = vector.broadcast %31 : vector<48x1xf32> to vector<48x64xf32>
      %33 = arith.mulf %23, %32 : vector<48x64xf32>
      %34 = vector.broadcast %16 : vector<1x64xf32> to vector<48x64xf32>
      %35 = arith.mulf %33, %34 : vector<48x64xf32>
      %36 = vector.broadcast %17 : vector<1x64xf32> to vector<48x64xf32>
      %37 = arith.addf %35, %36 : vector<48x64xf32>
      %38 = tpu.iota {dimensions = array<i32: 2>} : vector<1x1x24xi32>
      %c17_i32 = arith.constant 17 : i32
      %39 = vector.broadcast %c17_i32 : i32 to vector<1x1x24xi32>
      %40 = arith.cmpi slt, %38, %39 : vector<1x1x24xi32>
      %cst_16 = arith.constant 0.000000e+00 : f32
      %cst_17 = arith.constant -1.000000e+09 : f32
      %41 = vector.broadcast %cst_16 : f32 to vector<1x1x24xf32>
      %42 = vector.broadcast %cst_17 : f32 to vector<1x1x24xf32>
      %43 = arith.select %40, %41, %42 : vector<1x1x24xi1>, vector<1x1x24xf32>
      %c0_18 = arith.constant 0 : index
      %c0_19 = arith.constant 0 : index
      %c0_20 = arith.constant 0 : index
      %44 = vector.load %arg6[%c0_18, %c0_19, %c0_20] : memref<2x9x64xf32, #tpu.memory_space<vmem>>, vector<1x9x64xf32>
      %45 = vector.shape_cast %44 : vector<1x9x64xf32> to vector<9x64xf32>
      %c0_21 = arith.constant 0 : index
      %c0_22 = arith.constant 0 : index
      %c0_23 = arith.constant 0 : index
      %46 = vector.load %arg7[%c0_21, %c0_22, %c0_23] : memref<2x1x256xf32, #tpu.memory_space<vmem>>, vector<1x1x256xf32>
      %47 = vector.shape_cast %46 : vector<1x1x256xf32> to vector<1x256xf32>
      %c0_24 = arith.constant 0 : index
      %c0_25 = arith.constant 0 : index
      %c0_26 = arith.constant 0 : index
      %c0_27 = arith.constant 0 : index
      %48 = vector.load %arg8[%c0_24, %c0_25, %c0_26, %c0_27] : memref<2x3x64x64xf32, #tpu.memory_space<vmem>>, vector<1x1x64x64xf32>
      %49 = vector.shape_cast %48 : vector<1x1x64x64xf32> to vector<64x64xf32>
      %c0_28 = arith.constant 0 : index
      %c1 = arith.constant 1 : index
      %c0_29 = arith.constant 0 : index
      %c0_30 = arith.constant 0 : index
      %50 = vector.load %arg8[%c0_28, %c1, %c0_29, %c0_30] : memref<2x3x64x64xf32, #tpu.memory_space<vmem>>, vector<1x1x64x64xf32>
      %51 = vector.shape_cast %50 : vector<1x1x64x64xf32> to vector<64x64xf32>
      %c0_31 = arith.constant 0 : index
      %c2 = arith.constant 2 : index
      %c0_32 = arith.constant 0 : index
      %c0_33 = arith.constant 0 : index
      %52 = vector.load %arg8[%c0_31, %c2, %c0_32, %c0_33] : memref<2x3x64x64xf32, #tpu.memory_space<vmem>>, vector<1x1x64x64xf32>
      %53 = vector.shape_cast %52 : vector<1x1x64x64xf32> to vector<64x64xf32>
      %c0_34 = arith.constant 0 : index
      %c0_35 = arith.constant 0 : index
      %c0_36 = arith.constant 0 : index
      %54 = vector.load %arg9[%c0_34, %c0_35, %c0_36] : memref<2x64x64xf32, #tpu.memory_space<vmem>>, vector<1x64x64xf32>
      %55 = vector.shape_cast %54 : vector<1x64x64xf32> to vector<64x64xf32>
      %c0_37 = arith.constant 0 : index
      %c0_38 = arith.constant 0 : index
      %c0_39 = arith.constant 0 : index
      %56 = vector.load %arg10[%c0_37, %c0_38, %c0_39] : memref<2x64x256xf32, #tpu.memory_space<vmem>>, vector<1x64x256xf32>
      %57 = vector.shape_cast %56 : vector<1x64x256xf32> to vector<64x256xf32>
      %c0_40 = arith.constant 0 : index
      %c0_41 = arith.constant 0 : index
      %c0_42 = arith.constant 0 : index
      %58 = vector.load %arg11[%c0_40, %c0_41, %c0_42] : memref<2x256x64xf32, #tpu.memory_space<vmem>>, vector<1x256x64xf32>
      %59 = vector.shape_cast %58 : vector<1x256x64xf32> to vector<256x64xf32>
      %60 = vector.extract_strided_slice %45 {offsets = [0, 0], sizes = [1, 64], strides = [1, 1]} : vector<9x64xf32> to vector<1x64xf32>
      %61 = vector.extract_strided_slice %45 {offsets = [1, 0], sizes = [1, 64], strides = [1, 1]} : vector<9x64xf32> to vector<1x64xf32>
      %cst_43 = arith.constant dense<0.000000e+00> : vector<48xf32>
      %62 = vector.multi_reduction <add>, %37, %cst_43 [1] : vector<48x64xf32> to vector<48xf32>
      %63 = vector.shape_cast %62 : vector<48xf32> to vector<48x1xf32>
      %cst_44 = arith.constant 6.400000e+01 : f32
      %64 = vector.broadcast %cst_44 : f32 to vector<48x1xf32>
      %65 = arith.divf %63, %64 : vector<48x1xf32>
      %66 = vector.broadcast %65 : vector<48x1xf32> to vector<48x64xf32>
      %67 = arith.subf %37, %66 : vector<48x64xf32>
      %68 = arith.mulf %67, %67 : vector<48x64xf32>
      %cst_45 = arith.constant dense<0.000000e+00> : vector<48xf32>
      %69 = vector.multi_reduction <add>, %68, %cst_45 [1] : vector<48x64xf32> to vector<48xf32>
      %70 = vector.shape_cast %69 : vector<48xf32> to vector<48x1xf32>
      %cst_46 = arith.constant 6.400000e+01 : f32
      %71 = vector.broadcast %cst_46 : f32 to vector<48x1xf32>
      %72 = arith.divf %70, %71 : vector<48x1xf32>
      %cst_47 = arith.constant 9.99999974E-6 : f32
      %73 = vector.broadcast %cst_47 : f32 to vector<48x1xf32>
      %74 = arith.addf %72, %73 : vector<48x1xf32>
      %75 = math.rsqrt %74 : vector<48x1xf32>
      %76 = vector.broadcast %75 : vector<48x1xf32> to vector<48x64xf32>
      %77 = arith.mulf %67, %76 : vector<48x64xf32>
      %78 = vector.broadcast %60 : vector<1x64xf32> to vector<48x64xf32>
      %79 = arith.mulf %77, %78 : vector<48x64xf32>
      %80 = vector.broadcast %61 : vector<1x64xf32> to vector<48x64xf32>
      %81 = arith.addf %79, %80 : vector<48x64xf32>
      %cst_48 = arith.constant dense<0.000000e+00> : vector<48x64xf32>
      %82 = tpu.matmul %81, %49, %cst_48 {dimension_numbers = #tpu.dot_dimension_numbers<[1], [0], [0], [1], [0, 0, 1, 1], [], []>} : vector<48x64xf32>, vector<64x64xf32>, vector<48x64xf32> -> vector<48x64xf32>
      %83 = vector.extract_strided_slice %45 {offsets = [2, 0], sizes = [1, 64], strides = [1, 1]} : vector<9x64xf32> to vector<1x64xf32>
      %84 = vector.broadcast %83 : vector<1x64xf32> to vector<48x64xf32>
      %85 = arith.addf %82, %84 : vector<48x64xf32>
      %86 = vector.shape_cast %85 : vector<48x64xf32> to vector<2x24x64xf32>
      %cst_49 = arith.constant dense<0.000000e+00> : vector<48x64xf32>
      %87 = tpu.matmul %81, %51, %cst_49 {dimension_numbers = #tpu.dot_dimension_numbers<[1], [0], [0], [1], [0, 0, 1, 1], [], []>} : vector<48x64xf32>, vector<64x64xf32>, vector<48x64xf32> -> vector<48x64xf32>
      %88 = vector.extract_strided_slice %45 {offsets = [3, 0], sizes = [1, 64], strides = [1, 1]} : vector<9x64xf32> to vector<1x64xf32>
      %89 = vector.broadcast %88 : vector<1x64xf32> to vector<48x64xf32>
      %90 = arith.addf %87, %89 : vector<48x64xf32>
      %91 = vector.shape_cast %90 : vector<48x64xf32> to vector<2x24x64xf32>
      %cst_50 = arith.constant dense<0.000000e+00> : vector<48x64xf32>
      %92 = tpu.matmul %81, %53, %cst_50 {dimension_numbers = #tpu.dot_dimension_numbers<[1], [0], [0], [1], [0, 0, 1, 1], [], []>} : vector<48x64xf32>, vector<64x64xf32>, vector<48x64xf32> -> vector<48x64xf32>
      %93 = vector.extract_strided_slice %45 {offsets = [4, 0], sizes = [1, 64], strides = [1, 1]} : vector<9x64xf32> to vector<1x64xf32>
      %94 = vector.broadcast %93 : vector<1x64xf32> to vector<48x64xf32>
      %95 = arith.addf %92, %94 : vector<48x64xf32>
      %96 = vector.shape_cast %95 : vector<48x64xf32> to vector<2x24x64xf32>
      "tpu.trace_start"() <{level = 10 : i32, message = "bqd,bkd->bqk"}> : () -> ()
      %cst_51 = arith.constant dense<0.000000e+00> : vector<2x24x24xf32>
      %97 = tpu.matmul %86, %91, %cst_51 {dimension_numbers = #tpu.dot_dimension_numbers<[2], [2], [1], [1], [0, 0, 0, 1, 1, 1], [0], [0]>} : vector<2x24x64xf32>, vector<2x24x64xf32>, vector<2x24x24xf32> -> vector<2x24x24xf32>
      "tpu.trace_stop"() : () -> ()
      %cst_52 = arith.constant 1.250000e-01 : f32
      %98 = vector.broadcast %cst_52 : f32 to vector<2x24x24xf32>
      %99 = arith.mulf %97, %98 : vector<2x24x24xf32>
      %100 = vector.broadcast %43 : vector<1x1x24xf32> to vector<2x24x24xf32>
      %101 = arith.addf %99, %100 : vector<2x24x24xf32>
      %cst_53 = arith.constant dense<0xFF800000> : vector<2x24xf32>
      %102 = vector.multi_reduction <maximumf>, %101, %cst_53 [2] : vector<2x24x24xf32> to vector<2x24xf32>
      %103 = vector.shape_cast %102 : vector<2x24xf32> to vector<2x24x1xf32>
      %104 = vector.broadcast %103 : vector<2x24x1xf32> to vector<2x24x24xf32>
      %105 = arith.subf %101, %104 : vector<2x24x24xf32>
      %106 = math.exp %105 : vector<2x24x24xf32>
      %cst_54 = arith.constant dense<0.000000e+00> : vector<2x24xf32>
      %107 = vector.multi_reduction <add>, %106, %cst_54 [2] : vector<2x24x24xf32> to vector<2x24xf32>
      %108 = vector.shape_cast %107 : vector<2x24xf32> to vector<2x24x1xf32>
      %109 = tpu.reciprocal %108 {approx = true} : vector<2x24x1xf32> -> vector<2x24x1xf32>
      %110 = vector.broadcast %109 : vector<2x24x1xf32> to vector<2x24x24xf32>
      %111 = arith.mulf %106, %110 : vector<2x24x24xf32>
      "tpu.trace_start"() <{level = 10 : i32, message = "bqk,bkd->bqd"}> : () -> ()
      %cst_55 = arith.constant dense<0.000000e+00> : vector<2x24x64xf32>
      %112 = tpu.matmul %111, %96, %cst_55 {dimension_numbers = #tpu.dot_dimension_numbers<[2], [1], [1], [2], [0, 0, 0, 1, 1, 2], [0], [0]>} : vector<2x24x24xf32>, vector<2x24x64xf32>, vector<2x24x64xf32> -> vector<2x24x64xf32>
      "tpu.trace_stop"() : () -> ()
      %113 = vector.shape_cast %112 : vector<2x24x64xf32> to vector<48x64xf32>
      %cst_56 = arith.constant dense<0.000000e+00> : vector<48x64xf32>
      %114 = tpu.matmul %113, %55, %cst_56 {dimension_numbers = #tpu.dot_dimension_numbers<[1], [0], [0], [1], [0, 0, 1, 1], [], []>} : vector<48x64xf32>, vector<64x64xf32>, vector<48x64xf32> -> vector<48x64xf32>
      %115 = arith.addf %37, %114 : vector<48x64xf32>
      %116 = vector.extract_strided_slice %45 {offsets = [5, 0], sizes = [1, 64], strides = [1, 1]} : vector<9x64xf32> to vector<1x64xf32>
      %117 = vector.broadcast %116 : vector<1x64xf32> to vector<48x64xf32>
      %118 = arith.addf %115, %117 : vector<48x64xf32>
      %119 = vector.extract_strided_slice %45 {offsets = [6, 0], sizes = [1, 64], strides = [1, 1]} : vector<9x64xf32> to vector<1x64xf32>
      %120 = vector.extract_strided_slice %45 {offsets = [7, 0], sizes = [1, 64], strides = [1, 1]} : vector<9x64xf32> to vector<1x64xf32>
      %cst_57 = arith.constant dense<0.000000e+00> : vector<48xf32>
      %121 = vector.multi_reduction <add>, %118, %cst_57 [1] : vector<48x64xf32> to vector<48xf32>
      %122 = vector.shape_cast %121 : vector<48xf32> to vector<48x1xf32>
      %cst_58 = arith.constant 6.400000e+01 : f32
      %123 = vector.broadcast %cst_58 : f32 to vector<48x1xf32>
      %124 = arith.divf %122, %123 : vector<48x1xf32>
      %125 = vector.broadcast %124 : vector<48x1xf32> to vector<48x64xf32>
      %126 = arith.subf %118, %125 : vector<48x64xf32>
      %127 = arith.mulf %126, %126 : vector<48x64xf32>
      %cst_59 = arith.constant dense<0.000000e+00> : vector<48xf32>
      %128 = vector.multi_reduction <add>, %127, %cst_59 [1] : vector<48x64xf32> to vector<48xf32>
      %129 = vector.shape_cast %128 : vector<48xf32> to vector<48x1xf32>
      %cst_60 = arith.constant 6.400000e+01 : f32
      %130 = vector.broadcast %cst_60 : f32 to vector<48x1xf32>
      %131 = arith.divf %129, %130 : vector<48x1xf32>
      %cst_61 = arith.constant 9.99999974E-6 : f32
      %132 = vector.broadcast %cst_61 : f32 to vector<48x1xf32>
      %133 = arith.addf %131, %132 : vector<48x1xf32>
      %134 = math.rsqrt %133 : vector<48x1xf32>
      %135 = vector.broadcast %134 : vector<48x1xf32> to vector<48x64xf32>
      %136 = arith.mulf %126, %135 : vector<48x64xf32>
      %137 = vector.broadcast %119 : vector<1x64xf32> to vector<48x64xf32>
      %138 = arith.mulf %136, %137 : vector<48x64xf32>
      %139 = vector.broadcast %120 : vector<1x64xf32> to vector<48x64xf32>
      %140 = arith.addf %138, %139 : vector<48x64xf32>
      %cst_62 = arith.constant dense<0.000000e+00> : vector<48x256xf32>
      %141 = tpu.matmul %140, %57, %cst_62 {dimension_numbers = #tpu.dot_dimension_numbers<[1], [0], [0], [1], [0, 0, 1, 1], [], []>} : vector<48x64xf32>, vector<64x256xf32>, vector<48x256xf32> -> vector<48x256xf32>
      %142 = vector.broadcast %47 : vector<1x256xf32> to vector<48x256xf32>
      %143 = arith.addf %141, %142 : vector<48x256xf32>
      %cst_63 = arith.constant 1.702000e+00 : f32
      %144 = vector.broadcast %cst_63 : f32 to vector<48x256xf32>
      %145 = arith.mulf %144, %143 : vector<48x256xf32>
      %146 = arith.negf %145 : vector<48x256xf32>
      %147 = math.exp %146 : vector<48x256xf32>
      %cst_64 = arith.constant 1.000000e+00 : f32
      %148 = vector.broadcast %cst_64 : f32 to vector<48x256xf32>
      %149 = arith.addf %148, %147 : vector<48x256xf32>
      %150 = arith.divf %148, %149 : vector<48x256xf32>
      %151 = arith.mulf %143, %150 : vector<48x256xf32>
      %cst_65 = arith.constant dense<0.000000e+00> : vector<48x64xf32>
      %152 = tpu.matmul %151, %59, %cst_65 {dimension_numbers = #tpu.dot_dimension_numbers<[1], [0], [0], [1], [0, 0, 1, 1], [], []>} : vector<48x256xf32>, vector<256x64xf32>, vector<48x64xf32> -> vector<48x64xf32>
      %153 = vector.extract_strided_slice %45 {offsets = [8, 0], sizes = [1, 64], strides = [1, 1]} : vector<9x64xf32> to vector<1x64xf32>
      %154 = vector.broadcast %153 : vector<1x64xf32> to vector<48x64xf32>
      %155 = arith.addf %152, %154 : vector<48x64xf32>
      %156 = arith.addf %118, %155 : vector<48x64xf32>
      %c1_66 = arith.constant 1 : index
      %c0_67 = arith.constant 0 : index
      %c0_68 = arith.constant 0 : index
      %157 = vector.load %arg6[%c1_66, %c0_67, %c0_68] : memref<2x9x64xf32, #tpu.memory_space<vmem>>, vector<1x9x64xf32>
      %158 = vector.shape_cast %157 : vector<1x9x64xf32> to vector<9x64xf32>
      %c1_69 = arith.constant 1 : index
      %c0_70 = arith.constant 0 : index
      %c0_71 = arith.constant 0 : index
      %159 = vector.load %arg7[%c1_69, %c0_70, %c0_71] : memref<2x1x256xf32, #tpu.memory_space<vmem>>, vector<1x1x256xf32>
      %160 = vector.shape_cast %159 : vector<1x1x256xf32> to vector<1x256xf32>
      %c1_72 = arith.constant 1 : index
      %c0_73 = arith.constant 0 : index
      %c0_74 = arith.constant 0 : index
      %c0_75 = arith.constant 0 : index
      %161 = vector.load %arg8[%c1_72, %c0_73, %c0_74, %c0_75] : memref<2x3x64x64xf32, #tpu.memory_space<vmem>>, vector<1x1x64x64xf32>
      %162 = vector.shape_cast %161 : vector<1x1x64x64xf32> to vector<64x64xf32>
      %c1_76 = arith.constant 1 : index
      %c1_77 = arith.constant 1 : index
      %c0_78 = arith.constant 0 : index
      %c0_79 = arith.constant 0 : index
      %163 = vector.load %arg8[%c1_76, %c1_77, %c0_78, %c0_79] : memref<2x3x64x64xf32, #tpu.memory_space<vmem>>, vector<1x1x64x64xf32>
      %164 = vector.shape_cast %163 : vector<1x1x64x64xf32> to vector<64x64xf32>
      %c1_80 = arith.constant 1 : index
      %c2_81 = arith.constant 2 : index
      %c0_82 = arith.constant 0 : index
      %c0_83 = arith.constant 0 : index
      %165 = vector.load %arg8[%c1_80, %c2_81, %c0_82, %c0_83] : memref<2x3x64x64xf32, #tpu.memory_space<vmem>>, vector<1x1x64x64xf32>
      %166 = vector.shape_cast %165 : vector<1x1x64x64xf32> to vector<64x64xf32>
      %c1_84 = arith.constant 1 : index
      %c0_85 = arith.constant 0 : index
      %c0_86 = arith.constant 0 : index
      %167 = vector.load %arg9[%c1_84, %c0_85, %c0_86] : memref<2x64x64xf32, #tpu.memory_space<vmem>>, vector<1x64x64xf32>
      %168 = vector.shape_cast %167 : vector<1x64x64xf32> to vector<64x64xf32>
      %c1_87 = arith.constant 1 : index
      %c0_88 = arith.constant 0 : index
      %c0_89 = arith.constant 0 : index
      %169 = vector.load %arg10[%c1_87, %c0_88, %c0_89] : memref<2x64x256xf32, #tpu.memory_space<vmem>>, vector<1x64x256xf32>
      %170 = vector.shape_cast %169 : vector<1x64x256xf32> to vector<64x256xf32>
      %c1_90 = arith.constant 1 : index
      %c0_91 = arith.constant 0 : index
      %c0_92 = arith.constant 0 : index
      %171 = vector.load %arg11[%c1_90, %c0_91, %c0_92] : memref<2x256x64xf32, #tpu.memory_space<vmem>>, vector<1x256x64xf32>
      %172 = vector.shape_cast %171 : vector<1x256x64xf32> to vector<256x64xf32>
      %173 = vector.extract_strided_slice %158 {offsets = [0, 0], sizes = [1, 64], strides = [1, 1]} : vector<9x64xf32> to vector<1x64xf32>
      %174 = vector.extract_strided_slice %158 {offsets = [1, 0], sizes = [1, 64], strides = [1, 1]} : vector<9x64xf32> to vector<1x64xf32>
      %cst_93 = arith.constant dense<0.000000e+00> : vector<48xf32>
      %175 = vector.multi_reduction <add>, %156, %cst_93 [1] : vector<48x64xf32> to vector<48xf32>
      %176 = vector.shape_cast %175 : vector<48xf32> to vector<48x1xf32>
      %cst_94 = arith.constant 6.400000e+01 : f32
      %177 = vector.broadcast %cst_94 : f32 to vector<48x1xf32>
      %178 = arith.divf %176, %177 : vector<48x1xf32>
      %179 = vector.broadcast %178 : vector<48x1xf32> to vector<48x64xf32>
      %180 = arith.subf %156, %179 : vector<48x64xf32>
      %181 = arith.mulf %180, %180 : vector<48x64xf32>
      %cst_95 = arith.constant dense<0.000000e+00> : vector<48xf32>
      %182 = vector.multi_reduction <add>, %181, %cst_95 [1] : vector<48x64xf32> to vector<48xf32>
      %183 = vector.shape_cast %182 : vector<48xf32> to vector<48x1xf32>
      %cst_96 = arith.constant 6.400000e+01 : f32
      %184 = vector.broadcast %cst_96 : f32 to vector<48x1xf32>
      %185 = arith.divf %183, %184 : vector<48x1xf32>
      %cst_97 = arith.constant 9.99999974E-6 : f32
      %186 = vector.broadcast %cst_97 : f32 to vector<48x1xf32>
      %187 = arith.addf %185, %186 : vector<48x1xf32>
      %188 = math.rsqrt %187 : vector<48x1xf32>
      %189 = vector.broadcast %188 : vector<48x1xf32> to vector<48x64xf32>
      %190 = arith.mulf %180, %189 : vector<48x64xf32>
      %191 = vector.broadcast %173 : vector<1x64xf32> to vector<48x64xf32>
      %192 = arith.mulf %190, %191 : vector<48x64xf32>
      %193 = vector.broadcast %174 : vector<1x64xf32> to vector<48x64xf32>
      %194 = arith.addf %192, %193 : vector<48x64xf32>
      %cst_98 = arith.constant dense<0.000000e+00> : vector<48x64xf32>
      %195 = tpu.matmul %194, %162, %cst_98 {dimension_numbers = #tpu.dot_dimension_numbers<[1], [0], [0], [1], [0, 0, 1, 1], [], []>} : vector<48x64xf32>, vector<64x64xf32>, vector<48x64xf32> -> vector<48x64xf32>
      %196 = vector.extract_strided_slice %158 {offsets = [2, 0], sizes = [1, 64], strides = [1, 1]} : vector<9x64xf32> to vector<1x64xf32>
      %197 = vector.broadcast %196 : vector<1x64xf32> to vector<48x64xf32>
      %198 = arith.addf %195, %197 : vector<48x64xf32>
      %199 = vector.shape_cast %198 : vector<48x64xf32> to vector<2x24x64xf32>
      %cst_99 = arith.constant dense<0.000000e+00> : vector<48x64xf32>
      %200 = tpu.matmul %194, %164, %cst_99 {dimension_numbers = #tpu.dot_dimension_numbers<[1], [0], [0], [1], [0, 0, 1, 1], [], []>} : vector<48x64xf32>, vector<64x64xf32>, vector<48x64xf32> -> vector<48x64xf32>
      %201 = vector.extract_strided_slice %158 {offsets = [3, 0], sizes = [1, 64], strides = [1, 1]} : vector<9x64xf32> to vector<1x64xf32>
      %202 = vector.broadcast %201 : vector<1x64xf32> to vector<48x64xf32>
      %203 = arith.addf %200, %202 : vector<48x64xf32>
      %204 = vector.shape_cast %203 : vector<48x64xf32> to vector<2x24x64xf32>
      %cst_100 = arith.constant dense<0.000000e+00> : vector<48x64xf32>
      %205 = tpu.matmul %194, %166, %cst_100 {dimension_numbers = #tpu.dot_dimension_numbers<[1], [0], [0], [1], [0, 0, 1, 1], [], []>} : vector<48x64xf32>, vector<64x64xf32>, vector<48x64xf32> -> vector<48x64xf32>
      %206 = vector.extract_strided_slice %158 {offsets = [4, 0], sizes = [1, 64], strides = [1, 1]} : vector<9x64xf32> to vector<1x64xf32>
      %207 = vector.broadcast %206 : vector<1x64xf32> to vector<48x64xf32>
      %208 = arith.addf %205, %207 : vector<48x64xf32>
      %209 = vector.shape_cast %208 : vector<48x64xf32> to vector<2x24x64xf32>
      "tpu.trace_start"() <{level = 10 : i32, message = "bqd,bkd->bqk"}> : () -> ()
      %cst_101 = arith.constant dense<0.000000e+00> : vector<2x24x24xf32>
      %210 = tpu.matmul %199, %204, %cst_101 {dimension_numbers = #tpu.dot_dimension_numbers<[2], [2], [1], [1], [0, 0, 0, 1, 1, 1], [0], [0]>} : vector<2x24x64xf32>, vector<2x24x64xf32>, vector<2x24x24xf32> -> vector<2x24x24xf32>
      "tpu.trace_stop"() : () -> ()
      %cst_102 = arith.constant 1.250000e-01 : f32
      %211 = vector.broadcast %cst_102 : f32 to vector<2x24x24xf32>
      %212 = arith.mulf %210, %211 : vector<2x24x24xf32>
      %213 = vector.broadcast %43 : vector<1x1x24xf32> to vector<2x24x24xf32>
      %214 = arith.addf %212, %213 : vector<2x24x24xf32>
      %cst_103 = arith.constant dense<0xFF800000> : vector<2x24xf32>
      %215 = vector.multi_reduction <maximumf>, %214, %cst_103 [2] : vector<2x24x24xf32> to vector<2x24xf32>
      %216 = vector.shape_cast %215 : vector<2x24xf32> to vector<2x24x1xf32>
      %217 = vector.broadcast %216 : vector<2x24x1xf32> to vector<2x24x24xf32>
      %218 = arith.subf %214, %217 : vector<2x24x24xf32>
      %219 = math.exp %218 : vector<2x24x24xf32>
      %cst_104 = arith.constant dense<0.000000e+00> : vector<2x24xf32>
      %220 = vector.multi_reduction <add>, %219, %cst_104 [2] : vector<2x24x24xf32> to vector<2x24xf32>
      %221 = vector.shape_cast %220 : vector<2x24xf32> to vector<2x24x1xf32>
      %222 = tpu.reciprocal %221 {approx = true} : vector<2x24x1xf32> -> vector<2x24x1xf32>
      %223 = vector.broadcast %222 : vector<2x24x1xf32> to vector<2x24x24xf32>
      %224 = arith.mulf %219, %223 : vector<2x24x24xf32>
      "tpu.trace_start"() <{level = 10 : i32, message = "bqk,bkd->bqd"}> : () -> ()
      %cst_105 = arith.constant dense<0.000000e+00> : vector<2x24x64xf32>
      %225 = tpu.matmul %224, %209, %cst_105 {dimension_numbers = #tpu.dot_dimension_numbers<[2], [1], [1], [2], [0, 0, 0, 1, 1, 2], [0], [0]>} : vector<2x24x24xf32>, vector<2x24x64xf32>, vector<2x24x64xf32> -> vector<2x24x64xf32>
      "tpu.trace_stop"() : () -> ()
      %226 = vector.shape_cast %225 : vector<2x24x64xf32> to vector<48x64xf32>
      %cst_106 = arith.constant dense<0.000000e+00> : vector<48x64xf32>
      %227 = tpu.matmul %226, %168, %cst_106 {dimension_numbers = #tpu.dot_dimension_numbers<[1], [0], [0], [1], [0, 0, 1, 1], [], []>} : vector<48x64xf32>, vector<64x64xf32>, vector<48x64xf32> -> vector<48x64xf32>
      %228 = arith.addf %156, %227 : vector<48x64xf32>
      %229 = vector.extract_strided_slice %158 {offsets = [5, 0], sizes = [1, 64], strides = [1, 1]} : vector<9x64xf32> to vector<1x64xf32>
      %230 = vector.broadcast %229 : vector<1x64xf32> to vector<48x64xf32>
      %231 = arith.addf %228, %230 : vector<48x64xf32>
      %232 = vector.extract_strided_slice %158 {offsets = [6, 0], sizes = [1, 64], strides = [1, 1]} : vector<9x64xf32> to vector<1x64xf32>
      %233 = vector.extract_strided_slice %158 {offsets = [7, 0], sizes = [1, 64], strides = [1, 1]} : vector<9x64xf32> to vector<1x64xf32>
      %cst_107 = arith.constant dense<0.000000e+00> : vector<48xf32>
      %234 = vector.multi_reduction <add>, %231, %cst_107 [1] : vector<48x64xf32> to vector<48xf32>
      %235 = vector.shape_cast %234 : vector<48xf32> to vector<48x1xf32>
      %cst_108 = arith.constant 6.400000e+01 : f32
      %236 = vector.broadcast %cst_108 : f32 to vector<48x1xf32>
      %237 = arith.divf %235, %236 : vector<48x1xf32>
      %238 = vector.broadcast %237 : vector<48x1xf32> to vector<48x64xf32>
      %239 = arith.subf %231, %238 : vector<48x64xf32>
      %240 = arith.mulf %239, %239 : vector<48x64xf32>
      %cst_109 = arith.constant dense<0.000000e+00> : vector<48xf32>
      %241 = vector.multi_reduction <add>, %240, %cst_109 [1] : vector<48x64xf32> to vector<48xf32>
      %242 = vector.shape_cast %241 : vector<48xf32> to vector<48x1xf32>
      %cst_110 = arith.constant 6.400000e+01 : f32
      %243 = vector.broadcast %cst_110 : f32 to vector<48x1xf32>
      %244 = arith.divf %242, %243 : vector<48x1xf32>
      %cst_111 = arith.constant 9.99999974E-6 : f32
      %245 = vector.broadcast %cst_111 : f32 to vector<48x1xf32>
      %246 = arith.addf %244, %245 : vector<48x1xf32>
      %247 = math.rsqrt %246 : vector<48x1xf32>
      %248 = vector.broadcast %247 : vector<48x1xf32> to vector<48x64xf32>
      %249 = arith.mulf %239, %248 : vector<48x64xf32>
      %250 = vector.broadcast %232 : vector<1x64xf32> to vector<48x64xf32>
      %251 = arith.mulf %249, %250 : vector<48x64xf32>
      %252 = vector.broadcast %233 : vector<1x64xf32> to vector<48x64xf32>
      %253 = arith.addf %251, %252 : vector<48x64xf32>
      %cst_112 = arith.constant dense<0.000000e+00> : vector<48x256xf32>
      %254 = tpu.matmul %253, %170, %cst_112 {dimension_numbers = #tpu.dot_dimension_numbers<[1], [0], [0], [1], [0, 0, 1, 1], [], []>} : vector<48x64xf32>, vector<64x256xf32>, vector<48x256xf32> -> vector<48x256xf32>
      %255 = vector.broadcast %160 : vector<1x256xf32> to vector<48x256xf32>
      %256 = arith.addf %254, %255 : vector<48x256xf32>
      %cst_113 = arith.constant 1.702000e+00 : f32
      %257 = vector.broadcast %cst_113 : f32 to vector<48x256xf32>
      %258 = arith.mulf %257, %256 : vector<48x256xf32>
      %259 = arith.negf %258 : vector<48x256xf32>
      %260 = math.exp %259 : vector<48x256xf32>
      %cst_114 = arith.constant 1.000000e+00 : f32
      %261 = vector.broadcast %cst_114 : f32 to vector<48x256xf32>
      %262 = arith.addf %261, %260 : vector<48x256xf32>
      %263 = arith.divf %261, %262 : vector<48x256xf32>
      %264 = arith.mulf %256, %263 : vector<48x256xf32>
      %cst_115 = arith.constant dense<0.000000e+00> : vector<48x64xf32>
      %265 = tpu.matmul %264, %172, %cst_115 {dimension_numbers = #tpu.dot_dimension_numbers<[1], [0], [0], [1], [0, 0, 1, 1], [], []>} : vector<48x256xf32>, vector<256x64xf32>, vector<48x64xf32> -> vector<48x64xf32>
      %266 = vector.extract_strided_slice %158 {offsets = [8, 0], sizes = [1, 64], strides = [1, 1]} : vector<9x64xf32> to vector<1x64xf32>
      %267 = vector.broadcast %266 : vector<1x64xf32> to vector<48x64xf32>
      %268 = arith.addf %265, %267 : vector<48x64xf32>
      %269 = arith.addf %231, %268 : vector<48x64xf32>
      %270 = vector.extract_strided_slice %14 {offsets = [2, 0], sizes = [1, 64], strides = [1, 1]} : vector<4x64xf32> to vector<1x64xf32>
      %271 = vector.extract_strided_slice %14 {offsets = [3, 0], sizes = [1, 64], strides = [1, 1]} : vector<4x64xf32> to vector<1x64xf32>
      %cst_116 = arith.constant dense<0.000000e+00> : vector<48xf32>
      %272 = vector.multi_reduction <add>, %269, %cst_116 [1] : vector<48x64xf32> to vector<48xf32>
      %273 = vector.shape_cast %272 : vector<48xf32> to vector<48x1xf32>
      %cst_117 = arith.constant 6.400000e+01 : f32
      %274 = vector.broadcast %cst_117 : f32 to vector<48x1xf32>
      %275 = arith.divf %273, %274 : vector<48x1xf32>
      %276 = vector.broadcast %275 : vector<48x1xf32> to vector<48x64xf32>
      %277 = arith.subf %269, %276 : vector<48x64xf32>
      %278 = arith.mulf %277, %277 : vector<48x64xf32>
      %cst_118 = arith.constant dense<0.000000e+00> : vector<48xf32>
      %279 = vector.multi_reduction <add>, %278, %cst_118 [1] : vector<48x64xf32> to vector<48xf32>
      %280 = vector.shape_cast %279 : vector<48xf32> to vector<48x1xf32>
      %cst_119 = arith.constant 6.400000e+01 : f32
      %281 = vector.broadcast %cst_119 : f32 to vector<48x1xf32>
      %282 = arith.divf %280, %281 : vector<48x1xf32>
      %cst_120 = arith.constant 9.99999974E-6 : f32
      %283 = vector.broadcast %cst_120 : f32 to vector<48x1xf32>
      %284 = arith.addf %282, %283 : vector<48x1xf32>
      %285 = math.rsqrt %284 : vector<48x1xf32>
      %286 = vector.broadcast %285 : vector<48x1xf32> to vector<48x64xf32>
      %287 = arith.mulf %277, %286 : vector<48x64xf32>
      %288 = vector.broadcast %270 : vector<1x64xf32> to vector<48x64xf32>
      %289 = arith.mulf %287, %288 : vector<48x64xf32>
      %290 = vector.broadcast %271 : vector<1x64xf32> to vector<48x64xf32>
      %291 = arith.addf %289, %290 : vector<48x64xf32>
      %292 = vector.shape_cast %291 : vector<48x64xf32> to vector<2x24x64xf32>
      %293 = vector.extract_strided_slice %292 {offsets = [0, 0, 0], sizes = [2, 1, 64], strides = [1, 1, 1]} : vector<2x24x64xf32> to vector<2x1x64xf32>
      %294 = vector.shape_cast %293 : vector<2x1x64xf32> to vector<2x64xf32>
      %c0_121 = arith.constant 0 : index
      %c0_122 = arith.constant 0 : index
      %295 = vector.load %arg5[%c0_121, %c0_122] : memref<64x128xf32, #tpu.memory_space<vmem>>, vector<64x128xf32>
      %cst_123 = arith.constant dense<0.000000e+00> : vector<2x128xf32>
      %296 = tpu.matmul %294, %295, %cst_123 {dimension_numbers = #tpu.dot_dimension_numbers<[1], [0], [0], [1], [0, 0, 1, 1], [], []>} : vector<2x64xf32>, vector<64x128xf32>, vector<2x128xf32> -> vector<2x128xf32>
      %297 = vector.shape_cast %296 : vector<2x128xf32> to vector<1x2x128xf32>
      %c0_124 = arith.constant 0 : index
      %c0_125 = arith.constant 0 : index
      %c0_126 = arith.constant 0 : index
      %298 = vector.load %arg23[%c0_124, %c0_125, %c0_126] : memref<1x2x128xf32, #tpu.memory_space<vmem>>, vector<1x2x128xf32>
      tpu.vector_store %arg23[%c0_124, %c0_125, %c0_126], %297 {strides = array<i32>} : memref<1x2x128xf32, #tpu.memory_space<vmem>>, vector<1x2x128xf32>,
    } else {
    }
    %c1_i32 = arith.constant 1 : i32
    %3 = arith.cmpi eq, %arg0, %c1_i32 : i32
    %4 = arith.extui %3 : i1 to i32
    %c0_i32_1 = arith.constant 0 : i32
    %5 = arith.cmpi ne, %4, %c0_i32_1 : i32
    scf.if %5 {
      %c0 = arith.constant 0 : index
      %c0_2 = arith.constant 0 : index
      %6 = vector.load %arg12[%c0, %c0_2] : memref<2x8xi32, #tpu.memory_space<vmem>>, vector<2x8xi32>
      %7 = tpu.iota {dimensions = array<i32: 2>} : vector<2x8x128xi32>
      %8 = vector.shape_cast %6 : vector<2x8xi32> to vector<2x8x1xi32>
      %9 = vector.broadcast %8 : vector<2x8x1xi32> to vector<2x8x128xi32>
      %10 = arith.cmpi eq, %7, %9 : vector<2x8x128xi32>
      %11 = arith.extui %10 : vector<2x8x128xi1> to vector<2x8x128xi32>
      %12 = arith.sitofp %11 : vector<2x8x128xi32> to vector<2x8x128xf32>
      %13 = vector.shape_cast %12 : vector<2x8x128xf32> to vector<16x128xf32>
      %c0_3 = arith.constant 0 : index
      %c0_4 = arith.constant 0 : index
      %14 = vector.load %arg13[%c0_3, %c0_4] : memref<128x64xf32, #tpu.memory_space<vmem>>, vector<128x64xf32>
      %cst = arith.constant dense<0.000000e+00> : vector<16x64xf32>
      %15 = tpu.matmul %13, %14, %cst {dimension_numbers = #tpu.dot_dimension_numbers<[1], [0], [0], [1], [0, 0, 1, 1], [], []>} : vector<16x128xf32>, vector<128x64xf32>, vector<16x64xf32> -> vector<16x64xf32>
      %16 = vector.shape_cast %15 : vector<16x64xf32> to vector<2x8x64xf32>
      %c0_5 = arith.constant 0 : index
      %c0_6 = arith.constant 0 : index
      %c0_7 = arith.constant 0 : index
      %17 = vector.load %arg14[%c0_5, %c0_6, %c0_7] : memref<1x8x64xf32, #tpu.memory_space<vmem>>, vector<1x8x64xf32>
      %18 = vector.broadcast %17 : vector<1x8x64xf32> to vector<2x8x64xf32>
      %19 = arith.addf %16, %18 : vector<2x8x64xf32>
      %20 = vector.shape_cast %19 : vector<2x8x64xf32> to vector<16x64xf32>
      %21 = tpu.iota {dimensions = array<i32: 1>} : vector<1x8x8xi32>
      %22 = tpu.iota {dimensions = array<i32: 2>} : vector<1x8x8xi32>
      %23 = arith.cmpi sgt, %22, %21 : vector<1x8x8xi32>
      %cst_8 = arith.constant -1.000000e+09 : f32
      %cst_9 = arith.constant 0.000000e+00 : f32
      %24 = vector.broadcast %cst_8 : f32 to vector<1x8x8xf32>
      %25 = vector.broadcast %cst_9 : f32 to vector<1x8x8xf32>
      %26 = arith.select %23, %24, %25 : vector<1x8x8xi1>, vector<1x8x8xf32>
      %c0_10 = arith.constant 0 : index
      %c0_11 = arith.constant 0 : index
      %c0_12 = arith.constant 0 : index
      %27 = vector.load %arg17[%c0_10, %c0_11, %c0_12] : memref<2x9x64xf32, #tpu.memory_space<vmem>>, vector<1x9x64xf32>
      %28 = vector.shape_cast %27 : vector<1x9x64xf32> to vector<9x64xf32>
      %c0_13 = arith.constant 0 : index
      %c0_14 = arith.constant 0 : index
      %c0_15 = arith.constant 0 : index
      %29 = vector.load %arg18[%c0_13, %c0_14, %c0_15] : memref<2x1x256xf32, #tpu.memory_space<vmem>>, vector<1x1x256xf32>
      %30 = vector.shape_cast %29 : vector<1x1x256xf32> to vector<1x256xf32>
      %c0_16 = arith.constant 0 : index
      %c0_17 = arith.constant 0 : index
      %c0_18 = arith.constant 0 : index
      %c0_19 = arith.constant 0 : index
      %31 = vector.load %arg19[%c0_16, %c0_17, %c0_18, %c0_19] : memref<2x3x64x64xf32, #tpu.memory_space<vmem>>, vector<1x1x64x64xf32>
      %32 = vector.shape_cast %31 : vector<1x1x64x64xf32> to vector<64x64xf32>
      %c0_20 = arith.constant 0 : index
      %c1 = arith.constant 1 : index
      %c0_21 = arith.constant 0 : index
      %c0_22 = arith.constant 0 : index
      %33 = vector.load %arg19[%c0_20, %c1, %c0_21, %c0_22] : memref<2x3x64x64xf32, #tpu.memory_space<vmem>>, vector<1x1x64x64xf32>
      %34 = vector.shape_cast %33 : vector<1x1x64x64xf32> to vector<64x64xf32>
      %c0_23 = arith.constant 0 : index
      %c2 = arith.constant 2 : index
      %c0_24 = arith.constant 0 : index
      %c0_25 = arith.constant 0 : index
      %35 = vector.load %arg19[%c0_23, %c2, %c0_24, %c0_25] : memref<2x3x64x64xf32, #tpu.memory_space<vmem>>, vector<1x1x64x64xf32>
      %36 = vector.shape_cast %35 : vector<1x1x64x64xf32> to vector<64x64xf32>
      %c0_26 = arith.constant 0 : index
      %c0_27 = arith.constant 0 : index
      %c0_28 = arith.constant 0 : index
      %37 = vector.load %arg20[%c0_26, %c0_27, %c0_28] : memref<2x64x64xf32, #tpu.memory_space<vmem>>, vector<1x64x64xf32>
      %38 = vector.shape_cast %37 : vector<1x64x64xf32> to vector<64x64xf32>
      %c0_29 = arith.constant 0 : index
      %c0_30 = arith.constant 0 : index
      %c0_31 = arith.constant 0 : index
      %39 = vector.load %arg21[%c0_29, %c0_30, %c0_31] : memref<2x64x256xf32, #tpu.memory_space<vmem>>, vector<1x64x256xf32>
      %40 = vector.shape_cast %39 : vector<1x64x256xf32> to vector<64x256xf32>
      %c0_32 = arith.constant 0 : index
      %c0_33 = arith.constant 0 : index
      %c0_34 = arith.constant 0 : index
      %41 = vector.load %arg22[%c0_32, %c0_33, %c0_34] : memref<2x256x64xf32, #tpu.memory_space<vmem>>, vector<1x256x64xf32>
      %42 = vector.shape_cast %41 : vector<1x256x64xf32> to vector<256x64xf32>
      %43 = vector.extract_strided_slice %28 {offsets = [0, 0], sizes = [1, 64], strides = [1, 1]} : vector<9x64xf32> to vector<1x64xf32>
      %44 = vector.extract_strided_slice %28 {offsets = [1, 0], sizes = [1, 64], strides = [1, 1]} : vector<9x64xf32> to vector<1x64xf32>
      %cst_35 = arith.constant dense<0.000000e+00> : vector<16xf32>
      %45 = vector.multi_reduction <add>, %20, %cst_35 [1] : vector<16x64xf32> to vector<16xf32>
      %46 = vector.shape_cast %45 : vector<16xf32> to vector<16x1xf32>
      %cst_36 = arith.constant 6.400000e+01 : f32
      %47 = vector.broadcast %cst_36 : f32 to vector<16x1xf32>
      %48 = arith.divf %46, %47 : vector<16x1xf32>
      %49 = vector.broadcast %48 : vector<16x1xf32> to vector<16x64xf32>
      %50 = arith.subf %20, %49 : vector<16x64xf32>
      %51 = arith.mulf %50, %50 : vector<16x64xf32>
      %cst_37 = arith.constant dense<0.000000e+00> : vector<16xf32>
      %52 = vector.multi_reduction <add>, %51, %cst_37 [1] : vector<16x64xf32> to vector<16xf32>
      %53 = vector.shape_cast %52 : vector<16xf32> to vector<16x1xf32>
      %cst_38 = arith.constant 6.400000e+01 : f32
      %54 = vector.broadcast %cst_38 : f32 to vector<16x1xf32>
      %55 = arith.divf %53, %54 : vector<16x1xf32>
      %cst_39 = arith.constant 9.99999974E-6 : f32
      %56 = vector.broadcast %cst_39 : f32 to vector<16x1xf32>
      %57 = arith.addf %55, %56 : vector<16x1xf32>
      %58 = math.rsqrt %57 : vector<16x1xf32>
      %59 = vector.broadcast %58 : vector<16x1xf32> to vector<16x64xf32>
      %60 = arith.mulf %50, %59 : vector<16x64xf32>
      %61 = vector.broadcast %43 : vector<1x64xf32> to vector<16x64xf32>
      %62 = arith.mulf %60, %61 : vector<16x64xf32>
      %63 = vector.broadcast %44 : vector<1x64xf32> to vector<16x64xf32>
      %64 = arith.addf %62, %63 : vector<16x64xf32>
      %cst_40 = arith.constant dense<0.000000e+00> : vector<16x64xf32>
      %65 = tpu.matmul %64, %32, %cst_40 {dimension_numbers = #tpu.dot_dimension_numbers<[1], [0], [0], [1], [0, 0, 1, 1], [], []>} : vector<16x64xf32>, vector<64x64xf32>, vector<16x64xf32> -> vector<16x64xf32>
      %66 = vector.extract_strided_slice %28 {offsets = [2, 0], sizes = [1, 64], strides = [1, 1]} : vector<9x64xf32> to vector<1x64xf32>
      %67 = vector.broadcast %66 : vector<1x64xf32> to vector<16x64xf32>
      %68 = arith.addf %65, %67 : vector<16x64xf32>
      %69 = vector.shape_cast %68 : vector<16x64xf32> to vector<2x8x64xf32>
      %cst_41 = arith.constant dense<0.000000e+00> : vector<16x64xf32>
      %70 = tpu.matmul %64, %34, %cst_41 {dimension_numbers = #tpu.dot_dimension_numbers<[1], [0], [0], [1], [0, 0, 1, 1], [], []>} : vector<16x64xf32>, vector<64x64xf32>, vector<16x64xf32> -> vector<16x64xf32>
      %71 = vector.extract_strided_slice %28 {offsets = [3, 0], sizes = [1, 64], strides = [1, 1]} : vector<9x64xf32> to vector<1x64xf32>
      %72 = vector.broadcast %71 : vector<1x64xf32> to vector<16x64xf32>
      %73 = arith.addf %70, %72 : vector<16x64xf32>
      %74 = vector.shape_cast %73 : vector<16x64xf32> to vector<2x8x64xf32>
      %cst_42 = arith.constant dense<0.000000e+00> : vector<16x64xf32>
      %75 = tpu.matmul %64, %36, %cst_42 {dimension_numbers = #tpu.dot_dimension_numbers<[1], [0], [0], [1], [0, 0, 1, 1], [], []>} : vector<16x64xf32>, vector<64x64xf32>, vector<16x64xf32> -> vector<16x64xf32>
      %76 = vector.extract_strided_slice %28 {offsets = [4, 0], sizes = [1, 64], strides = [1, 1]} : vector<9x64xf32> to vector<1x64xf32>
      %77 = vector.broadcast %76 : vector<1x64xf32> to vector<16x64xf32>
      %78 = arith.addf %75, %77 : vector<16x64xf32>
      %79 = vector.shape_cast %78 : vector<16x64xf32> to vector<2x8x64xf32>
      "tpu.trace_start"() <{level = 10 : i32, message = "bqd,bkd->bqk"}> : () -> ()
      %cst_43 = arith.constant dense<0.000000e+00> : vector<2x8x8xf32>
      %80 = tpu.matmul %69, %74, %cst_43 {dimension_numbers = #tpu.dot_dimension_numbers<[2], [2], [1], [1], [0, 0, 0, 1, 1, 1], [0], [0]>} : vector<2x8x64xf32>, vector<2x8x64xf32>, vector<2x8x8xf32> -> vector<2x8x8xf32>
      "tpu.trace_stop"() : () -> ()
      %cst_44 = arith.constant 1.250000e-01 : f32
      %81 = vector.broadcast %cst_44 : f32 to vector<2x8x8xf32>
      %82 = arith.mulf %80, %81 : vector<2x8x8xf32>
      %83 = vector.broadcast %26 : vector<1x8x8xf32> to vector<2x8x8xf32>
      %84 = arith.addf %82, %83 : vector<2x8x8xf32>
      %cst_45 = arith.constant dense<0xFF800000> : vector<2x8xf32>
      %85 = vector.multi_reduction <maximumf>, %84, %cst_45 [2] : vector<2x8x8xf32> to vector<2x8xf32>
      %86 = vector.shape_cast %85 : vector<2x8xf32> to vector<2x8x1xf32>
      %87 = vector.broadcast %86 : vector<2x8x1xf32> to vector<2x8x8xf32>
      %88 = arith.subf %84, %87 : vector<2x8x8xf32>
      %89 = math.exp %88 : vector<2x8x8xf32>
      %cst_46 = arith.constant dense<0.000000e+00> : vector<2x8xf32>
      %90 = vector.multi_reduction <add>, %89, %cst_46 [2] : vector<2x8x8xf32> to vector<2x8xf32>
      %91 = vector.shape_cast %90 : vector<2x8xf32> to vector<2x8x1xf32>
      %92 = tpu.reciprocal %91 {approx = true} : vector<2x8x1xf32> -> vector<2x8x1xf32>
      %93 = vector.broadcast %92 : vector<2x8x1xf32> to vector<2x8x8xf32>
      %94 = arith.mulf %89, %93 : vector<2x8x8xf32>
      "tpu.trace_start"() <{level = 10 : i32, message = "bqk,bkd->bqd"}> : () -> ()
      %cst_47 = arith.constant dense<0.000000e+00> : vector<2x8x64xf32>
      %95 = tpu.matmul %94, %79, %cst_47 {dimension_numbers = #tpu.dot_dimension_numbers<[2], [1], [1], [2], [0, 0, 0, 1, 1, 2], [0], [0]>} : vector<2x8x8xf32>, vector<2x8x64xf32>, vector<2x8x64xf32> -> vector<2x8x64xf32>
      "tpu.trace_stop"() : () -> ()
      %96 = vector.shape_cast %95 : vector<2x8x64xf32> to vector<16x64xf32>
      %cst_48 = arith.constant dense<0.000000e+00> : vector<16x64xf32>
      %97 = tpu.matmul %96, %38, %cst_48 {dimension_numbers = #tpu.dot_dimension_numbers<[1], [0], [0], [1], [0, 0, 1, 1], [], []>} : vector<16x64xf32>, vector<64x64xf32>, vector<16x64xf32> -> vector<16x64xf32>
      %98 = arith.addf %20, %97 : vector<16x64xf32>
      %99 = vector.extract_strided_slice %28 {offsets = [5, 0], sizes = [1, 64], strides = [1, 1]} : vector<9x64xf32> to vector<1x64xf32>
      %100 = vector.broadcast %99 : vector<1x64xf32> to vector<16x64xf32>
      %101 = arith.addf %98, %100 : vector<16x64xf32>
      %102 = vector.extract_strided_slice %28 {offsets = [6, 0], sizes = [1, 64], strides = [1, 1]} : vector<9x64xf32> to vector<1x64xf32>
      %103 = vector.extract_strided_slice %28 {offsets = [7, 0], sizes = [1, 64], strides = [1, 1]} : vector<9x64xf32> to vector<1x64xf32>
      %cst_49 = arith.constant dense<0.000000e+00> : vector<16xf32>
      %104 = vector.multi_reduction <add>, %101, %cst_49 [1] : vector<16x64xf32> to vector<16xf32>
      %105 = vector.shape_cast %104 : vector<16xf32> to vector<16x1xf32>
      %cst_50 = arith.constant 6.400000e+01 : f32
      %106 = vector.broadcast %cst_50 : f32 to vector<16x1xf32>
      %107 = arith.divf %105, %106 : vector<16x1xf32>
      %108 = vector.broadcast %107 : vector<16x1xf32> to vector<16x64xf32>
      %109 = arith.subf %101, %108 : vector<16x64xf32>
      %110 = arith.mulf %109, %109 : vector<16x64xf32>
      %cst_51 = arith.constant dense<0.000000e+00> : vector<16xf32>
      %111 = vector.multi_reduction <add>, %110, %cst_51 [1] : vector<16x64xf32> to vector<16xf32>
      %112 = vector.shape_cast %111 : vector<16xf32> to vector<16x1xf32>
      %cst_52 = arith.constant 6.400000e+01 : f32
      %113 = vector.broadcast %cst_52 : f32 to vector<16x1xf32>
      %114 = arith.divf %112, %113 : vector<16x1xf32>
      %cst_53 = arith.constant 9.99999974E-6 : f32
      %115 = vector.broadcast %cst_53 : f32 to vector<16x1xf32>
      %116 = arith.addf %114, %115 : vector<16x1xf32>
      %117 = math.rsqrt %116 : vector<16x1xf32>
      %118 = vector.broadcast %117 : vector<16x1xf32> to vector<16x64xf32>
      %119 = arith.mulf %109, %118 : vector<16x64xf32>
      %120 = vector.broadcast %102 : vector<1x64xf32> to vector<16x64xf32>
      %121 = arith.mulf %119, %120 : vector<16x64xf32>
      %122 = vector.broadcast %103 : vector<1x64xf32> to vector<16x64xf32>
      %123 = arith.addf %121, %122 : vector<16x64xf32>
      %cst_54 = arith.constant dense<0.000000e+00> : vector<16x256xf32>
      %124 = tpu.matmul %123, %40, %cst_54 {dimension_numbers = #tpu.dot_dimension_numbers<[1], [0], [0], [1], [0, 0, 1, 1], [], []>} : vector<16x64xf32>, vector<64x256xf32>, vector<16x256xf32> -> vector<16x256xf32>
      %125 = vector.broadcast %30 : vector<1x256xf32> to vector<16x256xf32>
      %126 = arith.addf %124, %125 : vector<16x256xf32>
      %cst_55 = arith.constant 1.702000e+00 : f32
      %127 = vector.broadcast %cst_55 : f32 to vector<16x256xf32>
      %128 = arith.mulf %127, %126 : vector<16x256xf32>
      %129 = arith.negf %128 : vector<16x256xf32>
      %130 = math.exp %129 : vector<16x256xf32>
      %cst_56 = arith.constant 1.000000e+00 : f32
      %131 = vector.broadcast %cst_56 : f32 to vector<16x256xf32>
      %132 = arith.addf %131, %130 : vector<16x256xf32>
      %133 = arith.divf %131, %132 : vector<16x256xf32>
      %134 = arith.mulf %126, %133 : vector<16x256xf32>
      %cst_57 = arith.constant dense<0.000000e+00> : vector<16x64xf32>
      %135 = tpu.matmul %134, %42, %cst_57 {dimension_numbers = #tpu.dot_dimension_numbers<[1], [0], [0], [1], [0, 0, 1, 1], [], []>} : vector<16x256xf32>, vector<256x64xf32>, vector<16x64xf32> -> vector<16x64xf32>
      %136 = vector.extract_strided_slice %28 {offsets = [8, 0], sizes = [1, 64], strides = [1, 1]} : vector<9x64xf32> to vector<1x64xf32>
      %137 = vector.broadcast %136 : vector<1x64xf32> to vector<16x64xf32>
      %138 = arith.addf %135, %137 : vector<16x64xf32>
      %139 = arith.addf %101, %138 : vector<16x64xf32>
      %c1_58 = arith.constant 1 : index
      %c0_59 = arith.constant 0 : index
      %c0_60 = arith.constant 0 : index
      %140 = vector.load %arg17[%c1_58, %c0_59, %c0_60] : memref<2x9x64xf32, #tpu.memory_space<vmem>>, vector<1x9x64xf32>
      %141 = vector.shape_cast %140 : vector<1x9x64xf32> to vector<9x64xf32>
      %c1_61 = arith.constant 1 : index
      %c0_62 = arith.constant 0 : index
      %c0_63 = arith.constant 0 : index
      %142 = vector.load %arg18[%c1_61, %c0_62, %c0_63] : memref<2x1x256xf32, #tpu.memory_space<vmem>>, vector<1x1x256xf32>
      %143 = vector.shape_cast %142 : vector<1x1x256xf32> to vector<1x256xf32>
      %c1_64 = arith.constant 1 : index
      %c0_65 = arith.constant 0 : index
      %c0_66 = arith.constant 0 : index
      %c0_67 = arith.constant 0 : index
      %144 = vector.load %arg19[%c1_64, %c0_65, %c0_66, %c0_67] : memref<2x3x64x64xf32, #tpu.memory_space<vmem>>, vector<1x1x64x64xf32>
      %145 = vector.shape_cast %144 : vector<1x1x64x64xf32> to vector<64x64xf32>
      %c1_68 = arith.constant 1 : index
      %c1_69 = arith.constant 1 : index
      %c0_70 = arith.constant 0 : index
      %c0_71 = arith.constant 0 : index
      %146 = vector.load %arg19[%c1_68, %c1_69, %c0_70, %c0_71] : memref<2x3x64x64xf32, #tpu.memory_space<vmem>>, vector<1x1x64x64xf32>
      %147 = vector.shape_cast %146 : vector<1x1x64x64xf32> to vector<64x64xf32>
      %c1_72 = arith.constant 1 : index
      %c2_73 = arith.constant 2 : index
      %c0_74 = arith.constant 0 : index
      %c0_75 = arith.constant 0 : index
      %148 = vector.load %arg19[%c1_72, %c2_73, %c0_74, %c0_75] : memref<2x3x64x64xf32, #tpu.memory_space<vmem>>, vector<1x1x64x64xf32>
      %149 = vector.shape_cast %148 : vector<1x1x64x64xf32> to vector<64x64xf32>
      %c1_76 = arith.constant 1 : index
      %c0_77 = arith.constant 0 : index
      %c0_78 = arith.constant 0 : index
      %150 = vector.load %arg20[%c1_76, %c0_77, %c0_78] : memref<2x64x64xf32, #tpu.memory_space<vmem>>, vector<1x64x64xf32>
      %151 = vector.shape_cast %150 : vector<1x64x64xf32> to vector<64x64xf32>
      %c1_79 = arith.constant 1 : index
      %c0_80 = arith.constant 0 : index
      %c0_81 = arith.constant 0 : index
      %152 = vector.load %arg21[%c1_79, %c0_80, %c0_81] : memref<2x64x256xf32, #tpu.memory_space<vmem>>, vector<1x64x256xf32>
      %153 = vector.shape_cast %152 : vector<1x64x256xf32> to vector<64x256xf32>
      %c1_82 = arith.constant 1 : index
      %c0_83 = arith.constant 0 : index
      %c0_84 = arith.constant 0 : index
      %154 = vector.load %arg22[%c1_82, %c0_83, %c0_84] : memref<2x256x64xf32, #tpu.memory_space<vmem>>, vector<1x256x64xf32>
      %155 = vector.shape_cast %154 : vector<1x256x64xf32> to vector<256x64xf32>
      %156 = vector.extract_strided_slice %141 {offsets = [0, 0], sizes = [1, 64], strides = [1, 1]} : vector<9x64xf32> to vector<1x64xf32>
      %157 = vector.extract_strided_slice %141 {offsets = [1, 0], sizes = [1, 64], strides = [1, 1]} : vector<9x64xf32> to vector<1x64xf32>
      %cst_85 = arith.constant dense<0.000000e+00> : vector<16xf32>
      %158 = vector.multi_reduction <add>, %139, %cst_85 [1] : vector<16x64xf32> to vector<16xf32>
      %159 = vector.shape_cast %158 : vector<16xf32> to vector<16x1xf32>
      %cst_86 = arith.constant 6.400000e+01 : f32
      %160 = vector.broadcast %cst_86 : f32 to vector<16x1xf32>
      %161 = arith.divf %159, %160 : vector<16x1xf32>
      %162 = vector.broadcast %161 : vector<16x1xf32> to vector<16x64xf32>
      %163 = arith.subf %139, %162 : vector<16x64xf32>
      %164 = arith.mulf %163, %163 : vector<16x64xf32>
      %cst_87 = arith.constant dense<0.000000e+00> : vector<16xf32>
      %165 = vector.multi_reduction <add>, %164, %cst_87 [1] : vector<16x64xf32> to vector<16xf32>
      %166 = vector.shape_cast %165 : vector<16xf32> to vector<16x1xf32>
      %cst_88 = arith.constant 6.400000e+01 : f32
      %167 = vector.broadcast %cst_88 : f32 to vector<16x1xf32>
      %168 = arith.divf %166, %167 : vector<16x1xf32>
      %cst_89 = arith.constant 9.99999974E-6 : f32
      %169 = vector.broadcast %cst_89 : f32 to vector<16x1xf32>
      %170 = arith.addf %168, %169 : vector<16x1xf32>
      %171 = math.rsqrt %170 : vector<16x1xf32>
      %172 = vector.broadcast %171 : vector<16x1xf32> to vector<16x64xf32>
      %173 = arith.mulf %163, %172 : vector<16x64xf32>
      %174 = vector.broadcast %156 : vector<1x64xf32> to vector<16x64xf32>
      %175 = arith.mulf %173, %174 : vector<16x64xf32>
      %176 = vector.broadcast %157 : vector<1x64xf32> to vector<16x64xf32>
      %177 = arith.addf %175, %176 : vector<16x64xf32>
      %cst_90 = arith.constant dense<0.000000e+00> : vector<16x64xf32>
      %178 = tpu.matmul %177, %145, %cst_90 {dimension_numbers = #tpu.dot_dimension_numbers<[1], [0], [0], [1], [0, 0, 1, 1], [], []>} : vector<16x64xf32>, vector<64x64xf32>, vector<16x64xf32> -> vector<16x64xf32>
      %179 = vector.extract_strided_slice %141 {offsets = [2, 0], sizes = [1, 64], strides = [1, 1]} : vector<9x64xf32> to vector<1x64xf32>
      %180 = vector.broadcast %179 : vector<1x64xf32> to vector<16x64xf32>
      %181 = arith.addf %178, %180 : vector<16x64xf32>
      %182 = vector.shape_cast %181 : vector<16x64xf32> to vector<2x8x64xf32>
      %cst_91 = arith.constant dense<0.000000e+00> : vector<16x64xf32>
      %183 = tpu.matmul %177, %147, %cst_91 {dimension_numbers = #tpu.dot_dimension_numbers<[1], [0], [0], [1], [0, 0, 1, 1], [], []>} : vector<16x64xf32>, vector<64x64xf32>, vector<16x64xf32> -> vector<16x64xf32>
      %184 = vector.extract_strided_slice %141 {offsets = [3, 0], sizes = [1, 64], strides = [1, 1]} : vector<9x64xf32> to vector<1x64xf32>
      %185 = vector.broadcast %184 : vector<1x64xf32> to vector<16x64xf32>
      %186 = arith.addf %183, %185 : vector<16x64xf32>
      %187 = vector.shape_cast %186 : vector<16x64xf32> to vector<2x8x64xf32>
      %cst_92 = arith.constant dense<0.000000e+00> : vector<16x64xf32>
      %188 = tpu.matmul %177, %149, %cst_92 {dimension_numbers = #tpu.dot_dimension_numbers<[1], [0], [0], [1], [0, 0, 1, 1], [], []>} : vector<16x64xf32>, vector<64x64xf32>, vector<16x64xf32> -> vector<16x64xf32>
      %189 = vector.extract_strided_slice %141 {offsets = [4, 0], sizes = [1, 64], strides = [1, 1]} : vector<9x64xf32> to vector<1x64xf32>
      %190 = vector.broadcast %189 : vector<1x64xf32> to vector<16x64xf32>
      %191 = arith.addf %188, %190 : vector<16x64xf32>
      %192 = vector.shape_cast %191 : vector<16x64xf32> to vector<2x8x64xf32>
      "tpu.trace_start"() <{level = 10 : i32, message = "bqd,bkd->bqk"}> : () -> ()
      %cst_93 = arith.constant dense<0.000000e+00> : vector<2x8x8xf32>
      %193 = tpu.matmul %182, %187, %cst_93 {dimension_numbers = #tpu.dot_dimension_numbers<[2], [2], [1], [1], [0, 0, 0, 1, 1, 1], [0], [0]>} : vector<2x8x64xf32>, vector<2x8x64xf32>, vector<2x8x8xf32> -> vector<2x8x8xf32>
      "tpu.trace_stop"() : () -> ()
      %cst_94 = arith.constant 1.250000e-01 : f32
      %194 = vector.broadcast %cst_94 : f32 to vector<2x8x8xf32>
      %195 = arith.mulf %193, %194 : vector<2x8x8xf32>
      %196 = vector.broadcast %26 : vector<1x8x8xf32> to vector<2x8x8xf32>
      %197 = arith.addf %195, %196 : vector<2x8x8xf32>
      %cst_95 = arith.constant dense<0xFF800000> : vector<2x8xf32>
      %198 = vector.multi_reduction <maximumf>, %197, %cst_95 [2] : vector<2x8x8xf32> to vector<2x8xf32>
      %199 = vector.shape_cast %198 : vector<2x8xf32> to vector<2x8x1xf32>
      %200 = vector.broadcast %199 : vector<2x8x1xf32> to vector<2x8x8xf32>
      %201 = arith.subf %197, %200 : vector<2x8x8xf32>
      %202 = math.exp %201 : vector<2x8x8xf32>
      %cst_96 = arith.constant dense<0.000000e+00> : vector<2x8xf32>
      %203 = vector.multi_reduction <add>, %202, %cst_96 [2] : vector<2x8x8xf32> to vector<2x8xf32>
      %204 = vector.shape_cast %203 : vector<2x8xf32> to vector<2x8x1xf32>
      %205 = tpu.reciprocal %204 {approx = true} : vector<2x8x1xf32> -> vector<2x8x1xf32>
      %206 = vector.broadcast %205 : vector<2x8x1xf32> to vector<2x8x8xf32>
      %207 = arith.mulf %202, %206 : vector<2x8x8xf32>
      "tpu.trace_start"() <{level = 10 : i32, message = "bqk,bkd->bqd"}> : () -> ()
      %cst_97 = arith.constant dense<0.000000e+00> : vector<2x8x64xf32>
      %208 = tpu.matmul %207, %192, %cst_97 {dimension_numbers = #tpu.dot_dimension_numbers<[2], [1], [1], [2], [0, 0, 0, 1, 1, 2], [0], [0]>} : vector<2x8x8xf32>, vector<2x8x64xf32>, vector<2x8x64xf32> -> vector<2x8x64xf32>
      "tpu.trace_stop"() : () -> ()
      %209 = vector.shape_cast %208 : vector<2x8x64xf32> to vector<16x64xf32>
      %cst_98 = arith.constant dense<0.000000e+00> : vector<16x64xf32>
      %210 = tpu.matmul %209, %151, %cst_98 {dimension_numbers = #tpu.dot_dimension_numbers<[1], [0], [0], [1], [0, 0, 1, 1], [], []>} : vector<16x64xf32>, vector<64x64xf32>, vector<16x64xf32> -> vector<16x64xf32>
      %211 = arith.addf %139, %210 : vector<16x64xf32>
      %212 = vector.extract_strided_slice %141 {offsets = [5, 0], sizes = [1, 64], strides = [1, 1]} : vector<9x64xf32> to vector<1x64xf32>
      %213 = vector.broadcast %212 : vector<1x64xf32> to vector<16x64xf32>
      %214 = arith.addf %211, %213 : vector<16x64xf32>
      %215 = vector.extract_strided_slice %141 {offsets = [6, 0], sizes = [1, 64], strides = [1, 1]} : vector<9x64xf32> to vector<1x64xf32>
      %216 = vector.extract_strided_slice %141 {offsets = [7, 0], sizes = [1, 64], strides = [1, 1]} : vector<9x64xf32> to vector<1x64xf32>
      %cst_99 = arith.constant dense<0.000000e+00> : vector<16xf32>
      %217 = vector.multi_reduction <add>, %214, %cst_99 [1] : vector<16x64xf32> to vector<16xf32>
      %218 = vector.shape_cast %217 : vector<16xf32> to vector<16x1xf32>
      %cst_100 = arith.constant 6.400000e+01 : f32
      %219 = vector.broadcast %cst_100 : f32 to vector<16x1xf32>
      %220 = arith.divf %218, %219 : vector<16x1xf32>
      %221 = vector.broadcast %220 : vector<16x1xf32> to vector<16x64xf32>
      %222 = arith.subf %214, %221 : vector<16x64xf32>
      %223 = arith.mulf %222, %222 : vector<16x64xf32>
      %cst_101 = arith.constant dense<0.000000e+00> : vector<16xf32>
      %224 = vector.multi_reduction <add>, %223, %cst_101 [1] : vector<16x64xf32> to vector<16xf32>
      %225 = vector.shape_cast %224 : vector<16xf32> to vector<16x1xf32>
      %cst_102 = arith.constant 6.400000e+01 : f32
      %226 = vector.broadcast %cst_102 : f32 to vector<16x1xf32>
      %227 = arith.divf %225, %226 : vector<16x1xf32>
      %cst_103 = arith.constant 9.99999974E-6 : f32
      %228 = vector.broadcast %cst_103 : f32 to vector<16x1xf32>
      %229 = arith.addf %227, %228 : vector<16x1xf32>
      %230 = math.rsqrt %229 : vector<16x1xf32>
      %231 = vector.broadcast %230 : vector<16x1xf32> to vector<16x64xf32>
      %232 = arith.mulf %222, %231 : vector<16x64xf32>
      %233 = vector.broadcast %215 : vector<1x64xf32> to vector<16x64xf32>
      %234 = arith.mulf %232, %233 : vector<16x64xf32>
      %235 = vector.broadcast %216 : vector<1x64xf32> to vector<16x64xf32>
      %236 = arith.addf %234, %235 : vector<16x64xf32>
      %cst_104 = arith.constant dense<0.000000e+00> : vector<16x256xf32>
      %237 = tpu.matmul %236, %153, %cst_104 {dimension_numbers = #tpu.dot_dimension_numbers<[1], [0], [0], [1], [0, 0, 1, 1], [], []>} : vector<16x64xf32>, vector<64x256xf32>, vector<16x256xf32> -> vector<16x256xf32>
      %238 = vector.broadcast %143 : vector<1x256xf32> to vector<16x256xf32>
      %239 = arith.addf %237, %238 : vector<16x256xf32>
      %cst_105 = arith.constant 1.702000e+00 : f32
      %240 = vector.broadcast %cst_105 : f32 to vector<16x256xf32>
      %241 = arith.mulf %240, %239 : vector<16x256xf32>
      %242 = arith.negf %241 : vector<16x256xf32>
      %243 = math.exp %242 : vector<16x256xf32>
      %cst_106 = arith.constant 1.000000e+00 : f32
      %244 = vector.broadcast %cst_106 : f32 to vector<16x256xf32>
      %245 = arith.addf %244, %243 : vector<16x256xf32>
      %246 = arith.divf %244, %245 : vector<16x256xf32>
      %247 = arith.mulf %239, %246 : vector<16x256xf32>
      %cst_107 = arith.constant dense<0.000000e+00> : vector<16x64xf32>
      %248 = tpu.matmul %247, %155, %cst_107 {dimension_numbers = #tpu.dot_dimension_numbers<[1], [0], [0], [1], [0, 0, 1, 1], [], []>} : vector<16x256xf32>, vector<256x64xf32>, vector<16x64xf32> -> vector<16x64xf32>
      %249 = vector.extract_strided_slice %141 {offsets = [8, 0], sizes = [1, 64], strides = [1, 1]} : vector<9x64xf32> to vector<1x64xf32>
      %250 = vector.broadcast %249 : vector<1x64xf32> to vector<16x64xf32>
      %251 = arith.addf %248, %250 : vector<16x64xf32>
      %252 = arith.addf %214, %251 : vector<16x64xf32>
      %c0_108 = arith.constant 0 : index
      %c0_109 = arith.constant 0 : index
      %253 = vector.load %arg15[%c0_108, %c0_109] : memref<2x64xf32, #tpu.memory_space<vmem>>, vector<2x64xf32>
      %254 = vector.extract_strided_slice %253 {offsets = [0, 0], sizes = [1, 64], strides = [1, 1]} : vector<2x64xf32> to vector<1x64xf32>
      %255 = vector.extract_strided_slice %253 {offsets = [1, 0], sizes = [1, 64], strides = [1, 1]} : vector<2x64xf32> to vector<1x64xf32>
      %cst_110 = arith.constant dense<0.000000e+00> : vector<16xf32>
      %256 = vector.multi_reduction <add>, %252, %cst_110 [1] : vector<16x64xf32> to vector<16xf32>
      %257 = vector.shape_cast %256 : vector<16xf32> to vector<16x1xf32>
      %cst_111 = arith.constant 6.400000e+01 : f32
      %258 = vector.broadcast %cst_111 : f32 to vector<16x1xf32>
      %259 = arith.divf %257, %258 : vector<16x1xf32>
      %260 = vector.broadcast %259 : vector<16x1xf32> to vector<16x64xf32>
      %261 = arith.subf %252, %260 : vector<16x64xf32>
      %262 = arith.mulf %261, %261 : vector<16x64xf32>
      %cst_112 = arith.constant dense<0.000000e+00> : vector<16xf32>
      %263 = vector.multi_reduction <add>, %262, %cst_112 [1] : vector<16x64xf32> to vector<16xf32>
      %264 = vector.shape_cast %263 : vector<16xf32> to vector<16x1xf32>
      %cst_113 = arith.constant 6.400000e+01 : f32
      %265 = vector.broadcast %cst_113 : f32 to vector<16x1xf32>
      %266 = arith.divf %264, %265 : vector<16x1xf32>
      %cst_114 = arith.constant 9.99999974E-6 : f32
      %267 = vector.broadcast %cst_114 : f32 to vector<16x1xf32>
      %268 = arith.addf %266, %267 : vector<16x1xf32>
      %269 = math.rsqrt %268 : vector<16x1xf32>
      %270 = vector.broadcast %269 : vector<16x1xf32> to vector<16x64xf32>
      %271 = arith.mulf %261, %270 : vector<16x64xf32>
      %272 = vector.broadcast %254 : vector<1x64xf32> to vector<16x64xf32>
      %273 = arith.mulf %271, %272 : vector<16x64xf32>
      %274 = vector.broadcast %255 : vector<1x64xf32> to vector<16x64xf32>
      %275 = arith.addf %273, %274 : vector<16x64xf32>
      %276 = vector.shape_cast %275 : vector<16x64xf32> to vector<2x8x64xf32>
      %cst_115 = arith.constant dense<-2147483648> : vector<2xi32>
      %277 = vector.multi_reduction <maxsi>, %6, %cst_115 [1] : vector<2x8xi32> to vector<2xi32>
      %278 = vector.shape_cast %277 : vector<2xi32> to vector<2x1xi32>
      %279 = tpu.iota {dimensions = array<i32: 1>} : vector<2x8xi32>
      %280 = arith.sitofp %279 : vector<2x8xi32> to vector<2x8xf32>
      %281 = vector.broadcast %278 : vector<2x1xi32> to vector<2x8xi32>
      %282 = arith.cmpi eq, %6, %281 : vector<2x8xi32>
      %cst_116 = arith.constant 8.000000e+00 : f32
      %283 = vector.broadcast %cst_116 : f32 to vector<2x8xf32>
      %284 = arith.select %282, %280, %283 : vector<2x8xi1>, vector<2x8xf32>
      %cst_117 = arith.constant dense<0x7F800000> : vector<2xf32>
      %285 = vector.multi_reduction <minimumf>, %284, %cst_117 [1] : vector<2x8xf32> to vector<2xf32>
      %286 = vector.shape_cast %285 : vector<2xf32> to vector<2x1xf32>
      %287 = vector.broadcast %286 : vector<2x1xf32> to vector<2x8xf32>
      %288 = arith.cmpf oeq, %280, %287 : vector<2x8xf32>
      %289 = arith.extui %288 : vector<2x8xi1> to vector<2x8xi32>
      %290 = arith.sitofp %289 : vector<2x8xi32> to vector<2x8xf32>
      %291 = vector.shape_cast %290 : vector<2x8xf32> to vector<2x8x1xf32>
      %292 = vector.broadcast %291 : vector<2x8x1xf32> to vector<2x8x64xf32>
      %293 = arith.mulf %292, %276 : vector<2x8x64xf32>
      %cst_118 = arith.constant dense<0.000000e+00> : vector<2x64xf32>
      %294 = vector.multi_reduction <add>, %293, %cst_118 [1] : vector<2x8x64xf32> to vector<2x64xf32>
      %c0_119 = arith.constant 0 : index
      %c0_120 = arith.constant 0 : index
      %295 = vector.load %arg16[%c0_119, %c0_120] : memref<64x128xf32, #tpu.memory_space<vmem>>, vector<64x128xf32>
      %cst_121 = arith.constant dense<0.000000e+00> : vector<2x128xf32>
      %296 = tpu.matmul %294, %295, %cst_121 {dimension_numbers = #tpu.dot_dimension_numbers<[1], [0], [0], [1], [0, 0, 1, 1], [], []>} : vector<2x64xf32>, vector<64x128xf32>, vector<2x128xf32> -> vector<2x128xf32>
      %297 = vector.shape_cast %296 : vector<2x128xf32> to vector<1x2x128xf32>
      %c0_122 = arith.constant 0 : index
      %c0_123 = arith.constant 0 : index
      %c0_124 = arith.constant 0 : index
      %298 = vector.load %arg23[%c0_122, %c0_123, %c0_124] : memref<1x2x128xf32, #tpu.memory_space<vmem>>, vector<1x2x128xf32>
      tpu.vector_store %arg23[%c0_122, %c0_123, %c0_124], %297 {strides = array<i32>} : memref<1x2x128xf32, #tpu.memory_space<vmem>>, vector<1x2x128xf32>,
    } else {
    }
    return
  }
  func.func @transform_0(%arg0: i32) -> (i32, i32, i32) {
    %c0_i32 = arith.constant 0 : i32
    %c0_i32_0 = arith.constant 0 : i32
    %c0_i32_1 = arith.constant 0 : i32
    %c0_i32_2 = arith.constant 0 : i32
    return %c0_i32, %c0_i32_0, %c0_i32_1 : i32, i32, i32
  }
  func.func @transform_1(%arg0: i32) -> (i32, i32, i32) {
    %c0_i32 = arith.constant 0 : i32
    %c0_i32_0 = arith.constant 0 : i32
    %c0_i32_1 = arith.constant 0 : i32
    %c0_i32_2 = arith.constant 0 : i32
    return %c0_i32, %c0_i32_0, %c0_i32_1 : i32, i32, i32
  }
  func.func @transform_2(%arg0: i32) -> (i32, i32) {
    %c0_i32 = arith.constant 0 : i32
    %c0_i32_0 = arith.constant 0 : i32
    %c0_i32_1 = arith.constant 0 : i32
    return %c0_i32, %c0_i32_0 : i32, i32
  }
  func.func @transform_3(%arg0: i32) -> (i32, i32) {
    %c0_i32 = arith.constant 0 : i32
    %c0_i32_0 = arith.constant 0 : i32
    %c0_i32_1 = arith.constant 0 : i32
    return %c0_i32, %c0_i32_0 : i32, i32
  }
  func.func @transform_4(%arg0: i32) -> (i32, i32) {
    %c0_i32 = arith.constant 0 : i32
    %c0_i32_0 = arith.constant 0 : i32
    %c0_i32_1 = arith.constant 0 : i32
    return %c0_i32, %c0_i32_0 : i32, i32
  }
  func.func @transform_5(%arg0: i32) -> (i32, i32, i32) {
    %c0_i32 = arith.constant 0 : i32
    %c0_i32_0 = arith.constant 0 : i32
    %c0_i32_1 = arith.constant 0 : i32
    %c0_i32_2 = arith.constant 0 : i32
    return %c0_i32, %c0_i32_0, %c0_i32_1 : i32, i32, i32
  }
  func.func @transform_6(%arg0: i32) -> (i32, i32, i32) {
    %c0_i32 = arith.constant 0 : i32
    %c0_i32_0 = arith.constant 0 : i32
    %c0_i32_1 = arith.constant 0 : i32
    %c0_i32_2 = arith.constant 0 : i32
    return %c0_i32, %c0_i32_0, %c0_i32_1 : i32, i32, i32
  }
  func.func @transform_7(%arg0: i32) -> (i32, i32, i32, i32) {
    %c0_i32 = arith.constant 0 : i32
    %c0_i32_0 = arith.constant 0 : i32
    %c0_i32_1 = arith.constant 0 : i32
    %c0_i32_2 = arith.constant 0 : i32
    %c0_i32_3 = arith.constant 0 : i32
    return %c0_i32, %c0_i32_0, %c0_i32_1, %c0_i32_2 : i32, i32, i32, i32
  }
  func.func @transform_8(%arg0: i32) -> (i32, i32, i32) {
    %c0_i32 = arith.constant 0 : i32
    %c0_i32_0 = arith.constant 0 : i32
    %c0_i32_1 = arith.constant 0 : i32
    %c0_i32_2 = arith.constant 0 : i32
    return %c0_i32, %c0_i32_0, %c0_i32_1 : i32, i32, i32
  }
  func.func @transform_9(%arg0: i32) -> (i32, i32, i32) {
    %c0_i32 = arith.constant 0 : i32
    %c0_i32_0 = arith.constant 0 : i32
    %c0_i32_1 = arith.constant 0 : i32
    %c0_i32_2 = arith.constant 0 : i32
    return %c0_i32, %c0_i32_0, %c0_i32_1 : i32, i32, i32
  }
  func.func @transform_10(%arg0: i32) -> (i32, i32, i32) {
    %c0_i32 = arith.constant 0 : i32
    %c0_i32_0 = arith.constant 0 : i32
    %c0_i32_1 = arith.constant 0 : i32
    %c0_i32_2 = arith.constant 0 : i32
    return %c0_i32, %c0_i32_0, %c0_i32_1 : i32, i32, i32
  }
  func.func @transform_11(%arg0: i32) -> (i32, i32) {
    %c0_i32 = arith.constant 0 : i32
    %c0_i32_0 = arith.constant 0 : i32
    %c0_i32_1 = arith.constant 0 : i32
    return %c0_i32, %c0_i32_0 : i32, i32
  }
  func.func @transform_12(%arg0: i32) -> (i32, i32) {
    %c0_i32 = arith.constant 0 : i32
    %c0_i32_0 = arith.constant 0 : i32
    %c0_i32_1 = arith.constant 0 : i32
    return %c0_i32, %c0_i32_0 : i32, i32
  }
  func.func @transform_13(%arg0: i32) -> (i32, i32, i32) {
    %c0_i32 = arith.constant 0 : i32
    %c0_i32_0 = arith.constant 0 : i32
    %c0_i32_1 = arith.constant 0 : i32
    %c0_i32_2 = arith.constant 0 : i32
    return %c0_i32, %c0_i32_0, %c0_i32_1 : i32, i32, i32
  }
  func.func @transform_14(%arg0: i32) -> (i32, i32) {
    %c0_i32 = arith.constant 0 : i32
    %c0_i32_0 = arith.constant 0 : i32
    %c0_i32_1 = arith.constant 0 : i32
    return %c0_i32, %c0_i32_0 : i32, i32
  }
  func.func @transform_15(%arg0: i32) -> (i32, i32) {
    %c0_i32 = arith.constant 0 : i32
    %c0_i32_0 = arith.constant 0 : i32
    %c0_i32_1 = arith.constant 0 : i32
    return %c0_i32, %c0_i32_0 : i32, i32
  }
  func.func @transform_16(%arg0: i32) -> (i32, i32, i32) {
    %c0_i32 = arith.constant 0 : i32
    %c0_i32_0 = arith.constant 0 : i32
    %c0_i32_1 = arith.constant 0 : i32
    %c0_i32_2 = arith.constant 0 : i32
    return %c0_i32, %c0_i32_0, %c0_i32_1 : i32, i32, i32
  }
  func.func @transform_17(%arg0: i32) -> (i32, i32, i32) {
    %c0_i32 = arith.constant 0 : i32
    %c0_i32_0 = arith.constant 0 : i32
    %c0_i32_1 = arith.constant 0 : i32
    %c0_i32_2 = arith.constant 0 : i32
    return %c0_i32, %c0_i32_0, %c0_i32_1 : i32, i32, i32
  }
  func.func @transform_18(%arg0: i32) -> (i32, i32, i32, i32) {
    %c0_i32 = arith.constant 0 : i32
    %c0_i32_0 = arith.constant 0 : i32
    %c0_i32_1 = arith.constant 0 : i32
    %c0_i32_2 = arith.constant 0 : i32
    %c0_i32_3 = arith.constant 0 : i32
    return %c0_i32, %c0_i32_0, %c0_i32_1, %c0_i32_2 : i32, i32, i32, i32
  }
  func.func @transform_19(%arg0: i32) -> (i32, i32, i32) {
    %c0_i32 = arith.constant 0 : i32
    %c0_i32_0 = arith.constant 0 : i32
    %c0_i32_1 = arith.constant 0 : i32
    %c0_i32_2 = arith.constant 0 : i32
    return %c0_i32, %c0_i32_0, %c0_i32_1 : i32, i32, i32
  }
  func.func @transform_20(%arg0: i32) -> (i32, i32, i32) {
    %c0_i32 = arith.constant 0 : i32
    %c0_i32_0 = arith.constant 0 : i32
    %c0_i32_1 = arith.constant 0 : i32
    %c0_i32_2 = arith.constant 0 : i32
    return %c0_i32, %c0_i32_0, %c0_i32_1 : i32, i32, i32
  }
  func.func @transform_21(%arg0: i32) -> (i32, i32, i32) {
    %c0_i32 = arith.constant 0 : i32
    %c0_i32_0 = arith.constant 0 : i32
    %c0_i32_1 = arith.constant 0 : i32
    %c0_i32_2 = arith.constant 0 : i32
    return %c0_i32, %c0_i32_0, %c0_i32_1 : i32, i32, i32
  }
  func.func @transform_22(%arg0: i32) -> (i32, i32, i32) {
    %c0_i32 = arith.constant 0 : i32
    %c0_i32_0 = arith.constant 0 : i32
    %c0_i32_1 = arith.constant 0 : i32
    return %arg0, %c0_i32, %c0_i32_0 : i32, i32, i32
  }
}

</mosaic_0001>

<bundles_post_ra>
// kernel: clip2text_reid_forward.1
= control target key start
LH: loop header
LB: loop body
LE: loop exit
PB: predicated region body
PF: predicated region fallthrough
CT: control target
= control target key end

     0   :  { %s11124_s0 = inlined_call_operand.vmem [shape: f32[2,24,192], index: 0, kind: input, shape index: {}]   ;;  %s11125_s1 = inlined_call_operand.vmem [shape: f32[1,24,64], index: 1, kind: input, shape index: {}]   ;;  %s11126_s2 = inlined_call_operand.vmem [shape: f32[192,64], index: 2, kind: input, shape index: {}]   ;;  %s11127_s3 = inlined_call_operand.vmem [shape: f32[4,64], index: 3, kind: input, shape index: {}]   ;;  %s11128_s4 = inlined_call_operand.vmem [shape: f32[64,128], index: 4, kind: input, shape index: {}]   ;;  %s11129_s5 = inlined_call_operand.vmem [shape: f32[2,9,64], index: 5, kind: input, shape index: {}]   ;;  %s11130_s6 = inlined_call_operand.vmem [shape: f32[2,1,256], index: 6, kind: input, shape index: {}]   ;;  %s11131_s7 = inlined_call_operand.vmem [shape: f32[2,3,64,64], index: 7, kind: input, shape index: {}]   ;;  %s11132_s8 = inlined_call_operand.vmem [shape: f32[2,64,64], index: 8, kind: input, shape index: {}]   ;;  %s11133_s9 = inlined_call_operand.vmem [shape: f32[2,64,256], index: 9, kind: input, shape index: {}]   ;;  %s11134_s10 = inlined_call_operand.vmem [shape: f32[2,256,64], index: 10, kind: input, shape index: {}]   ;;  %s11135_s11 = inlined_call_operand.vmem [shape: s32[2,8], index: 11, kind: input, shape index: {}]   ;;  %s11136_s12 = inlined_call_operand.vmem [shape: f32[128,64], index: 12, kind: input, shape index: {}]   ;;  %s11137_s13 = inlined_call_operand.vmem [shape: f32[1,8,64], index: 13, kind: input, shape index: {}]   ;;  %s11138_s14 = inlined_call_operand.vmem [shape: f32[2,64], index: 14, kind: input, shape index: {}]   ;;  %s11139_s15 = inlined_call_operand.vmem [shape: f32[64,128], index: 15, kind: input, shape index: {}]   ;;  %s11140_s16 = inlined_call_operand.vmem [shape: f32[2,9,64], index: 16, kind: input, shape index: {}]   ;;  %s11141_s17 = inlined_call_operand.vmem [shape: f32[2,1,256], index: 17, kind: input, shape index: {}]   ;;  %s11142_s18 = inlined_call_operand.vmem [shape: f32[2,3,64,64], index: 18, kind: input, shape index: {}]   ;;  %s11143_s19 = inlined_call_operand.vmem [shape: f32[2,64,64], index: 19, kind: input, shape index: {}]   ;;  %s11144_s20 = inlined_call_operand.vmem [shape: f32[2,64,256], index: 20, kind: input, shape index: {}]   ;;  %s11145_s21 = inlined_call_operand.vmem [shape: f32[2,256,64], index: 21, kind: input, shape index: {}]   ;;  %s11146_s22 = inlined_call_operand.vmem [shape: f32[2,2,128], index: 22, kind: output, shape index: {}]  }
   0x1   :  { %11156 = sst [smem:[#allocation2_spill]] %s11124_s0 }
   0x2   :  { %11157 = sst [smem:[#allocation3_spill]] %s11125_s1 }
   0x3   :  { %11158 = sst [smem:[#allocation4_spill]] %s11126_s2 }
   0x4   :  { %11159 = sst [smem:[#allocation5_spill]] %s11127_s3  ;;  %s8900_s3 = smov 0  }
   0x5   :  { %11160 = sst [smem:[#allocation6_spill]] %s11128_s4 }
   0x6   :  { %11161 = sst [smem:[#allocation7_spill]] %s11129_s5 }
   0x7   :  { %11162 = sst [smem:[#allocation8_spill]] %s11130_s6 }
   0x8   :  { %11163 = sst [smem:[#allocation9_spill]] %s11131_s7 }
   0x9   :  { %11164 = sst [smem:[#allocation10_spill]] %s11146_s22 }
   0xa LB: > { %s8906_s28 = sadd.s32 4294967295, %s8775_s3   ;;  %p6473_p0 = scmp.ge.s32.totalorder %s8775_s3, 1  ;;  %s8775_s3 = sphi %s8900_s3, %s32_s3  }
   0xb   : > { %p602_p1 = scmp.lt.s32.totalorder %s8775_s3, 3 }
   0xd   : > { %p603_p2 = pnand %p6473_p0, %p602_p1 }
   0xe   : > { %p658_p3 = scmp.lt.s32.totalorder (!%p603_p2), %s8906_s28, 1  ;;  %s11165_s22 = sld [smem:[#allocation10_spill]] (!%p603_p2) }
   0xf   : > { %606 = sbr.rel (%p603_p2) target bundleno = 11237 (0x2be5), region = 108  ;;  %p6475_p4 = scmp.ne.s32.totalorder (!%p603_p2), %s8906_s28, 0 }
  0x16   : > { %s659_s29 = scalar_select %p658_p3, %s8906_s28, 1 }
  0x17   : > { %665 = sbr.rel (%p6475_p4) target bundleno = 5763 (0x1683), region = 112  ;;  %s11166_s24 = sld [smem:[#allocation4_spill]] (!%p6475_p4)  ;;  %v8777_v3 = vmov (!%p6475_p4), 0.0|0.0   ;;  %vm702_vm0 = vcmask (!%p6475_p4), 523264   ;;  %vm8778_vm1 = vmmov (!%p6475_p4), 0   ;;  %vm1635_vm4 = vcmask (!%p6475_p4), 195584  }
  0x18   : > { %s6474_s30 = sshll.u32 %s659_s29, 1  ;;  %7907 = vmatprep.subr.bf16.mxu0 (!%p6475_p4), %v8777_v3  ;;  %s11167_s29 = sld [smem:[#allocation2_spill]] (!%p6475_p4)  ;;  %vm9289_vm2 = vmpackc.low (!%p6475_p4), %vm702_vm0, %vm702_vm0  ;;  %vm3993_vm5 = vcmask (!%p6475_p4), 1041409  }
  0x19   : > { %s8915_s23 = scalar_lea.vmem %s11165_s22, %s6474_s30  ;;  %s11168_s25 = sld [smem:[#allocation3_spill]] (!%p6475_p4) }
  0x1a   : > { %s11169_s1 = sld [smem:[#allocation5_spill]] (!%p6475_p4)  ;;  %s11170_s7 = sld [smem:[#allocation9_spill]] (!%p6475_p4) }
  0x1b   : > { %s11171_s4 = sld [smem:[#allocation7_spill]] (!%p6475_p4)  ;;  %s11175_s6 = sld [smem:[#allocation6_spill]] (!%p6475_p4) }
  0x1d   : > { %v678_v0 = vld [vmem:[%s11166_s24] sm:$0xff] (!%p6475_p4)  ;;  %v679_v1 = vld [vmem:[%s11166_s24 + $0x8] sm:$0xff] (!%p6475_p4)  ;;  %v680_v2 = vld [vmem:[%s11166_s24 + $0x10] sm:$0xff] (!%p6475_p4) }
  0x1e   : > { %v7908_v4 = vpack.c.bf16 %v679_v1, %v678_v0  ;;  %v681_v5 = vld [vmem:[%s11166_s24 + $0x18] sm:$0xff]  ;;  %v682_v7 = vld [vmem:[%s11166_s24 + $0x20] sm:$0xff]  ;;  %v683_v8 = vld [vmem:[%s11166_s24 + $0x28] sm:$0xff] }
  0x1f   : > { %v7911_v6 = vpack.c.bf16 %v681_v5, %v680_v2  ;;  %v7914_v9 = vpack.c.bf16 %v683_v8, %v682_v7  ;;  %v684_v10 = vld [vmem:[%s11166_s24 + $0x30] sm:$0xff]  ;;  %v685_v11 = vld [vmem:[%s11166_s24 + $0x38] sm:$0xff]  ;;  %v667_v12 = vld [vmem:[%s11167_s29 + $0x8] sm:$0xff] }
  0x20   : > { %7909 = vmatpush1.bf16.msra.mxu0 %v7908_v4  ;;  %6476 = vmatprep.mubr.msk.f32.mxu0 %vm702_vm0, %v667_v12  ;;  %v7917_v13 = vpack.c.bf16 %v685_v11, %v684_v10  ;;  %v686_v14 = vld [vmem:[%s11166_s24 + $0x40] sm:$0xff]  ;;  %v687_v15 = vld [vmem:[%s11166_s24 + $0x48] sm:$0xff]  ;;  %v688_v17 = vld [vmem:[%s11166_s24 + $0x50] sm:$0xff] }
  0x21   : > { %7910 = vmatprep.subr.bf16.mxu0 %v8777_v3  ;;  %v7920_v16 = vpack.c.bf16 %v687_v15, %v686_v14  ;;  %v689_v18 = vld [vmem:[%s11166_s24 + $0x58] sm:$0xff]  ;;  %v690_v20 = vld [vmem:[%s11166_s24 + $0x60] sm:$0xff]  ;;  %v691_v21 = vld [vmem:[%s11166_s24 + $0x68] sm:$0xff] }
  0x22   : > { %v7923_v19 = vpack.c.bf16 %v689_v18, %v688_v17  ;;  %v7926_v22 = vpack.c.bf16 %v691_v21, %v690_v20  ;;  %v692_v23 = vld [vmem:[%s11166_s24 + $0x70] sm:$0xff]  ;;  %v693_v24 = vld [vmem:[%s11166_s24 + $0x78] sm:$0xff]  ;;  %v694_v26 = vld [vmem:[%s11166_s24 + $0x80] sm:$0xff] }
  0x23   : > { %v7929_v25 = vpack.c.bf16 %v693_v24, %v692_v23  ;;  %v695_v27 = vld [vmem:[%s11166_s24 + $0x88] sm:$0xff]  ;;  %v696_v29 = vld [vmem:[%s11166_s24 + $0x90] sm:$0xff]  ;;  %v697_v30 = vld [vmem:[%s11166_s24 + $0x98] sm:$0xff] }
  0x24   : > { %7912 = vmatpush1.bf16.msra.mxu0 %v7911_v6  ;;  %v7932_v28 = vpack.c.bf16 %v695_v27, %v694_v26  ;;  %v7935_v31 = vpack.c.bf16 %v697_v30, %v696_v29  ;;  %v698_v32 = vld [vmem:[%s11166_s24 + $0xa0] sm:$0xff]  ;;  %v699_v33 = vld [vmem:[%s11166_s24 + $0xa8] sm:$0xff]  ;;  %v700_v35 = vld [vmem:[%s11166_s24 + $0xb0] sm:$0xff] }
  0x25   : > { %7913 = vmatprep.subr.bf16.mxu0 %v8777_v3  ;;  %v7938_v34 = vpack.c.bf16 %v699_v33, %v698_v32  ;;  %v701_v36 = vld [vmem:[%s11166_s24 + $0xb8] sm:$0xff]  ;;  %v666_v38 = vld [vmem:[%s11167_s29] sm:$0xff]  ;;  %v668_v40 = vld [vmem:[%s11167_s29 + $0x10] sm:$0xff]  ;;  %s11174_s24 = sld [smem:[#allocation8_spill]] }
  0x26   : > { %v7941_v37 = vpack.c.bf16 %v701_v36, %v700_v35  ;;  %v669_v39 = vld [vmem:[%s11167_s29 + $0x18] sm:$0xff]  ;;  %v671_v41 = vld [vmem:[%s11167_s29 + $0x28] sm:$0xff]  ;;  %v670_v42 = vld [vmem:[%s11167_s29 + $0x20] sm:$0xff] }
  0x27   : > { %v673_v43 = vld [vmem:[%s11167_s29 + $0x38] sm:$0xff]  ;;  %v672_v44 = vld [vmem:[%s11167_s29 + $0x30] sm:$0xff]  ;;  %v675_v45 = vld [vmem:[%s11167_s29 + $0x48] sm:$0xff] }
  0x28   : > { %7915 = vmatpush1.bf16.msra.mxu0 %v7914_v9  ;;  %v674_v46 = vld [vmem:[%s11167_s29 + $0x40] sm:$0xff]  ;;  %v677_v47 = vld [vmem:[%s11167_s29 + $0x58] sm:$0xff]  ;;  %v676_v48 = vld [vmem:[%s11167_s29 + $0x50] sm:$0xff] }
  0x29   : > { %7916 = vmatprep.subr.bf16.mxu0 %v8777_v3  ;;  %v816_v49 = vld [vmem:[%s11168_s25] sm:$0xff]  ;;  %v817_v53 = vld [vmem:[%s11168_s25 + $0x8] sm:$0xff]  ;;  %v818_v58 = vld [vmem:[%s11168_s25 + $0x10] sm:$0xff] }
  0x2c   : > { %7918 = vmatpush1.bf16.msra.mxu0 %v7917_v13 }
  0x2d   : > { %7919 = vmatprep.subr.bf16.mxu0 %v8777_v3 }
  0x30   : > { %7921 = vmatpush1.bf16.msra.mxu0 %v7920_v16 }
  0x31   : > { %7922 = vmatprep.subr.bf16.mxu0 %v8777_v3 }
  0x34   : > { %7924 = vmatpush1.bf16.msra.mxu0 %v7923_v19 }
  0x35   : > { %7925 = vmatprep.subr.bf16.mxu0 %v8777_v3 }
  0x38   : > { %7927 = vmatpush1.bf16.msra.mxu0 %v7926_v22 }
  0x39   : > { %7928 = vmatprep.subr.bf16.mxu0 %v8777_v3 }
  0x3c   : > { %7930 = vmatpush1.bf16.msra.mxu0 %v7929_v25 }
  0x3d   : > { %7931 = vmatprep.subr.bf16.mxu0 %v8777_v3 }
  0x40   : > { %7933 = vmatpush1.bf16.msra.mxu0 %v7932_v28 }
  0x41   : > { %7934 = vmatprep.subr.bf16.mxu0 %v8777_v3 }
  0x44   : > { %7936 = vmatpush1.bf16.msra.mxu0 %v7935_v31 }
  0x45   : > { %7937 = vmatprep.subr.bf16.mxu0 %v8777_v3 }
  0x48   : > { %7939 = vmatpush1.bf16.msra.mxu0 %v7938_v34 }
  0x49   : > { %7940 = vmatprep.subr.bf16.mxu0 %v8777_v3 }
  0x4c   : > { %7942 = vmatpush1.bf16.msra.mxu0 %v7941_v37 }
  0x4d   : > { %8002 = vmatprep.subr.bf16.mxu0 %v8777_v3 }
  0x4f   : > { %786 = vmatmul.mubr.f32.vlgmr.msra.gmra.mrb[0].mxu0 %v666_v38 }
  0x50   : > { %6477 = vmatprep.mubr.msk.f32.mxu0 %vm702_vm0, %v669_v39 }
  0x53   : > { %791 = vmatmul.mubr.f32.gmra.mrb[2].mxu0 %v668_v40 }
  0x54   : > { %6478 = vmatprep.mubr.msk.f32.mxu0 %vm702_vm0, %v671_v41 }
  0x57   : > { %796 = vmatmul.mubr.f32.gmra.mrb[4].mxu0 %v670_v42 }
  0x58   : > { %6479 = vmatprep.mubr.msk.f32.mxu0 %vm702_vm0, %v673_v43 }
  0x5b   : > { %801 = vmatmul.mubr.f32.gmra.mrb[6].mxu0 %v672_v44 }
  0x5c   : > { %6480 = vmatprep.mubr.msk.f32.mxu0 %vm702_vm0, %v675_v45  ;;  %v905_v45 = vlaneseq }
  0x5f   : > { %806 = vmatmul.mubr.f32.gmra.mrb[8].mxu0 %v674_v46 }
  0x60   : > { %6481 = vmatprep.mubr.msk.f32.mxu0 %vm702_vm0, %v677_v47 }
  0x63   : > { %811 = vmatmul.mubr.f32.gmra.mrb[10].mxu0 %v676_v48 }
 0x122   : > { %v787_v50 = vpop.f32.mrb[0].mxu0 }
 0x123   : > { %v819_v51 = vadd.f32 %v816_v49, %v787_v50  ;;  %v789_v52 = vpop.f32.mrb[1].mxu0 }
 0x125   : > { %v826_v54 = vsel %vm702_vm0, %v819_v51, 0.0 }
 0x126   : > { %827 = vadd.xlane.f32.xlu0 %v826_v54  ;;  %v792_v55 = vpop.f32.mrb[2].mxu0 }
 0x127   : > { %v820_v56 = vadd.f32 %v817_v53, %v792_v55  ;;  %v794_v57 = vpop.f32.mrb[3].mxu0  ;;  %v825_v55 = vld [vmem:[%s11169_s1] sm:$0xf] }
 0x129   : > { %v829_v59 = vsel %vm702_vm0, %v820_v56, 0.0 }
 0x12a   : > { %830 = vadd.xlane.f32.xlu0 %v829_v59  ;;  %v797_v60 = vpop.f32.mrb[4].mxu0 }
 0x12b   : > { %v821_v61 = vadd.f32 %v818_v58, %v797_v60  ;;  %v799_v62 = vpop.f32.mrb[5].mxu0 }
 0x12d   : > { %v832_v63 = vsel %vm702_vm0, %v821_v61, 0.0 }
 0x12e   : > { %833 = vadd.xlane.f32.xlu1 %v832_v63  ;;  %v802_v0 = vpop.f32.mrb[6].mxu0 }
 0x12f   : > { %v822_v1 = vadd.f32 %v816_v49, %v802_v0  ;;  %v804_v2 = vpop.f32.mrb[7].mxu0  ;;  %v9083_v49 = vshrl.u32 %v905_v45, 7 }
 0x131   : > { %v835_v4 = vsel %vm702_vm0, %v822_v1, 0.0  ;;  %v9092_v57 = vsub.s32 1, %v9083_v49 }
 0x132   : > { %836 = vadd.xlane.f32.xlu1 %v835_v4  ;;  %v807_v5 = vpop.f32.mrb[8].mxu0 }
 0x133   : > { %v823_v6 = vadd.f32 %v817_v53, %v807_v5  ;;  %v809_v7 = vpop.f32.mrb[9].mxu0  ;;  %v9086_v53 = vsub.s32 0, %v9083_v49  ;;  %v918_v0 = vrot.slane %v825_v55, %v9092_v57 }
 0x135   : > { %v838_v8 = vsel %vm702_vm0, %v823_v6, 0.0  ;;  %v908_v59 = vrot.slane %v825_v55, %v9086_v53 }
 0x136   : > { %839 = vadd.xlane.f32.xlu0 %v838_v8  ;;  %v812_v9 = vpop.f32.mrb[10].mxu0 }
 0x137   : > { %v824_v10 = vadd.f32 %v818_v58, %v812_v9  ;;  %v814_v11 = vpop.f32.mrb[11].mxu0 }
 0x139   : > { %v841_v12 = vsel %vm702_vm0, %v824_v10, 0.0 }
 0x13a   : > { %842 = vadd.xlane.f32.xlu1 %v841_v12 }
 0x1b3   : > { %v828_v13 = vpop.xlane.xlu0 %827 }
 0x1b4   : > { %v845_v14 = vmul.f32 0.015625, %v828_v13 }
 0x1b6   : > { %v851_v15 = vsub.f32 %v819_v51, %v845_v14 }
 0x1b7   : > { %v831_v16 = vpop.xlane.xlu0 %830 }
 0x1b8   : > { %v846_v17 = vmul.f32 0.015625, %v831_v16  ;;  %v857_v18 = vmul.f32 %v851_v15, %v851_v15 }
 0x1ba   : > { %v852_v19 = vsub.f32 %v820_v56, %v846_v17  ;;  %v863_v20 = vsel %vm702_vm0, %v857_v18, 0.0 }
 0x1bb   : > { %v834_v21 = vpop.xlane.xlu1 %833  ;;  %864 = vadd.xlane.f32.xlu0 %v863_v20 }
 0x1bc   : > { %v847_v22 = vmul.f32 0.015625, %v834_v21  ;;  %v858_v23 = vmul.f32 %v852_v19, %v852_v19 }
 0x1be   : > { %v9061_v24 = vsub.f32 %v821_v61, %v847_v22  ;;  %v866_v25 = vsel %vm702_vm0, %v858_v23, 0.0 }
 0x1bf   : > { %v837_v26 = vpop.xlane.xlu1 %836  ;;  %867 = vadd.xlane.f32.xlu1 %v866_v25 }
 0x1c0   : > { %v848_v27 = vmul.f32 0.015625, %v837_v26  ;;  %v859_v28 = vmul.f32 %v9061_v24, %v9061_v24 }
 0x1c2   : > { %v9066_v29 = vsub.f32 %v822_v1, %v848_v27  ;;  %v869_v30 = vsel %vm702_vm0, %v859_v28, 0.0 }
 0x1c3   : > { %870 = vadd.xlane.f32.xlu0 %v869_v30  ;;  %v840_v31 = vpop.xlane.xlu0 %839 }
 0x1c4   : > { %v849_v32 = vmul.f32 0.015625, %v840_v31  ;;  %v860_v33 = vmul.f32 %v9066_v29, %v9066_v29 }
 0x1c6   : > { %v9071_v34 = vsub.f32 %v823_v6, %v849_v32  ;;  %v872_v35 = vsel %vm702_vm0, %v860_v33, 0.0 }
 0x1c7   : > { %873 = vadd.xlane.f32.xlu1 %v872_v35  ;;  %v843_v36 = vpop.xlane.xlu1 %842 }
 0x1c8   : > { %v850_v37 = vmul.f32 0.015625, %v843_v36  ;;  %v861_v38 = vmul.f32 %v9071_v34, %v9071_v34 }
 0x1ca   : > { %v9076_v39 = vsub.f32 %v824_v10, %v850_v37  ;;  %v875_v40 = vsel %vm702_vm0, %v861_v38, 0.0 }
 0x1cb   : > { %876 = vadd.xlane.f32.xlu0 %v875_v40 }
 0x1cc   : > { %v862_v41 = vmul.f32 %v9076_v39, %v9076_v39 }
 0x1ce   : > { %v878_v42 = vsel %vm702_vm0, %v862_v41, 0.0 }
 0x1cf   : > { %879 = vadd.xlane.f32.xlu1 %v878_v42 }
 0x248   : > { %v865_v43 = vpop.xlane.xlu0 %864 }
 0x249   : > { %v881_v44 = vmul.f32 0.015625, %v865_v43 }
 0x24b   : > { %v887_v46 = vadd.f32 1e-05, %v881_v44 }
 0x24c   : > { %v868_v47 = vpop.xlane.xlu1 %867 }
 0x24d   : > { %8491 = vrsqrt.f32 %v887_v46  ;;  %v882_v48 = vmul.f32 0.015625, %v868_v47 }
 0x24f   : > { %v888_v50 = vadd.f32 1e-05, %v882_v48 }
 0x250   : > { %v871_v51 = vpop.xlane.xlu0 %870 }
 0x251   : > { %8493 = vrsqrt.f32 %v888_v50  ;;  %v883_v52 = vmul.f32 0.015625, %v871_v51 }
 0x253   : > { %v889_v54 = vadd.f32 1e-05, %v883_v52 }
 0x254   : > { %v874_v56 = vpop.xlane.xlu1 %873 }
 0x255   : > { %8495 = vrsqrt.f32 %v889_v54  ;;  %v884_v58 = vmul.f32 0.015625, %v874_v56 }
 0x257   : > { %v8492_v60 = vpop.eup %8491  ;;  %v890_v61 = vadd.f32 1e-05, %v884_v58 }
 0x258   : > { %v877_v62 = vpop.xlane.xlu0 %876  ;;  %v899_v63 = vmul.f32 %v8492_v60, %v851_v15 }
 0x259   : > { %8497 = vrsqrt.f32 %v890_v61  ;;  %v885_v1 = vmul.f32 0.015625, %v877_v62 }
 0x25a   : > { %v909_v2 = vmul.f32 %v908_v59, %v899_v63 }
 0x25b   : > { %v8494_v4 = vpop.eup %8493  ;;  %v891_v5 = vadd.f32 1e-05, %v885_v1 }
 0x25c   : > { %v880_v6 = vpop.xlane.xlu1 %879  ;;  %v9096_v7 = vadd.f32 %v918_v0, %v909_v2  ;;  %v900_v8 = vmul.f32 %v8494_v4, %v852_v19 }
 0x25d   : > { %8499 = vrsqrt.f32 %v891_v5  ;;  %v886_v9 = vmul.f32 0.015625, %v880_v6  ;;  %v932_v6 = vld [vmem:[%s11170_s7] sm:$0xff] }
 0x25e   : > { %v1014_v10 = vsel %vm702_vm0, %v9096_v7, 0.0  ;;  %v910_v11 = vmul.f32 %v908_v59, %v900_v8  ;;  %v933_v8 = vld [vmem:[%s11170_s7 + $0x8] sm:$0xff] }
 0x25f   : > { %v8496_v12 = vpop.eup %8495  ;;  %v892_v13 = vadd.f32 1e-05, %v886_v9  ;;  %1015 = vadd.xlane.f32.xlu0 %v1014_v10  ;;  %v7943_v9 = vpack.c.bf16 %v933_v8, %v932_v6  ;;  %v934_v10 = vld [vmem:[%s11170_s7 + $0x10] sm:$0xff]  ;;  %v6486_v6 = vld [vmem:[%s11170_s7 + $0x60] sm:$0xff]  ;;  %v6487_v8 = vld [vmem:[%s11170_s7 + $0x68] sm:$0xff] }
 0x260   : > { %v9100_v14 = vadd.f32 %v918_v0, %v910_v11  ;;  %v901_v15 = vmul.f32 %v8496_v12, %v9061_v24  ;;  %v935_v11 = vld [vmem:[%s11170_s7 + $0x18] sm:$0xff] }
 0x261   : > { %8501 = vrsqrt.f32 %v892_v13  ;;  %7944 = vmatprep.subr.bf16.mxu1 %v7943_v9  ;;  %v7947_v12 = vpack.c.bf16 %v935_v11, %v934_v10  ;;  %v936_v13 = vld [vmem:[%s11170_s7 + $0x20] sm:$0xff] }
 0x262   : > { %v1017_v16 = vsel %vm702_vm0, %v9100_v14, 0.0  ;;  %v911_v17 = vmul.f32 %v908_v59, %v901_v15  ;;  %7946 = vmatpush3.bf16.msra.mxu1 %v7943_v9  ;;  %v937_v15 = vld [vmem:[%s11170_s7 + $0x28] sm:$0xff] }
 0x263   : > { %v8498_v18 = vpop.eup %8497  ;;  %1018 = vadd.xlane.f32.xlu1 %v1017_v16  ;;  %7948 = vmatprep.subr.bf16.mxu1 %v7947_v12  ;;  %v7951_v16 = vpack.c.bf16 %v937_v15, %v936_v13  ;;  %v6488_v13 = vld [vmem:[%s11170_s7 + $0x70] sm:$0xff]  ;;  %v6489_v15 = vld [vmem:[%s11170_s7 + $0x78] sm:$0xff] }
 0x264   : > { %v9105_v19 = vadd.f32 %v918_v0, %v911_v17  ;;  %v902_v20 = vmul.f32 %v8498_v18, %v9066_v29  ;;  %v938_v17 = vld [vmem:[%s11170_s7 + $0x30] sm:$0xff]  ;;  %v939_v18 = vld [vmem:[%s11170_s7 + $0x38] sm:$0xff] }
 0x266   : > { %v1020_v21 = vsel %vm702_vm0, %v9105_v19, 0.0  ;;  %v912_v22 = vmul.f32 %v908_v59, %v902_v20  ;;  %7950 = vmatpush3.bf16.msra.mxu1 %v7947_v12  ;;  %v7955_v20 = vpack.c.bf16 %v939_v18, %v938_v17  ;;  %v7967_v12 = vpack.c.bf16 %v6487_v8, %v6486_v6 }
 0x267   : > { %v8500_v23 = vpop.eup %8499  ;;  %1021 = vadd.xlane.f32.xlu0 %v1020_v21  ;;  %7952 = vmatprep.subr.bf16.mxu1 %v7951_v16  ;;  %v6482_v21 = vld [vmem:[%s11170_s7 + $0x40] sm:$0xff]  ;;  %v1330_v6 = vsub.s32 4, %v9083_v49 }
 0x268   : > { %v9110_v25 = vadd.f32 %v918_v0, %v912_v22  ;;  %v903_v24 = vmul.f32 %v8500_v23, %v9071_v34  ;;  %v6483_v22 = vld [vmem:[%s11170_s7 + $0x48] sm:$0xff] }
 0x269   : > { %v7959_v23 = vpack.c.bf16 %v6483_v22, %v6482_v21  ;;  %v7971_v21 = vpack.c.bf16 %v6489_v15, %v6488_v13  ;;  %v6491_v22 = vld [vmem:[%s11170_s7 + $0x88] sm:$0xff] }
 0x26a   : > { %v1023_v26 = vsel %vm702_vm0, %v9110_v25, 0.0  ;;  %v913_v27 = vmul.f32 %v908_v59, %v903_v24  ;;  %7954 = vmatpush3.bf16.msra.mxu1 %v7951_v16 }
 0x26b   : > { %v8502_v28 = vpop.eup %8501  ;;  %1024 = vadd.xlane.f32.xlu1 %v1023_v26  ;;  %7956 = vmatprep.subr.bf16.mxu1 %v7955_v20 }
 0x26c   : > { %v9115_v30 = vadd.f32 %v918_v0, %v913_v27  ;;  %v904_v29 = vmul.f32 %v8502_v28, %v9076_v39 }
 0x26e   : > { %v1026_v31 = vsel %vm702_vm0, %v9115_v30, 0.0  ;;  %v914_v32 = vmul.f32 %v908_v59, %v904_v29  ;;  %7958 = vmatpush3.bf16.msra.mxu1 %v7955_v20 }
 0x26f   : > { %1027 = vadd.xlane.f32.xlu0 %v1026_v31  ;;  %7960 = vmatprep.subr.bf16.mxu1 %v7959_v23 }
 0x270   : > { %v9120_v33 = vadd.f32 %v918_v0, %v914_v32 }
 0x272   : > { %v1029_v34 = vsel %vm702_vm0, %v9120_v33, 0.0 }
 0x273   : > { %1030 = vadd.xlane.f32.xlu1 %v1029_v34 }
 0x2ec   : > { %v1016_v35 = vpop.xlane.xlu0 %1015 }
 0x2ed   : > { %v1032_v36 = vmul.f32 0.015625, %v1016_v35 }
 0x2ef   : > { %v9125_v37 = vsub.f32 %v9096_v7, %v1032_v36  ;;  %v9193_v36 = vld [vmem:[%s11171_s4] sm:$0xff] }
 0x2f0   : > { %v1019_v38 = vpop.xlane.xlu1 %1018 }
 0x2f1   : > { %v1033_v40 = vmul.f32 0.015625, %v1019_v38  ;;  %v1044_v39 = vmul.f32 %v9125_v37, %v9125_v37 }
 0x2f3   : > { %v9130_v41 = vsub.f32 %v9100_v14, %v1033_v40  ;;  %v1050_v42 = vsel %vm702_vm0, %v1044_v39, 0.0  ;;  %v1095_v39 = vrot.slane %v9193_v36, %v9086_v53 }
 0x2f4   : > { %1051 = vadd.xlane.f32.xlu0 %v1050_v42  ;;  %v1022_v43 = vpop.xlane.xlu0 %1021 }
 0x2f5   : > { %v1034_v44 = vmul.f32 0.015625, %v1022_v43  ;;  %v1045_v46 = vmul.f32 %v9130_v41, %v9130_v41 }
 0x2f7   : > { %v9136_v47 = vsub.f32 %v9105_v19, %v1034_v44  ;;  %v1053_v48 = vsel %vm702_vm0, %v1045_v46, 0.0 }
 0x2f8   : > { %1054 = vadd.xlane.f32.xlu1 %v1053_v48  ;;  %v1025_v50 = vpop.xlane.xlu1 %1024  ;;  %v1105_v48 = vrot.slane %v9193_v36, %v9092_v57 }
 0x2f9   : > { %v1035_v51 = vmul.f32 0.015625, %v1025_v50  ;;  %v1046_v52 = vmul.f32 %v9136_v47, %v9136_v47 }
 0x2fb   : > { %v9142_v54 = vsub.f32 %v9110_v25, %v1035_v51  ;;  %v1056_v55 = vsel %vm702_vm0, %v1046_v52, 0.0 }
 0x2fc   : > { %1057 = vadd.xlane.f32.xlu0 %v1056_v55  ;;  %v1028_v56 = vpop.xlane.xlu0 %1027 }
 0x2fd   : > { %v1036_v58 = vmul.f32 0.015625, %v1028_v56  ;;  %v1047_v59 = vmul.f32 %v9142_v54, %v9142_v54 }
 0x2ff   : > { %v9148_v60 = vsub.f32 %v9115_v30, %v1036_v58  ;;  %v1059_v61 = vsel %vm702_vm0, %v1047_v59, 0.0 }
 0x300   : > { %1060 = vadd.xlane.f32.xlu1 %v1059_v61  ;;  %v1031_v62 = vpop.xlane.xlu1 %1030 }
 0x301   : > { %v1037_v63 = vmul.f32 0.015625, %v1031_v62  ;;  %v1048_v0 = vmul.f32 %v9148_v60, %v9148_v60  ;;  %v6484_v62 = vld [vmem:[%s11170_s7 + $0x50] sm:$0xff] }
 0x303   : > { %v9154_v1 = vsub.f32 %v9120_v33, %v1037_v63  ;;  %v1062_v2 = vsel %vm702_vm0, %v1048_v0, 0.0 }
 0x304   : > { %1063 = vadd.xlane.f32.xlu0 %v1062_v2 }
 0x305   : > { %v1049_v4 = vmul.f32 %v9154_v1, %v9154_v1 }
 0x307   : > { %v1065_v5 = vsel %vm702_vm0, %v1049_v4, 0.0 }
 0x308   : > { %1066 = vadd.xlane.f32.xlu1 %v1065_v5 }
 0x381   : > { %v1052_v24 = vpop.xlane.xlu0 %1051 }
 0x382   : > { %v1068_v26 = vmul.f32 0.015625, %v1052_v24 }
 0x384   : > { %v1074_v27 = vadd.f32 1e-05, %v1068_v26 }
 0x385   : > { %v1055_v28 = vpop.xlane.xlu1 %1054 }
 0x386   : > { %8503 = vrsqrt.f32 %v1074_v27  ;;  %v1069_v29 = vmul.f32 0.015625, %v1055_v28 }
 0x388   : > { %v1075_v31 = vadd.f32 1e-05, %v1069_v29 }
 0x389   : > { %v1058_v32 = vpop.xlane.xlu0 %1057 }
 0x38a   : > { %8505 = vrsqrt.f32 %v1075_v31  ;;  %v1070_v34 = vmul.f32 0.015625, %v1058_v32  ;;  %v6492_v31 = vld [vmem:[%s11170_s7 + $0x90] sm:$0xff]  ;;  %v6493_v32 = vld [vmem:[%s11170_s7 + $0x98] sm:$0xff] }
 0x38c   : > { %v1076_v35 = vadd.f32 1e-05, %v1070_v34  ;;  %v6494_v34 = vld [vmem:[%s11170_s7 + $0xa0] sm:$0xff] }
 0x38d   : > { %v1061_v38 = vpop.xlane.xlu1 %1060 }
 0x38e   : > { %8507 = vrsqrt.f32 %v1076_v35  ;;  %v1071_v40 = vmul.f32 0.015625, %v1061_v38  ;;  %v6495_v35 = vld [vmem:[%s11170_s7 + $0xa8] sm:$0xff] }
 0x38f   : > { %v7983_v38 = vpack.c.bf16 %v6495_v35, %v6494_v34 }
 0x390   : > { %v8504_v42 = vpop.eup %8503  ;;  %v1077_v43 = vadd.f32 1e-05, %v1071_v40  ;;  %v6496_v40 = vld [vmem:[%s11170_s7 + $0xb0] sm:$0xff] }
 0x391   : > { %v1064_v44 = vpop.xlane.xlu0 %1063  ;;  %v1086_v46 = vmul.f32 %v8504_v42, %v9125_v37  ;;  %v6485_v37 = vld [vmem:[%s11170_s7 + $0x58] sm:$0xff] }
 0x392   : > { %8509 = vrsqrt.f32 %v1077_v43  ;;  %v1072_v50 = vmul.f32 0.015625, %v1064_v44  ;;  %v7963_v5 = vpack.c.bf16 %v6485_v37, %v6484_v62  ;;  %v8779_v43 = vmov 0.0  }
 0x393   : > { %v1096_v51 = vmul.f32 %v1095_v39, %v1086_v46  ;;  %7448 = vmatprep.mubr.msk.f32.mxu0 %vm8778_vm1, %v8779_v43 }
 0x394   : > { %v8506_v52 = vpop.eup %8505  ;;  %v1078_v55 = vadd.f32 1e-05, %v1072_v50 }
 0x395   : > { %v1067_v56 = vpop.xlane.xlu1 %1066  ;;  %v9200_v58 = vadd.f32 %v1105_v48, %v1096_v51  ;;  %v1087_v59 = vmul.f32 %v8506_v52, %v9130_v41  ;;  %v9281_v51 = vsub.s32 3, %v9083_v49 }
 0x396   : > { %8511 = vrsqrt.f32 %v1078_v55  ;;  %v1073_v61 = vmul.f32 0.015625, %v1067_v56 }
 0x397   : > { %7338 = vmatprep.mubr.msk.f32.mxu1 %vm702_vm0, %v9200_v58  ;;  %v1097_v63 = vmul.f32 %v1095_v39, %v1087_v59  ;;  %v1232_v56 = vrot.slane %v9193_v36, %v9281_v51 }
 0x398   : > { %v8508_v0 = vpop.eup %8507  ;;  %v1079_v2 = vadd.f32 1e-05, %v1073_v61 }
 0x399   : > { %v9211_v4 = vadd.f32 %v1105_v48, %v1097_v63  ;;  %v1088_v41 = vmul.f32 %v8508_v0, %v9136_v47 }
 0x39a   : > { %8513 = vrsqrt.f32 %v1079_v2 }
 0x39b   : > { %7339 = vmatmul.mubr.msk.f32.vlgmr.msra.gmra.mrb[0].mxu1 %vm702_vm0, %v9211_v4  ;;  %v1098_v9 = vmul.f32 %v1095_v39, %v1088_v41 }
 0x39c   : > { %v8510_v10 = vpop.eup %8509  ;;  %7962 = vmatpush3.bf16.msra.mxu1 %v7959_v23 }
 0x39d   : > { %v1108_v11 = vadd.f32 %v1105_v48, %v1098_v9  ;;  %7964 = vmatprep.subr.bf16.mxu1 %v7963_v5  ;;  %v1089_v47 = vmul.f32 %v8510_v10, %v9142_v54  ;;  %v6490_v54 = vld [vmem:[%s11170_s7 + $0x80] sm:$0xff] }
 0x39e   : > { %v7975_v28 = vpack.c.bf16 %v6491_v22, %v6490_v54 }
 0x39f   : > { %7341 = vmatprep.mubr.msk.f32.mxu1 %vm702_vm0, %v1108_v11  ;;  %v1099_v16 = vmul.f32 %v1095_v39, %v1089_v47 }
 0x3a0   : > { %v8512_v17 = vpop.eup %8511  ;;  %7966 = vmatpush3.bf16.msra.mxu1 %v7963_v5 }
 0x3a1   : > { %v1109_v18 = vadd.f32 %v1105_v48, %v1099_v16  ;;  %7968 = vmatprep.subr.bf16.mxu1 %v7967_v12  ;;  %v1090_v20 = vmul.f32 %v8512_v17, %v9148_v60 }
 0x3a3   : > { %7342 = vmatmul.mubr.msk.f32.gmra.mrb[2].mxu1 %vm702_vm0, %v1109_v18  ;;  %v1100_v23 = vmul.f32 %v1095_v39, %v1090_v20 }
 0x3a4   : > { %v8514_v24 = vpop.eup %8513  ;;  %7970 = vmatpush3.bf16.msra.mxu1 %v7967_v12  ;;  %v1331_v12 = vrot.slane %v9193_v36, %v1330_v6 }
 0x3a5   : > { %v1110_v26 = vadd.f32 %v1105_v48, %v1100_v23  ;;  %7972 = vmatprep.subr.bf16.mxu1 %v7971_v21  ;;  %v1091_v27 = vmul.f32 %v8514_v24, %v9154_v1  ;;  %v7979_v1 = vpack.c.bf16 %v6493_v32, %v6492_v31 }
 0x3a7   : > { %7344 = vmatprep.mubr.msk.f32.mxu1 %vm702_vm0, %v1110_v26  ;;  %v1101_v60 = vmul.f32 %v1095_v39, %v1091_v27  ;;  %v6497_v39 = vld [vmem:[%s11170_s7 + $0xb8] sm:$0xff] }
 0x3a8   : > { %7974 = vmatpush3.bf16.msra.mxu1 %v7971_v21  ;;  %v7987_v42 = vpack.c.bf16 %v6497_v39, %v6496_v40  ;;  %v8780_v39 = vmov -1e+09  }
 0x3a9   : > { %v1111_v29 = vadd.f32 %v1105_v48, %v1101_v60  ;;  %7976 = vmatprep.subr.bf16.mxu1 %v7975_v28 }
 0x3ab   : > { %7345 = vmatmul.mubr.msk.f32.gmra.mrb[4].mxu1 %vm702_vm0, %v1111_v29 }
 0x3ac   : > { %7363 = vmatprep.mubr.msk.f32.mxu1 %vm702_vm0, %v9200_v58 }
 0x3af   : > { %7364 = vmatmul.mubr.msk.f32.vlgmr.msra.gmra.mrb[6].mxu1 %vm702_vm0, %v9211_v4 }
 0x3b0   : > { %7978 = vmatpush3.bf16.msra.mxu1 %v7975_v28  ;;  %7366 = vmatprep.mubr.msk.f32.mxu1 %vm702_vm0, %v1108_v11 }
 0x3b1   : > { %7980 = vmatprep.subr.bf16.mxu1 %v7979_v1 }
 0x3b3   : > { %7367 = vmatmul.mubr.msk.f32.gmra.mrb[8].mxu1 %vm702_vm0, %v1109_v18 }
 0x3b4   : > { %7982 = vmatpush3.bf16.msra.mxu1 %v7979_v1  ;;  %7369 = vmatprep.mubr.msk.f32.mxu1 %vm702_vm0, %v1110_v26 }
 0x3b5   : > { %7984 = vmatprep.subr.bf16.mxu1 %v7983_v38 }
 0x3b7   : > { %7370 = vmatmul.mubr.msk.f32.gmra.mrb[10].mxu1 %vm702_vm0, %v1111_v29 }
 0x3b8   : > { %7986 = vmatpush3.bf16.msra.mxu1 %v7983_v38  ;;  %7388 = vmatprep.mubr.msk.f32.mxu1 %vm702_vm0, %v9200_v58  ;;  %v926_v38 = vand.u32 127, %v905_v45 }
 0x3b9   : > { %7988 = vmatprep.subr.bf16.mxu1 %v7987_v42 }
 0x3ba   : > { %vm927_vm3 = vcmp.lt.s32.totalorder %v926_v38, 17 }
 0x3bc   : > { %7990 = vmatpush3.bf16.msra.mxu1 %v7987_v42  ;;  %v9334_v42 = vsel %vm927_vm3, 0.0, %v8780_v39 }
 0x3bd   : > { %7991 = vmatprep.subr.bf16.mxu1 %v8777_v3 }
 0x3bf   : > { %7389 = vmatmul.mubr.msk.f32.vlgmr.msra.gmra.mrb[12].mxu1 %vm702_vm0, %v9211_v4  ;;  %v9296_v4 = vsub.s32 2, %v9083_v49 }
 0x3c0   : > { %7391 = vmatprep.mubr.msk.f32.mxu1 %vm702_vm0, %v1108_v11 }
 0x3c1   : > { %v1115_v10 = vrot.slane %v9193_v36, %v9296_v4 }
 0x3c3   : > { %7392 = vmatmul.mubr.msk.f32.gmra.mrb[14].mxu1 %vm702_vm0, %v1109_v18 }
 0x3c4   : > { %7394 = vmatprep.mubr.msk.f32.mxu1 %vm702_vm0, %v1110_v26 }
 0x3c7   : > { %7395 = vmatmul.mubr.msk.f32.gmra.mrb[16].mxu1 %vm702_vm0, %v1111_v29 }
 0x3c8   : > { %7403 = vmatprep.mubr.msk.f32.mxu1 %vm8778_vm1, %v8779_v43 }
 0x46e   : > { %v7340_v44 = vpop.f32.mrb[0].mxu1 }
 0x46f   : > { %v1200_v46 = vpop.f32.mrb[1].mxu1  ;;  %v1206_v20 = vadd.f32 %v7340_v44, %v1115_v10 }
 0x470   : > { %v1201_v13 = vadd.f32 %v1200_v46, %v1115_v10 }
 0x476   : > { %v7343_v48 = vpop.f32.mrb[2].mxu1 }
 0x477   : > { %v1210_v50 = vpop.f32.mrb[3].mxu1  ;;  %v1216_v29 = vadd.f32 %v7343_v48, %v1115_v10 }
 0x478   : > { %v1211_v23 = vadd.f32 %v1210_v50, %v1115_v10 }
 0x47e   : > { %v9283_v52 = vpop.f32.mrb[4].mxu1 }
 0x47f   : > { %v1220_v55 = vpop.f32.mrb[5].mxu1  ;;  %v1226_v35 = vadd.f32 %v9283_v52, %v1115_v10 }
 0x480   : > { %v1221_v32 = vadd.f32 %v1220_v55, %v1115_v10 }
 0x482   : > { %v7365_v58 = vpop.f32.mrb[6].mxu1 }
 0x483   : > { %v1305_v59 = vadd.f32 %v7365_v58, %v1232_v56  ;;  %v1299_v61 = vpop.f32.mrb[7].mxu1 }
 0x484   : > { %v1300_v62 = vadd.f32 %v1299_v61, %v1232_v56 }
 0x486   : > { %v7992_v63 = vpack.c.bf16 %v1305_v59, %v1300_v62  ;;  %v7368_v0 = vpop.f32.mrb[8].mxu1 }
 0x487   : > { %v1309_v2 = vpop.f32.mrb[9].mxu1  ;;  %v1315_v8 = vadd.f32 %v7368_v0, %v1232_v56 }
 0x488   : > { %7994 = vmatpush3.bf16.xpose.msk.msra.mxu1 %vm9289_vm2, %v7992_v63  ;;  %v1310_v11 = vadd.f32 %v1309_v2, %v1232_v56 }
 0x489   : > { %7401 = vmatprep.subr.mxu1 %v8779_v43 }
 0x48a   : > { %v7371_v41 = vpop.f32.mrb[10].mxu1 }
 0x48b   : > { %v1319_v5 = vpop.f32.mrb[11].mxu1  ;;  %v1325_v24 = vadd.f32 %v7371_v41, %v1232_v56 }
 0x48c   : > { %v1320_v9 = vadd.f32 %v1319_v5, %v1232_v56 }
 0x48e   : > { %v7996_v47 = vpack.c.bf16 %v1320_v9, %v1315_v8 }
 0x490   : > { %7402 = vmatpush3.xpose.msk.msra.mxu1 %vm702_vm0, %v1310_v11 }
 0x491   : > { %7995 = vmatprep.subr.bf16.mxu1 %v8777_v3 }
 0x492   : > { %v7390_v15 = vpop.f32.mrb[12].mxu1 }
 0x493   : > { %v1404_v16 = vadd.f32 %v7390_v15, %v1331_v12  ;;  %v1398_v17 = vpop.f32.mrb[13].mxu1  ;;  %7404 = vmatmul.mubr.msk.f32.vlgmr.msra.gmra.mrb[18].mxu1 %vm702_vm0, %v1201_v13 }
 0x494   : > { %v1399_v18 = vadd.f32 %v1398_v17, %v1331_v12  ;;  %7998 = vmatpush3.bf16.xpose.msk.msra.mxu1 %vm9289_vm2, %v7996_v47  ;;  %7406 = vmatprep.mubr.msk.f32.mxu1 %vm8778_vm1, %v8779_v43 }
 0x495   : > { %7416 = vmatprep.subr.mxu1 %v8779_v43 }
 0x496   : > { %v8000_v21 = vpack.c.bf16 %v1404_v16, %v1399_v18  ;;  %v7393_v54 = vpop.f32.mrb[14].mxu1 }
 0x497   : > { %v1408_v22 = vpop.f32.mrb[15].mxu1  ;;  %7407 = vmatmul.mubr.msk.f32.gmra.mrb[20].mxu1 %vm702_vm0, %v1206_v20  ;;  %v1414_v28 = vadd.f32 %v7393_v54, %v1331_v12 }
 0x498   : > { %7409 = vmatprep.mubr.msk.f32.mxu1 %vm8778_vm1, %v8779_v43  ;;  %v1409_v1 = vadd.f32 %v1408_v22, %v1331_v12 }
 0x49a   : > { %v7396_v26 = vpop.f32.mrb[16].mxu1 }
 0x49b   : > { %v1418_v27 = vpop.f32.mrb[17].mxu1  ;;  %7410 = vmatmul.mubr.msk.f32.gmra.mrb[22].mxu1 %vm702_vm0, %v1211_v23  ;;  %v1424_v34 = vadd.f32 %v7396_v26, %v1331_v12 }
 0x49c   : > { %v1419_v60 = vadd.f32 %v1418_v27, %v1331_v12  ;;  %7417 = vmatpush3.xpose.msk.msra.mxu1 %vm702_vm0, %v1325_v24  ;;  %7418 = vmatprep.mubr.msk.f32.mxu1 %vm8778_vm1, %v8779_v43 }
 0x49d   : > { %7999 = vmatprep.subr.bf16.mxu1 %v8777_v3 }
 0x49e   : > { %v8003_v31 = vpack.c.bf16 %v1419_v60, %v1414_v28 }
 0x49f   : > { %7419 = vmatmul.mubr.msk.f32.vlgmr.msra.gmra.mrb[24].mxu1 %vm702_vm0, %v1216_v29 }
 0x4a0   : > { %8004 = vmatpush3.bf16.msra.mxu0 %v8003_v31  ;;  %8001 = vmatpush3.bf16.msra.mxu1 %v8000_v21 }
 0x4a1   : > { %7421 = vmatprep.mubr.msk.f32.mxu1 %vm8778_vm1, %v8779_v43  ;;  %7446 = vmatprep.subr.mxu0 %v8779_v43 }
 0x4a2   : > { %7431 = vmatprep.subr.mxu1 %v8779_v43 }
 0x4a3   : > { %7422 = vmatmul.mubr.msk.f32.gmra.mrb[26].mxu1 %vm702_vm0, %v1221_v32 }
 0x4a4   : > { %7447 = vmatpush3.msra.mxu0 %v1424_v34  ;;  %7432 = vmatpush3.msra.mxu1 %v1409_v1 }
 0x4a5   : > { %7424 = vmatprep.mubr.msk.f32.mxu1 %vm8778_vm1, %v8779_v43 }
 0x4a7   : > { %7425 = vmatmul.mubr.msk.f32.gmra.mrb[28].mxu1 %vm702_vm0, %v1226_v35 }
 0x4a8   : > { %7433 = vmatprep.mubr.msk.f32.mxu1 %vm8778_vm1, %v8779_v43 }
 0x566   : > { %v1511_v40 = vpop.f32.mrb[18].mxu1 }
 0x567   : > { %v1623_v44 = vmul.f32 0.125, %v1511_v40  ;;  %v7405_v46 = vpop.f32.mrb[19].mxu1 }
 0x569   : > { %v1629_v48 = vadd.f32 %v1623_v44, %v9334_v42 }
 0x56a   : > { %v1516_v50 = vpop.f32.mrb[20].mxu1 }
 0x56b   : > { %v1624_v52 = vmul.f32 0.125, %v1516_v50  ;;  %v7408_v55 = vpop.f32.mrb[21].mxu1  ;;  %v1636_v56 = vsel %vm1635_vm4, %v1629_v48, -inf }
 0x56c   : > { %1637 = vmax.xlane.f32.xlu0 %v1636_v56 }
 0x56d   : > { %v1630_v58 = vadd.f32 %v1624_v52, %v9334_v42 }
 0x56e   : > { %v1521_v59 = vpop.f32.mrb[22].mxu1 }
 0x56f   : > { %v1625_v45 = vmul.f32 0.125, %v1521_v59  ;;  %v7411_v61 = vpop.f32.mrb[23].mxu1  ;;  %v1639_v62 = vsel %vm1635_vm4, %v1630_v58, -inf }
 0x570   : > { %1640 = vmax.xlane.f32.xlu1 %v1639_v62 }
 0x571   : > { %v1631_v63 = vadd.f32 %v1625_v45, %v9334_v42 }
 0x572   : > { %v1609_v0 = vpop.f32.mrb[24].mxu1 }
 0x573   : > { %v1626_v2 = vmul.f32 0.125, %v1609_v0  ;;  %v7420_v41 = vpop.f32.mrb[25].mxu1  ;;  %v1642_v5 = vsel %vm1635_vm4, %v1631_v63, -inf  ;;  %v959_v0 = vld [vmem:[%s11132_s8 + $0x8] sm:$0xff] }
 0x574   : > { %1643 = vmax.xlane.f32.xlu0 %v1642_v5 }
 0x575   : > { %v1632_v8 = vadd.f32 %v1626_v2, %v9334_v42 }
 0x576   : > { %v1614_v9 = vpop.f32.mrb[26].mxu1 }
 0x577   : > { %v1627_v10 = vmul.f32 0.125, %v1614_v9  ;;  %v7423_v11 = vpop.f32.mrb[27].mxu1  ;;  %v1645_v47 = vsel %vm1635_vm4, %v1632_v8, -inf  ;;  %v960_v9 = vld [vmem:[%s11132_s8 + $0x10] sm:$0xff] }
 0x578   : > { %1646 = vmax.xlane.f32.xlu1 %v1645_v47 }
 0x579   : > { %v1633_v12 = vadd.f32 %v1627_v10, %v9334_v42  ;;  %v961_v10 = vld [vmem:[%s11132_s8 + $0x18] sm:$0xff] }
 0x57a   : > { %v1619_v13 = vpop.f32.mrb[28].mxu1 }
 0x57b   : > { %v1628_v15 = vmul.f32 0.125, %v1619_v13  ;;  %v7426_v16 = vpop.f32.mrb[29].mxu1  ;;  %v1648_v17 = vsel %vm1635_vm4, %v1633_v12, -inf  ;;  %v8009_v13 = vpack.c.bf16 %v961_v10, %v960_v9 }
 0x57c   : > { %1649 = vmax.xlane.f32.xlu0 %v1648_v17  ;;  %v963_v16 = vld [vmem:[%s11132_s8 + $0x28] sm:$0xff] }
 0x57d   : > { %v1634_v18 = vadd.f32 %v1628_v15, %v9334_v42  ;;  %v962_v15 = vld [vmem:[%s11132_s8 + $0x20] sm:$0xff] }
 0x57f   : > { %v1651_v20 = vsel %vm1635_vm4, %v1634_v18, -inf }
 0x580   : > { %1652 = vmax.xlane.f32.xlu1 %v1651_v20 }
 0x5f9   : > { %v1638_v21 = vpop.xlane.xlu0 %1637 }
 0x5fa   : > { %v1654_v54 = vsub.f32 %v1629_v48, %v1638_v21  ;;  %v8013_v21 = vpack.c.bf16 %v963_v16, %v962_v15 }
 0x5fc   : > { %v1660_v22 = vmul.f32 1.442695, %v1654_v54 }
 0x5fd   : > { %v1641_v23 = vpop.xlane.xlu1 %1640 }
 0x5fe   : > { %8515 = vpow2.f32 %v1660_v22  ;;  %v1655_v24 = vsub.f32 %v1630_v58, %v1641_v23 }
 0x600   : > { %v1662_v26 = vmul.f32 1.442695, %v1655_v24 }
 0x601   : > { %v1644_v27 = vpop.xlane.xlu0 %1643 }
 0x602   : > { %8517 = vpow2.f32 %v1662_v26  ;;  %v1656_v28 = vsub.f32 %v1631_v63, %v1644_v27  ;;  %v958_v63 = vld [vmem:[%s11132_s8] sm:$0xff] }
 0x603   : > { %v8005_v2 = vpack.c.bf16 %v959_v0, %v958_v63 }
 0x604   : > { %v1664_v60 = vmul.f32 1.442695, %v1656_v28 }
 0x605   : > { %v1647_v29 = vpop.xlane.xlu1 %1646  ;;  %8006 = vmatprep.subr.bf16.mxu1 %v8005_v2 }
 0x606   : > { %8519 = vpow2.f32 %v1664_v60  ;;  %v1657_v31 = vsub.f32 %v1632_v8, %v1647_v29 }
 0x608   : > { %v8516_v32 = vpop.eup %8515  ;;  %v1666_v1 = vmul.f32 1.442695, %v1657_v31  ;;  %v964_v31 = vld [vmem:[%s11132_s8 + $0x30] sm:$0xff] }
 0x609   : > { %v1650_v34 = vpop.xlane.xlu0 %1649  ;;  %v1672_v35 = vsel %vm1635_vm4, %v8516_v32, 0.0 }
 0x60a   : > { %8521 = vpow2.f32 %v1666_v1  ;;  %v1658_v38 = vsub.f32 %v1633_v12, %v1650_v34  ;;  %1673 = vadd.xlane.f32.xlu0 %v1672_v35 }
 0x60c   : > { %v8518_v40 = vpop.eup %8517  ;;  %v1668_v39 = vmul.f32 1.442695, %v1658_v38 }
 0x60d   : > { %v1653_v44 = vpop.xlane.xlu1 %1652  ;;  %v1675_v46 = vsel %vm1635_vm4, %v8518_v40, 0.0 }
 0x60e   : > { %8523 = vpow2.f32 %v1668_v39  ;;  %v1659_v48 = vsub.f32 %v1634_v18, %v1653_v44  ;;  %1676 = vadd.xlane.f32.xlu1 %v1675_v46 }
 0x610   : > { %v8520_v50 = vpop.eup %8519  ;;  %v1670_v52 = vmul.f32 1.442695, %v1659_v48 }
 0x611   : > { %v1678_v55 = vsel %vm1635_vm4, %v8520_v50, 0.0 }
 0x612   : > { %8525 = vpow2.f32 %v1670_v52  ;;  %1679 = vadd.xlane.f32.xlu0 %v1678_v55 }
 0x614   : > { %v8522_v56 = vpop.eup %8521 }
 0x615   : > { %v1681_v58 = vsel %vm1635_vm4, %v8522_v56, 0.0 }
 0x616   : > { %1682 = vadd.xlane.f32.xlu1 %v1681_v58  ;;  %v2001_v58 = vsub.s32 5, %v9083_v49 }
 0x618   : > { %v8524_v59 = vpop.eup %8523 }
 0x619   : > { %v1684_v45 = vsel %vm1635_vm4, %v8524_v59, 0.0 }
 0x61a   : > { %1685 = vadd.xlane.f32.xlu0 %v1684_v45 }
 0x61c   : > { %v8526_v61 = vpop.eup %8525 }
 0x61d   : > { %v1687_v62 = vsel %vm1635_vm4, %v8526_v61, 0.0 }
 0x61e   : > { %1688 = vadd.xlane.f32.xlu1 %v1687_v62 }
 0x697   : > { %v1674_v41 = vpop.xlane.xlu0 %1673 }
 0x698   : > { %8527 = vrcp.f32 %v1674_v41 }
 0x69b   : > { %v1677_v5 = vpop.xlane.xlu1 %1676 }
 0x69c   : > { %8529 = vrcp.f32 %v1677_v5 }
 0x69f   : > { %v1680_v8 = vpop.xlane.xlu0 %1679 }
 0x6a0   : > { %8531 = vrcp.f32 %v1680_v8 }
 0x6a2   : > { %v8528_v11 = vpop.eup %8527 }
 0x6a3   : > { %v1696_v47 = vmul.f32 %v8528_v11, %v8516_v32  ;;  %v1683_v12 = vpop.xlane.xlu1 %1682  ;;  %v965_v32 = vld [vmem:[%s11132_s8 + $0x38] sm:$0xff] }
 0x6a4   : > { %8533 = vrcp.f32 %v1683_v12  ;;  %v8017_v1 = vpack.c.bf16 %v965_v32, %v964_v31 }
 0x6a5   : > { %7434 = vmatmul.mubr.msk.f32.vlgmr.msra.gmra.mrb[30].mxu1 %vm1635_vm4, %v1696_v47 }
 0x6a6   : > { %v8530_v17 = vpop.eup %8529  ;;  %7436 = vmatprep.mubr.msk.f32.mxu1 %vm8778_vm1, %v8779_v43  ;;  %8008 = vmatpush3.bf16.msra.mxu1 %v8005_v2 }
 0x6a7   : > { %v1686_v18 = vpop.xlane.xlu0 %1685  ;;  %v1697_v20 = vmul.f32 %v8530_v17, %v8518_v40  ;;  %8010 = vmatprep.subr.bf16.mxu1 %v8009_v13 }
 0x6a8   : > { %8535 = vrcp.f32 %v1686_v18 }
 0x6a9   : > { %7437 = vmatmul.mubr.msk.f32.gmra.mrb[32].mxu1 %vm1635_vm4, %v1697_v20 }
 0x6aa   : > { %v8532_v54 = vpop.eup %8531  ;;  %7439 = vmatprep.mubr.msk.f32.mxu1 %vm8778_vm1, %v8779_v43  ;;  %8012 = vmatpush3.bf16.msra.mxu1 %v8009_v13 }
 0x6ab   : > { %v1689_v22 = vpop.xlane.xlu1 %1688  ;;  %v1698_v23 = vmul.f32 %v8532_v54, %v8520_v50  ;;  %8014 = vmatprep.subr.bf16.mxu1 %v8013_v21 }
 0x6ac   : > { %8537 = vrcp.f32 %v1689_v22 }
 0x6ad   : > { %7440 = vmatmul.mubr.msk.f32.gmra.mrb[34].mxu1 %vm1635_vm4, %v1698_v23 }
 0x6ae   : > { %v8534_v24 = vpop.eup %8533  ;;  %8016 = vmatpush3.bf16.msra.mxu1 %v8013_v21 }
 0x6af   : > { %v1699_v26 = vmul.f32 %v8534_v24, %v8522_v56  ;;  %8018 = vmatprep.subr.bf16.mxu1 %v8017_v1 }
 0x6b1   : > { %7449 = vmatmul.mubr.msk.f32.vlgmr.msra.gmra.mrb[12].mxu0 %vm1635_vm4, %v1699_v26 }
 0x6b2   : > { %v8536_v27 = vpop.eup %8535  ;;  %7451 = vmatprep.mubr.msk.f32.mxu0 %vm8778_vm1, %v8779_v43  ;;  %8020 = vmatpush3.bf16.msra.mxu1 %v8017_v1 }
 0x6b3   : > { %v1700_v28 = vmul.f32 %v8536_v27, %v8524_v59  ;;  %v2002_v59 = vrot.slane %v9193_v36, %v2001_v58 }
 0x6b5   : > { %7452 = vmatmul.mubr.msk.f32.gmra.mrb[14].mxu0 %vm1635_vm4, %v1700_v28 }
 0x6b6   : > { %v8538_v60 = vpop.eup %8537  ;;  %7454 = vmatprep.mubr.msk.f32.mxu0 %vm8778_vm1, %v8779_v43 }
 0x6b7   : > { %v1701_v29 = vmul.f32 %v8538_v60, %v8526_v61 }
 0x6b9   : > { %7455 = vmatmul.mubr.msk.f32.gmra.mrb[16].mxu0 %vm1635_vm4, %v1701_v29 }
 0x6ba   : > { %2200 = vmatprep.mubr.f32.mxu0 %v8779_v43 }
 0x778   : > { %v1777_v34 = vpop.f32.mrb[30].mxu1 }
 0x779   : > { %v7435_v35 = vpop.f32.mrb[31].mxu1  ;;  %7473 = vmatprep.mubr.msk.f32.mxu1 %vm702_vm0, %v1777_v34 }
 0x77c   : > { %v1782_v38 = vpop.f32.mrb[32].mxu1 }
 0x77d   : > { %v7438_v40 = vpop.f32.mrb[33].mxu1  ;;  %7474 = vmatmul.mubr.msk.f32.vlgmr.msra.gmra.mrb[36].mxu1 %vm702_vm0, %v1782_v38 }
 0x780   : > { %v1787_v39 = vpop.f32.mrb[34].mxu1 }
 0x781   : > { %v7441_v44 = vpop.f32.mrb[35].mxu1  ;;  %7476 = vmatprep.mubr.msk.f32.mxu1 %vm702_vm0, %v1787_v39 }
 0x784   : > { %v1866_v46 = vpop.f32.mrb[12].mxu0 }
 0x785   : > { %v7450_v48 = vpop.f32.mrb[13].mxu0  ;;  %7477 = vmatmul.mubr.msk.f32.gmra.mrb[38].mxu1 %vm702_vm0, %v1866_v46 }
 0x788   : > { %v1871_v50 = vpop.f32.mrb[14].mxu0 }
 0x789   : > { %v7453_v52 = vpop.f32.mrb[15].mxu0  ;;  %7479 = vmatprep.mubr.msk.f32.mxu1 %vm702_vm0, %v1871_v50 }
 0x78c   : > { %v1876_v55 = vpop.f32.mrb[16].mxu0 }
 0x78d   : > { %v7456_v56 = vpop.f32.mrb[17].mxu0  ;;  %7480 = vmatmul.mubr.msk.f32.gmra.mrb[40].mxu1 %vm702_vm0, %v1876_v55 }
 0x850   : > { %v7475_v45 = vpop.f32.mrb[36].mxu1 }
 0x851   : > { %v1994_v61 = vadd.f32 %v7475_v45, %v9100_v14  ;;  %v1964_v62 = vpop.f32.mrb[37].mxu1 }
 0x852   : > { %v1993_v63 = vadd.f32 %v1964_v62, %v9096_v7  ;;  %v967_v62 = vld [vmem:[%s11133_s9 + $0x8] sm:$0xff] }
 0x853   : > { %v9405_v0 = vadd.f32 %v2002_v59, %v1994_v61 }
 0x854   : > { %v9407_v2 = vadd.f32 %v2002_v59, %v1993_v63  ;;  %v969_v63 = vld [vmem:[%s11133_s9 + $0x18] sm:$0xff] }
 0x855   : > { %v2012_v41 = vsel %vm702_vm0, %v9405_v0, 0.0 }
 0x856   : > { %2013 = vadd.xlane.f32.xlu1 %v2012_v41  ;;  %v2009_v5 = vsel %vm702_vm0, %v9407_v2, 0.0  ;;  %v8021_v41 = vpack.c.bf16 %v969_v63, %v967_v62 }
 0x857   : > { %2010 = vadd.xlane.f32.xlu0 %v2009_v5  ;;  %v966_v5 = vld [vmem:[%s11133_s9] sm:$0xff] }
 0x858   : > { %v7478_v8 = vpop.f32.mrb[38].mxu1  ;;  %8022 = vmatprep.subr.bf16.mxu0 %v8021_v41 }
 0x859   : > { %v1996_v9 = vadd.f32 %v7478_v8, %v9110_v25  ;;  %v1974_v10 = vpop.f32.mrb[39].mxu1  ;;  %v968_v8 = vld [vmem:[%s11133_s9 + $0x10] sm:$0xff] }
 0x85a   : > { %v1995_v14 = vadd.f32 %v1974_v10, %v9105_v19  ;;  %v971_v10 = vld [vmem:[%s11133_s9 + $0x28] sm:$0xff] }
 0x85b   : > { %v9415_v11 = vadd.f32 %v2002_v59, %v1996_v9  ;;  %v8023_v9 = vpack.c.bf16 %v968_v8, %v966_v5 }
 0x85c   : > { %v9417_v7 = vadd.f32 %v2002_v59, %v1995_v14  ;;  %v973_v14 = vld [vmem:[%s11133_s9 + $0x38] sm:$0xff] }
 0x85d   : > { %v2018_v47 = vsel %vm702_vm0, %v9415_v11, 0.0  ;;  %8024 = vmatpush1.bf16.msra.mxu0 %v8023_v9 }
 0x85e   : > { %2019 = vadd.xlane.f32.xlu1 %v2018_v47  ;;  %v2015_v12 = vsel %vm702_vm0, %v9417_v7, 0.0  ;;  %v8025_v47 = vpack.c.bf16 %v973_v14, %v971_v10 }
 0x85f   : > { %2016 = vadd.xlane.f32.xlu0 %v2015_v12  ;;  %v970_v12 = vld [vmem:[%s11133_s9 + $0x20] sm:$0xff] }
 0x860   : > { %v7481_v13 = vpop.f32.mrb[40].mxu1  ;;  %8026 = vmatprep.subr.bf16.mxu0 %v8025_v47 }
 0x861   : > { %v1998_v15 = vadd.f32 %v7481_v13, %v9120_v33  ;;  %v1984_v16 = vpop.f32.mrb[41].mxu1  ;;  %v972_v13 = vld [vmem:[%s11133_s9 + $0x30] sm:$0xff] }
 0x862   : > { %v1997_v25 = vadd.f32 %v1984_v16, %v9115_v30  ;;  %v975_v16 = vld [vmem:[%s11133_s9 + $0x48] sm:$0xff] }
 0x863   : > { %v9425_v17 = vadd.f32 %v2002_v59, %v1998_v15  ;;  %v8027_v15 = vpack.c.bf16 %v972_v13, %v970_v12 }
 0x864   : > { %v9427_v19 = vadd.f32 %v2002_v59, %v1997_v25  ;;  %v977_v25 = vld [vmem:[%s11133_s9 + $0x58] sm:$0xff] }
 0x865   : > { %v2024_v18 = vsel %vm702_vm0, %v9425_v17, 0.0  ;;  %8028 = vmatpush1.bf16.msra.mxu0 %v8027_v15 }
 0x866   : > { %2025 = vadd.xlane.f32.xlu1 %v2024_v18  ;;  %v2021_v20 = vsel %vm702_vm0, %v9427_v19, 0.0  ;;  %v8029_v18 = vpack.c.bf16 %v977_v25, %v975_v16 }
 0x867   : > { %2022 = vadd.xlane.f32.xlu0 %v2021_v20  ;;  %v974_v20 = vld [vmem:[%s11133_s9 + $0x40] sm:$0xff] }
 0x868   : > { %8030 = vmatprep.subr.bf16.mxu0 %v8029_v18 }
 0x8e3   : > { %v2014_v21 = vpop.xlane.xlu1 %2013 }
 0x8e4   : > { %v2028_v54 = vmul.f32 0.015625, %v2014_v21  ;;  %v2011_v22 = vpop.xlane.xlu0 %2010  ;;  %v976_v21 = vld [vmem:[%s11133_s9 + $0x50] sm:$0xff] }
 0x8e5   : > { %v2027_v23 = vmul.f32 0.015625, %v2011_v22  ;;  %v979_v22 = vld [vmem:[%s11133_s9 + $0x68] sm:$0xff] }
 0x8e6   : > { %v9434_v33 = vsub.f32 %v9405_v0, %v2028_v54  ;;  %v8031_v54 = vpack.c.bf16 %v976_v21, %v974_v20 }
 0x8e7   : > { %v9437_v30 = vsub.f32 %v9407_v2, %v2027_v23  ;;  %v981_v23 = vld [vmem:[%s11133_s9 + $0x78] sm:$0xff] }
 0x8e8   : > { %v2040_v24 = vmul.f32 %v9434_v33, %v9434_v33  ;;  %8032 = vmatpush1.bf16.msra.mxu0 %v8031_v54 }
 0x8e9   : > { %v2039_v26 = vmul.f32 %v9437_v30, %v9437_v30 }
 0x8ea   : > { %v2048_v27 = vsel %vm702_vm0, %v2040_v24, 0.0  ;;  %v8033_v24 = vpack.c.bf16 %v981_v23, %v979_v22 }
 0x8eb   : > { %v2020_v28 = vpop.xlane.xlu1 %2019  ;;  %2049 = vadd.xlane.f32.xlu1 %v2048_v27  ;;  %v2045_v60 = vsel %vm702_vm0, %v2039_v26, 0.0  ;;  %v978_v26 = vld [vmem:[%s11133_s9 + $0x60] sm:$0xff]  ;;  %v980_v27 = vld [vmem:[%s11133_s9 + $0x70] sm:$0xff] }
 0x8ec   : > { %v2030_v29 = vmul.f32 0.015625, %v2020_v28  ;;  %v2017_v31 = vpop.xlane.xlu0 %2016  ;;  %2046 = vadd.xlane.f32.xlu0 %v2045_v60  ;;  %v8035_v28 = vpack.c.bf16 %v980_v27, %v978_v26  ;;  %8034 = vmatprep.subr.bf16.mxu0 %v8033_v24 }
 0x8ed   : > { %v2029_v32 = vmul.f32 0.015625, %v2017_v31 }
 0x8ee   : > { %v9446_v1 = vsub.f32 %v9415_v11, %v2030_v29  ;;  %8036 = vmatpush1.bf16.msra.mxu0 %v8035_v28 }
 0x8ef   : > { %v9449_v34 = vsub.f32 %v9417_v7, %v2029_v32 }
 0x8f0   : > { %v2042_v35 = vmul.f32 %v9446_v1, %v9446_v1 }
 0x8f1   : > { %v2041_v38 = vmul.f32 %v9449_v34, %v9449_v34 }
 0x8f2   : > { %v2054_v40 = vsel %vm702_vm0, %v2042_v35, 0.0 }
 0x8f3   : > { %2055 = vadd.xlane.f32.xlu1 %v2054_v40  ;;  %v2026_v39 = vpop.xlane.xlu1 %2025  ;;  %v2051_v44 = vsel %vm702_vm0, %v2041_v38, 0.0 }
 0x8f4   : > { %v2032_v46 = vmul.f32 0.015625, %v2026_v39  ;;  %2052 = vadd.xlane.f32.xlu0 %v2051_v44  ;;  %v2023_v48 = vpop.xlane.xlu0 %2022 }
 0x8f5   : > { %v2031_v50 = vmul.f32 0.015625, %v2023_v48  ;;  %v2089_v48 = vsub.s32 6, %v9083_v49 }
 0x8f6   : > { %v9458_v52 = vsub.f32 %v9425_v17, %v2032_v46 }
 0x8f7   : > { %v9461_v55 = vsub.f32 %v9427_v19, %v2031_v50 }
 0x8f8   : > { %v2044_v56 = vmul.f32 %v9458_v52, %v9458_v52 }
 0x8f9   : > { %v2043_v59 = vmul.f32 %v9461_v55, %v9461_v55 }
 0x8fa   : > { %v2060_v45 = vsel %vm702_vm0, %v2044_v56, 0.0 }
 0x8fb   : > { %2061 = vadd.xlane.f32.xlu1 %v2060_v45  ;;  %v2057_v61 = vsel %vm702_vm0, %v2043_v59, 0.0  ;;  %v2099_v59 = vsub.s32 7, %v9083_v49 }
 0x8fc   : > { %2058 = vadd.xlane.f32.xlu0 %v2057_v61  ;;  %v2090_v61 = vrot.slane %v9193_v36, %v2089_v48 }
 0x8fd   : > { %v2100_v41 = vrot.slane %v9193_v36, %v2099_v59 }
 0x978   : > { %v2050_v60 = vpop.xlane.xlu1 %2049 }
 0x979   : > { %v2064_v29 = vmul.f32 0.015625, %v2050_v60  ;;  %v2047_v31 = vpop.xlane.xlu0 %2046 }
 0x97a   : > { %v2063_v32 = vmul.f32 0.015625, %v2047_v31  ;;  %v982_v31 = vld [vmem:[%s11134_s10] sm:$0xff] }
 0x97b   : > { %v2070_v35 = vadd.f32 1e-05, %v2064_v29 }
 0x97c   : > { %v2069_v38 = vadd.f32 1e-05, %v2063_v32  ;;  %v983_v32 = vld [vmem:[%s11134_s10 + $0x8] sm:$0xff] }
 0x97d   : > { %8539 = vrsqrt.f32 %v2070_v35  ;;  %v8039_v35 = vpack.c.bf16 %v983_v32, %v982_v31  ;;  %v931_v31 = vld [vmem:[%s11174_s24] sm:$0x3] }
 0x97e   : > { %8541 = vrsqrt.f32 %v2069_v38  ;;  %v1000_v38 = vld [vmem:[%s11134_s10 + $0x90] sm:$0xff]  ;;  %v2111_v32 = vrot.slane %v931_v31, %v9086_v53 }
 0x980   : > { %v2056_v40 = vpop.xlane.xlu1 %2055 }
 0x981   : > { %v2066_v39 = vmul.f32 0.015625, %v2056_v40  ;;  %v2053_v44 = vpop.xlane.xlu0 %2052  ;;  %v1001_v40 = vld [vmem:[%s11134_s10 + $0x98] sm:$0xff] }
 0x982   : > { %v2065_v46 = vmul.f32 0.015625, %v2053_v44  ;;  %v984_v44 = vld [vmem:[%s11134_s10 + $0x10] sm:$0xff] }
 0x983   : > { %v2072_v50 = vadd.f32 1e-05, %v2066_v39  ;;  %v8041_v39 = vpack.c.bf16 %v1001_v40, %v1000_v38 }
 0x984   : > { %v2071_v56 = vadd.f32 1e-05, %v2065_v46  ;;  %v985_v46 = vld [vmem:[%s11134_s10 + $0x18] sm:$0xff] }
 0x985   : > { %8543 = vrsqrt.f32 %v2072_v50  ;;  %v8043_v50 = vpack.c.bf16 %v985_v46, %v984_v44 }
 0x986   : > { %8545 = vrsqrt.f32 %v2071_v56  ;;  %v1002_v56 = vld [vmem:[%s11134_s10 + $0xa0] sm:$0xff] }
 0x987   : > { %v8540_v45 = vpop.eup %8539 }
 0x988   : > { %v8542_v62 = vpop.eup %8541  ;;  %v2062_v63 = vpop.xlane.xlu1 %2061  ;;  %v2082_v10 = vmul.f32 %v8540_v45, %v9434_v33  ;;  %v1003_v45 = vld [vmem:[%s11134_s10 + $0xa8] sm:$0xff] }
 0x989   : > { %v2081_v5 = vmul.f32 %v8542_v62, %v9437_v30  ;;  %v2068_v8 = vmul.f32 0.015625, %v2062_v63  ;;  %v2059_v9 = vpop.xlane.xlu0 %2058  ;;  %v986_v62 = vld [vmem:[%s11134_s10 + $0x20] sm:$0xff]  ;;  %v987_v63 = vld [vmem:[%s11134_s10 + $0x28] sm:$0xff] }
 0x98a   : > { %v2067_v14 = vmul.f32 0.015625, %v2059_v9  ;;  %v2092_v16 = vmul.f32 %v2090_v61, %v2082_v10  ;;  %v988_v10 = vld [vmem:[%s11134_s10 + $0x30] sm:$0xff] }
 0x98b   : > { %v2091_v47 = vmul.f32 %v2090_v61, %v2081_v5  ;;  %v2074_v12 = vadd.f32 1e-05, %v2068_v8  ;;  %v1004_v5 = vld [vmem:[%s11134_s10 + $0xb0] sm:$0xff]  ;;  %v1005_v8 = vld [vmem:[%s11134_s10 + $0xb8] sm:$0xff] }
 0x98c   : > { %v2073_v13 = vadd.f32 1e-05, %v2067_v14  ;;  %v2102_v36 = vadd.f32 %v2100_v41, %v2092_v16  ;;  %v8049_v9 = vpack.c.bf16 %v1005_v8, %v1004_v5  ;;  %v989_v14 = vld [vmem:[%s11134_s10 + $0x38] sm:$0xff]  ;;  %v990_v16 = vld [vmem:[%s11134_s10 + $0x40] sm:$0xff] }
 0x98d   : > { %v2101_v15 = vadd.f32 %v2100_v41, %v2091_v47  ;;  %8547 = vrsqrt.f32 %v2074_v12  ;;  %v8051_v47 = vpack.c.bf16 %v989_v14, %v988_v10  ;;  %v1006_v12 = vld [vmem:[%s11134_s10 + $0xc0] sm:$0xff] }
 0x98e   : > { %8549 = vrsqrt.f32 %v2073_v13  ;;  %v1007_v13 = vld [vmem:[%s11134_s10 + $0xc8] sm:$0xff] }
 0x98f   : > { %v8544_v25 = vpop.eup %8543  ;;  %6540 = vmatmul.mubr.msk.f32.vlgmr.msra.gmra.mrb[18].mxu0 %vm702_vm0, %v2101_v15  ;;  %v8053_v15 = vpack.c.bf16 %v1007_v13, %v1006_v12 }
 0x990   : > { %v8546_v18 = vpop.eup %8545  ;;  %2206 = vmatprep.mubr.f32.mxu0 %v8779_v43  ;;  %v2084_v20 = vmul.f32 %v8544_v25, %v9446_v1  ;;  %v991_v25 = vld [vmem:[%s11134_s10 + $0x48] sm:$0xff] }
 0x991   : > { %v2083_v30 = vmul.f32 %v8546_v18, %v9449_v34  ;;  %v8055_v18 = vpack.c.bf16 %v991_v25, %v990_v16 }
 0x992   : > { %v2094_v54 = vmul.f32 %v2090_v61, %v2084_v20 }
 0x993   : > { %6541 = vmatmul.mubr.msk.f32.gmra.mrb[20].mxu0 %vm702_vm0, %v2102_v36  ;;  %v2093_v33 = vmul.f32 %v2090_v61, %v2083_v30  ;;  %v1008_v36 = vld [vmem:[%s11134_s10 + $0xd0] sm:$0xff]  ;;  %v1009_v30 = vld [vmem:[%s11134_s10 + $0xd8] sm:$0xff] }
 0x994   : > { %2212 = vmatprep.mubr.f32.mxu0 %v8779_v43  ;;  %v2104_v24 = vadd.f32 %v2100_v41, %v2094_v54  ;;  %v8057_v20 = vpack.c.bf16 %v1009_v30, %v1008_v36 }
 0x995   : > { %v2103_v21 = vadd.f32 %v2100_v41, %v2093_v33  ;;  %v992_v33 = vld [vmem:[%s11134_s10 + $0x50] sm:$0xff] }
 0x997   : > { %v8548_v22 = vpop.eup %8547  ;;  %6542 = vmatmul.mubr.msk.f32.gmra.mrb[22].mxu0 %vm702_vm0, %v2103_v21  ;;  %v993_v21 = vld [vmem:[%s11134_s10 + $0x58] sm:$0xff] }
 0x998   : > { %v8550_v23 = vpop.eup %8549  ;;  %2218 = vmatprep.mubr.f32.mxu0 %v8779_v43  ;;  %v2086_v34 = vmul.f32 %v8548_v22, %v9458_v52  ;;  %v999_v52 = vld [vmem:[%s11134_s10 + $0x88] sm:$0xff]  ;;  %v8059_v54 = vpack.c.bf16 %v993_v21, %v992_v33  ;;  %v1010_v22 = vld [vmem:[%s11134_s10 + $0xe0] sm:$0xff] }
 0x999   : > { %v2085_v26 = vmul.f32 %v8550_v23, %v9461_v55  ;;  %v998_v55 = vld [vmem:[%s11134_s10 + $0x80] sm:$0xff]  ;;  %v1011_v23 = vld [vmem:[%s11134_s10 + $0xe8] sm:$0xff] }
 0x99a   : > { %v2096_v28 = vmul.f32 %v2090_v61, %v2086_v34  ;;  %v8037_v29 = vpack.c.bf16 %v999_v52, %v998_v55  ;;  %v995_v34 = vld [vmem:[%s11134_s10 + $0x68] sm:$0xff]  ;;  %v996_v55 = vld [vmem:[%s11134_s10 + $0x70] sm:$0xff]  ;;  %v997_v52 = vld [vmem:[%s11134_s10 + $0x78] sm:$0xff] }
 0x99b   : > { %6543 = vmatmul.mubr.msk.f32.gmra.mrb[24].mxu0 %vm702_vm0, %v2104_v24  ;;  %v2095_v1 = vmul.f32 %v2090_v61, %v2085_v26  ;;  %v8045_v61 = vpack.c.bf16 %v1003_v45, %v1002_v56  ;;  %v8061_v24 = vpack.c.bf16 %v1011_v23, %v1010_v22  ;;  %v994_v26 = vld [vmem:[%s11134_s10 + $0x60] sm:$0xff] }
 0x99c   : > { %2224 = vmatprep.mubr.f32.mxu0 %v8779_v43  ;;  %v2106_v60 = vadd.f32 %v2100_v41, %v2096_v28  ;;  %8038 = vmatprep.subr.bf16.mxu1 %v8037_v29  ;;  %v1013_v28 = vld [vmem:[%s11134_s10 + $0xf8] sm:$0xff]  ;;  %v8067_v29 = vpack.c.bf16 %v997_v52, %v996_v55 }
 0x99d   : > { %v2105_v27 = vadd.f32 %v2100_v41, %v2095_v1  ;;  %8040 = vmatpush3.bf16.msra.mxu1 %v8039_v35  ;;  %v8047_v41 = vpack.c.bf16 %v987_v63, %v986_v62  ;;  %v8063_v1 = vpack.c.bf16 %v995_v34, %v994_v26  ;;  %v2115_v35 = vrot.slane %v931_v31, %v9092_v57 }
 0x99e   : > { %8042 = vmatprep.subr.bf16.mxu1 %v8041_v39 }
 0x99f   : > { %6544 = vmatmul.mubr.msk.f32.gmra.mrb[26].mxu0 %vm702_vm0, %v2105_v27  ;;  %v1012_v27 = vld [vmem:[%s11134_s10 + $0xf0] sm:$0xff] }
 0x9a0   : > { %2230 = vmatprep.mubr.f32.mxu0 %v8779_v43 }
 0x9a1   : > { %8044 = vmatpush3.bf16.msra.mxu1 %v8043_v50 }
 0x9a2   : > { %8046 = vmatprep.subr.bf16.mxu1 %v8045_v61 }
 0x9a3   : > { %6545 = vmatmul.mubr.msk.f32.gmra.mrb[28].mxu0 %vm702_vm0, %v2106_v60  ;;  %v8065_v60 = vpack.c.bf16 %v1013_v28, %v1012_v27 }
 0x9a5   : > { %8048 = vmatpush3.bf16.msra.mxu1 %v8047_v41 }
 0x9a6   : > { %8050 = vmatprep.subr.bf16.mxu1 %v8049_v9 }
 0x9a9   : > { %8052 = vmatpush3.bf16.msra.mxu1 %v8051_v47 }
 0x9aa   : > { %8054 = vmatprep.subr.bf16.mxu1 %v8053_v15 }
 0x9ad   : > { %8056 = vmatpush3.bf16.msra.mxu1 %v8055_v18 }
 0x9ae   : > { %8058 = vmatprep.subr.bf16.mxu1 %v8057_v20 }
 0x9b1   : > { %8060 = vmatpush3.bf16.msra.mxu1 %v8059_v54 }
 0x9b2   : > { %8062 = vmatprep.subr.bf16.mxu1 %v8061_v24 }
 0x9b5   : > { %8064 = vmatpush3.bf16.msra.mxu1 %v8063_v1 }
 0x9b6   : > { %8066 = vmatprep.subr.bf16.mxu1 %v8065_v60 }
 0x9b9   : > { %8068 = vmatpush3.bf16.msra.mxu1 %v8067_v29 }
 0xa62   : > { %v2202_v38 = vpop.f32.mrb[18].mxu0 }
 0xa63   : > { %v9643_v40 = vadd.f32 %v2202_v38, %v2111_v32  ;;  %v2204_v39 = vpop.f32.mrb[19].mxu0 }
 0xa64   : > { %v9645_v44 = vadd.f32 %v2204_v39, %v2115_v35 }
 0xa65   : > { %v6546_v46 = vmul.f32 -1.702, %v9643_v40 }
 0xa66   : > { %v6547_v50 = vmul.f32 -1.702, %v9645_v44  ;;  %v2208_v56 = vpop.f32.mrb[20].mxu0 }
 0xa67   : > { %v2261_v45 = vmul.f32 1.442695, %v6546_v46  ;;  %v9649_v61 = vadd.f32 %v2208_v56, %v2111_v32  ;;  %v2210_v62 = vpop.f32.mrb[21].mxu0 }
 0xa68   : > { %v2263_v63 = vmul.f32 1.442695, %v6547_v50  ;;  %v9651_v41 = vadd.f32 %v2210_v62, %v2115_v35 }
 0xa69   : > { %8551 = vpow2.f32 %v2261_v45  ;;  %v6548_v5 = vmul.f32 -1.702, %v9649_v61 }
 0xa6a   : > { %8553 = vpow2.f32 %v2263_v63  ;;  %v6549_v8 = vmul.f32 -1.702, %v9651_v41  ;;  %v2214_v9 = vpop.f32.mrb[22].mxu0 }
 0xa6b   : > { %v2265_v10 = vmul.f32 1.442695, %v6548_v5  ;;  %v9655_v14 = vadd.f32 %v2214_v9, %v2111_v32  ;;  %v2216_v47 = vpop.f32.mrb[23].mxu0 }
 0xa6c   : > { %v2267_v12 = vmul.f32 1.442695, %v6549_v8  ;;  %v9657_v13 = vadd.f32 %v2216_v47, %v2115_v35 }
 0xa6d   : > { %8555 = vpow2.f32 %v2265_v10  ;;  %v6550_v15 = vmul.f32 -1.702, %v9655_v14 }
 0xa6e   : > { %8557 = vpow2.f32 %v2267_v12  ;;  %v6551_v16 = vmul.f32 -1.702, %v9657_v13  ;;  %v2220_v25 = vpop.f32.mrb[24].mxu0 }
 0xa6f   : > { %v2269_v18 = vmul.f32 1.442695, %v6550_v15  ;;  %v9661_v36 = vadd.f32 %v2220_v25, %v2111_v32  ;;  %v2222_v30 = vpop.f32.mrb[25].mxu0 }
 0xa70   : > { %v2271_v20 = vmul.f32 1.442695, %v6551_v16  ;;  %v9663_v33 = vadd.f32 %v2222_v30, %v2115_v35 }
 0xa71   : > { %8559 = vpow2.f32 %v2269_v18  ;;  %v6552_v21 = vmul.f32 -1.702, %v9661_v36 }
 0xa72   : > { %8561 = vpow2.f32 %v2271_v20  ;;  %v6553_v54 = vmul.f32 -1.702, %v9663_v33  ;;  %v2226_v22 = vpop.f32.mrb[26].mxu0 }
 0xa73   : > { %v8552_v23 = vpop.eup %8551  ;;  %v2273_v24 = vmul.f32 1.442695, %v6552_v21  ;;  %v9667_v26 = vadd.f32 %v2226_v22, %v2111_v32  ;;  %v2228_v34 = vpop.f32.mrb[27].mxu0 }
 0xa74   : > { %v8554_v1 = vpop.eup %8553  ;;  %v2285_v27 = vadd.f32 1.0, %v8552_v23  ;;  %v2275_v28 = vmul.f32 1.442695, %v6553_v54  ;;  %v9669_v60 = vadd.f32 %v2228_v34, %v2115_v35 }
 0xa75   : > { %v2286_v55 = vadd.f32 1.0, %v8554_v1  ;;  %8563 = vpow2.f32 %v2273_v24  ;;  %v6554_v52 = vmul.f32 -1.702, %v9667_v26 }
 0xa76   : > { %8565 = vrcp.f32 %v2285_v27  ;;  %v6555_v29 = vmul.f32 -1.702, %v9669_v60  ;;  %v2232_v31 = vpop.f32.mrb[28].mxu0 }
 0xa77   : > { %v8556_v38 = vpop.eup %8555  ;;  %8567 = vrcp.f32 %v2286_v55  ;;  %v2277_v39 = vmul.f32 1.442695, %v6554_v52  ;;  %v9673_v46 = vadd.f32 %v2232_v31, %v2111_v32  ;;  %v2234_v50 = vpop.f32.mrb[29].mxu0 }
 0xa78   : > { %v8558_v56 = vpop.eup %8557  ;;  %v2287_v45 = vadd.f32 1.0, %v8556_v38  ;;  %8569 = vpow2.f32 %v2275_v28  ;;  %v2279_v62 = vmul.f32 1.442695, %v6555_v29  ;;  %v9675_v63 = vadd.f32 %v2234_v50, %v2115_v35 }
 0xa79   : > { %v2288_v5 = vadd.f32 1.0, %v8558_v56  ;;  %8571 = vpow2.f32 %v2277_v39  ;;  %v6556_v8 = vmul.f32 -1.702, %v9673_v46 }
 0xa7a   : > { %8573 = vrcp.f32 %v2287_v45  ;;  %v6557_v9 = vmul.f32 -1.702, %v9675_v63 }
 0xa7b   : > { %v8560_v10 = vpop.eup %8559  ;;  %8575 = vrcp.f32 %v2288_v5  ;;  %v2281_v47 = vmul.f32 1.442695, %v6556_v8 }
 0xa7c   : > { %v8562_v12 = vpop.eup %8561  ;;  %v2289_v32 = vadd.f32 1.0, %v8560_v10  ;;  %8577 = vpow2.f32 %v2279_v62  ;;  %v2283_v15 = vmul.f32 1.442695, %v6557_v9 }
 0xa7d   : > { %v2290_v16 = vadd.f32 1.0, %v8562_v12  ;;  %8579 = vpow2.f32 %v2281_v47 }
 0xa7e   : > { %8581 = vrcp.f32 %v2289_v32 }
 0xa7f   : > { %v8564_v25 = vpop.eup %8563  ;;  %8583 = vrcp.f32 %v2290_v16 }
 0xa80   : > { %v8566_v35 = vpop.eup %8565  ;;  %v2291_v18 = vadd.f32 1.0, %v8564_v25  ;;  %8585 = vpow2.f32 %v2283_v15 }
 0xa81   : > { %v8568_v30 = vpop.eup %8567  ;;  %v2321_v22 = vmul.f32 %v8566_v35, %v9643_v40 }
 0xa82   : > { %v8570_v20 = vpop.eup %8569  ;;  %v2322_v21 = vmul.f32 %v8568_v30, %v9645_v44  ;;  %8587 = vrcp.f32 %v2291_v18 }
 0xa83   : > { %v8572_v54 = vpop.eup %8571  ;;  %v2292_v23 = vadd.f32 1.0, %v8570_v20 }
 0xa84   : > { %v8574_v24 = vpop.eup %8573  ;;  %v2293_v34 = vadd.f32 1.0, %v8572_v54  ;;  %2401 = vmatprep.mubr.f32.mxu1 %v2322_v21 }
 0xa85   : > { %v8576_v1 = vpop.eup %8575  ;;  %8589 = vrcp.f32 %v2292_v23  ;;  %2402 = vmatmul.mubr.f32.vlgmr.msra.gmra.mrb[42].mxu1 %v2321_v22  ;;  %v2323_v52 = vmul.f32 %v8574_v24, %v9649_v61 }
 0xa86   : > { %v8578_v27 = vpop.eup %8577  ;;  %v2324_v28 = vmul.f32 %v8576_v1, %v9651_v41  ;;  %8591 = vrcp.f32 %v2293_v34 }
 0xa87   : > { %v8580_v55 = vpop.eup %8579  ;;  %v2294_v29 = vadd.f32 1.0, %v8578_v27 }
 0xa88   : > { %v8582_v31 = vpop.eup %8581  ;;  %v2295_v44 = vadd.f32 1.0, %v8580_v55  ;;  %2406 = vmatprep.mubr.f32.mxu1 %v2324_v28 }
 0xa89   : > { %v8584_v40 = vpop.eup %8583  ;;  %8593 = vrcp.f32 %v2294_v29  ;;  %2407 = vmatmul.mubr.f32.gmra.mrb[44].mxu1 %v2323_v52  ;;  %v2325_v50 = vmul.f32 %v8582_v31, %v9655_v14 }
 0xa8a   : > { %v8586_v38 = vpop.eup %8585  ;;  %v2326_v39 = vmul.f32 %v8584_v40, %v9657_v13  ;;  %8595 = vrcp.f32 %v2295_v44 }
 0xa8b   : > { %v2296_v56 = vadd.f32 1.0, %v8586_v38 }
 0xa8c   : > { %2411 = vmatprep.mubr.f32.mxu1 %v2326_v39  ;;  %v8588_v41 = vpop.eup %8587 }
 0xa8d   : > { %8597 = vrcp.f32 %v2296_v56  ;;  %2412 = vmatmul.mubr.f32.gmra.mrb[46].mxu1 %v2325_v50  ;;  %v2327_v62 = vmul.f32 %v8588_v41, %v9661_v36  ;;  %v6558_v36 = vld [vmem:[%s11171_s4 + $0x8] ss:$0 sm:$0xff] }
 0xa8f   : > { %v8590_v61 = vpop.eup %8589 }
 0xa90   : > { %v2328_v45 = vmul.f32 %v8590_v61, %v9663_v33  ;;  %v8592_v5 = vpop.eup %8591 }
 0xa91   : > { %v2329_v13 = vmul.f32 %v8592_v5, %v9667_v26 }
 0xa92   : > { %2416 = vmatprep.mubr.f32.mxu1 %v2328_v45 }
 0xa93   : > { %v8594_v8 = vpop.eup %8593  ;;  %2417 = vmatmul.mubr.f32.gmra.mrb[48].mxu1 %v2327_v62 }
 0xa94   : > { %v2330_v9 = vmul.f32 %v8594_v8, %v9669_v60  ;;  %v8596_v14 = vpop.eup %8595 }
 0xa95   : > { %v2331_v12 = vmul.f32 %v8596_v14, %v9673_v46 }
 0xa96   : > { %2421 = vmatprep.mubr.f32.mxu1 %v2330_v9 }
 0xa97   : > { %v8598_v10 = vpop.eup %8597  ;;  %2422 = vmatmul.mubr.f32.gmra.mrb[50].mxu1 %v2329_v13 }
 0xa98   : > { %v2332_v47 = vmul.f32 %v8598_v10, %v9675_v63 }
 0xa9a   : > { %2426 = vmatprep.mubr.f32.mxu1 %v2332_v47 }
 0xa9b   : > { %2427 = vmatmul.mubr.f32.gmra.mrb[52].mxu1 %v2331_v12 }
 0xb58   : > { %v6966_v33 = vpop.f32.mrb[42].mxu1 }
 0xb59   : > { %v6967_v32 = vpop.f32.mrb[43].mxu1 }
 0xb5a   : > { %v6968_v15 = vadd.f32 %v6967_v32, %v6966_v33 }
 0xb5c   : > { %v2404_v60 = vadd.f32 %v6968_v15, %v6558_v36  ;;  %v6969_v16 = vpop.f32.mrb[44].mxu1 }
 0xb5d   : > { %v6970_v26 = vpop.f32.mrb[45].mxu1 }
 0xb5e   : > { %v9695_v25 = vadd.f32 %v2404_v60, %v9407_v2  ;;  %v6971_v35 = vadd.f32 %v6970_v26, %v6969_v16 }
 0xb60   : > { %v2409_v18 = vadd.f32 %v6971_v35, %v6558_v36  ;;  %v6972_v63 = vpop.f32.mrb[46].mxu1  ;;  %v2529_v46 = vsel %vm702_vm0, %v9695_v25, 0.0 }
 0xb61   : > { %v6973_v30 = vpop.f32.mrb[47].mxu1  ;;  %2530 = vadd.xlane.f32.xlu0 %v2529_v46 }
 0xb62   : > { %v9700_v20 = vadd.f32 %v2409_v18, %v9405_v0  ;;  %v6974_v21 = vadd.f32 %v6973_v30, %v6972_v63 }
 0xb64   : > { %v2414_v54 = vadd.f32 %v6974_v21, %v6558_v36  ;;  %v2532_v22 = vsel %vm702_vm0, %v9700_v20, 0.0 }
 0xb65   : > { %2533 = vadd.xlane.f32.xlu1 %v2532_v22 }
 0xb66   : > { %v9705_v2 = vadd.f32 %v2414_v54, %v9417_v7  ;;  %v6975_v23 = vpop.f32.mrb[48].mxu1 }
 0xb67   : > { %v6976_v24 = vpop.f32.mrb[49].mxu1 }
 0xb68   : > { %v6977_v34 = vadd.f32 %v6976_v24, %v6975_v23  ;;  %v2535_v1 = vsel %vm702_vm0, %v9705_v2, 0.0  ;;  %v6562_v24 = vld [vmem:[%s11170_s7 + $0xc0] sm:$0xff] }
 0xb69   : > { %2536 = vadd.xlane.f32.xlu0 %v2535_v1  ;;  %v6578_v1 = vld [vmem:[%s11170_s7 + $0x140] sm:$0xff] }
 0xb6a   : > { %v2419_v27 = vadd.f32 %v6977_v34, %v6558_v36  ;;  %v6978_v28 = vpop.f32.mrb[50].mxu1  ;;  %v6563_v34 = vld [vmem:[%s11170_s7 + $0xc8] sm:$0xff] }
 0xb6b   : > { %v6979_v0 = vpop.f32.mrb[51].mxu1 }
 0xb6c   : > { %v9710_v55 = vadd.f32 %v2419_v27, %v9415_v11  ;;  %v6980_v52 = vadd.f32 %v6979_v0, %v6978_v28  ;;  %v8069_v27 = vpack.c.bf16 %v6563_v34, %v6562_v24  ;;  %v6579_v28 = vld [vmem:[%s11170_s7 + $0x148] sm:$0xff] }
 0xb6d   : > { %v8101_v0 = vpack.c.bf16 %v6579_v28, %v6578_v1 }
 0xb6e   : > { %v2424_v29 = vadd.f32 %v6980_v52, %v6558_v36  ;;  %v6981_v31 = vpop.f32.mrb[52].mxu1  ;;  %v2538_v7 = vsel %vm702_vm0, %v9710_v55, 0.0  ;;  %8070 = vmatprep.subr.bf16.mxu0 %v8069_v27  ;;  %v6564_v52 = vld [vmem:[%s11170_s7 + $0xd0] sm:$0xff] }
 0xb6f   : > { %v6982_v44 = vpop.f32.mrb[53].mxu1  ;;  %2539 = vadd.xlane.f32.xlu1 %v2538_v7  ;;  %8072 = vmatpush3.bf16.msra.mxu0 %v8069_v27 }
 0xb70   : > { %v9715_v40 = vadd.f32 %v2424_v29, %v9427_v19  ;;  %v6983_v38 = vadd.f32 %v6982_v44, %v6981_v31  ;;  %8102 = vmatprep.subr.bf16.mxu1 %v8101_v0  ;;  %v6565_v29 = vld [vmem:[%s11170_s7 + $0xd8] sm:$0xff]  ;;  %v6580_v31 = vld [vmem:[%s11170_s7 + $0x150] sm:$0xff] }
 0xb71   : > { %8104 = vmatpush3.bf16.msra.mxu1 %v8101_v0  ;;  %v8073_v7 = vpack.c.bf16 %v6565_v29, %v6564_v52  ;;  %v6581_v44 = vld [vmem:[%s11170_s7 + $0x158] sm:$0xff] }
 0xb72   : > { %v2429_v39 = vadd.f32 %v6983_v38, %v6558_v36  ;;  %v2541_v50 = vsel %vm702_vm0, %v9715_v40, 0.0  ;;  %v8105_v38 = vpack.c.bf16 %v6581_v44, %v6580_v31 }
 0xb73   : > { %2542 = vadd.xlane.f32.xlu0 %v2541_v50  ;;  %8074 = vmatprep.subr.bf16.mxu0 %v8073_v7  ;;  %v6567_v50 = vld [vmem:[%s11170_s7 + $0xe8] sm:$0xff] }
 0xb74   : > { %v9720_v11 = vadd.f32 %v2429_v39, %v9425_v17  ;;  %8106 = vmatprep.subr.bf16.mxu1 %v8105_v38  ;;  %8076 = vmatpush3.bf16.msra.mxu0 %v8073_v7  ;;  %v6566_v39 = vld [vmem:[%s11170_s7 + $0xe0] sm:$0xff] }
 0xb75   : > { %8108 = vmatpush3.bf16.msra.mxu1 %v8105_v38 }
 0xb76   : > { %v2544_v56 = vsel %vm702_vm0, %v9720_v11, 0.0 }
 0xb77   : > { %2545 = vadd.xlane.f32.xlu1 %v2544_v56  ;;  %v6582_v56 = vld [vmem:[%s11170_s7 + $0x160] sm:$0xff] }
 0xbee   : > { %v2531_v41 = vpop.xlane.xlu0 %2530 }
 0xbef   : > { %v2547_v61 = vmul.f32 0.015625, %v2531_v41  ;;  %v8077_v41 = vpack.c.bf16 %v6567_v50, %v6566_v39  ;;  %v6572_v39 = vld [vmem:[%s11170_s7 + $0x110] sm:$0xff]  ;;  %v6573_v50 = vld [vmem:[%s11170_s7 + $0x118] sm:$0xff] }
 0xbf1   : > { %v9725_v45 = vsub.f32 %v9695_v25, %v2547_v61  ;;  %v6583_v61 = vld [vmem:[%s11170_s7 + $0x168] sm:$0xff]  ;;  %8078 = vmatprep.subr.bf16.mxu0 %v8077_v41 }
 0xbf2   : > { %v2534_v19 = vpop.xlane.xlu1 %2533  ;;  %8080 = vmatpush3.bf16.msra.mxu0 %v8077_v41 }
 0xbf3   : > { %v2548_v62 = vmul.f32 0.015625, %v2534_v19  ;;  %v2559_v5 = vmul.f32 %v9725_v45, %v9725_v45  ;;  %v8109_v19 = vpack.c.bf16 %v6583_v61, %v6582_v56 }
 0xbf5   : > { %v9730_v8 = vsub.f32 %v9700_v20, %v2548_v62  ;;  %v2565_v17 = vsel %vm702_vm0, %v2559_v5, 0.0  ;;  %8110 = vmatprep.subr.bf16.mxu1 %v8109_v19  ;;  %v6568_v62 = vld [vmem:[%s11170_s7 + $0xf0] sm:$0xff]  ;;  %v6569_v5 = vld [vmem:[%s11170_s7 + $0xf8] sm:$0xff] }
 0xbf6   : > { %2566 = vadd.xlane.f32.xlu0 %v2565_v17  ;;  %v2537_v9 = vpop.xlane.xlu0 %2536  ;;  %v6584_v17 = vld [vmem:[%s11170_s7 + $0x170] sm:$0xff]  ;;  %8112 = vmatpush3.bf16.msra.mxu1 %v8109_v19 }
 0xbf7   : > { %v2549_v13 = vmul.f32 0.015625, %v2537_v9  ;;  %v2560_v14 = vmul.f32 %v9730_v8, %v9730_v8  ;;  %v8081_v9 = vpack.c.bf16 %v6569_v5, %v6568_v62  ;;  %v8089_v62 = vpack.c.bf16 %v6573_v50, %v6572_v39 }
 0xbf9   : > { %v9736_v10 = vsub.f32 %v9705_v2, %v2549_v13  ;;  %v2568_v47 = vsel %vm702_vm0, %v2560_v14, 0.0  ;;  %v6585_v13 = vld [vmem:[%s11170_s7 + $0x178] sm:$0xff]  ;;  %8082 = vmatprep.subr.bf16.mxu0 %v8081_v9 }
 0xbfa   : > { %2569 = vadd.xlane.f32.xlu1 %v2568_v47  ;;  %v8113_v14 = vpack.c.bf16 %v6585_v13, %v6584_v17  ;;  %8084 = vmatpush3.bf16.msra.mxu0 %v8081_v9  ;;  %v6570_v47 = vld [vmem:[%s11170_s7 + $0x100] sm:$0xff]  ;;  %v6575_v9 = vld [vmem:[%s11170_s7 + $0x128] sm:$0xff] }
 0xbfb   : > { %v2561_v12 = vmul.f32 %v9736_v10, %v9736_v10  ;;  %v6574_v17 = vld [vmem:[%s11170_s7 + $0x120] sm:$0xff] }
 0xbfc   : > { %v2540_v33 = vpop.xlane.xlu1 %2539  ;;  %8114 = vmatprep.subr.bf16.mxu1 %v8113_v14 }
 0xbfd   : > { %v2550_v36 = vmul.f32 0.015625, %v2540_v33  ;;  %v2571_v32 = vsel %vm702_vm0, %v2561_v12, 0.0  ;;  %8116 = vmatpush3.bf16.msra.mxu1 %v8113_v14  ;;  %v6571_v12 = vld [vmem:[%s11170_s7 + $0x108] sm:$0xff] }
 0xbfe   : > { %2572 = vadd.xlane.f32.xlu0 %v2571_v32  ;;  %8121 = vmatprep.subr.bf16.mxu1 %v8777_v3  ;;  %v8085_v33 = vpack.c.bf16 %v6571_v12, %v6570_v47 }
 0xbff   : > { %v9743_v15 = vsub.f32 %v9710_v55, %v2550_v36 }
 0xc00   : > { %v2543_v60 = vpop.xlane.xlu0 %2542  ;;  %8086 = vmatprep.subr.bf16.mxu0 %v8085_v33 }
 0xc01   : > { %v2551_v16 = vmul.f32 0.015625, %v2543_v60  ;;  %v2562_v26 = vmul.f32 %v9743_v15, %v9743_v15 }
 0xc03   : > { %v9748_v35 = vsub.f32 %v9715_v40, %v2551_v16  ;;  %v2574_v18 = vsel %vm702_vm0, %v2562_v26, 0.0 }
 0xc04   : > { %2575 = vadd.xlane.f32.xlu1 %v2574_v18  ;;  %v2546_v63 = vpop.xlane.xlu1 %2545 }
 0xc05   : > { %v2552_v46 = vmul.f32 0.015625, %v2546_v63  ;;  %v2563_v30 = vmul.f32 %v9748_v35, %v9748_v35 }
 0xc07   : > { %v9754_v21 = vsub.f32 %v9720_v11, %v2552_v46  ;;  %v2577_v54 = vsel %vm702_vm0, %v2563_v30, 0.0  ;;  %v9818_v30 = vld [vmem:[%s11171_s4 + $0x10] sm:$0xff] }
 0xc08   : > { %2578 = vadd.xlane.f32.xlu0 %v2577_v54  ;;  %v2620_v1 = vrot.slane %v9818_v30, %v9092_v57 }
 0xc09   : > { %v2564_v22 = vmul.f32 %v9754_v21, %v9754_v21 }
 0xc0b   : > { %v2580_v23 = vsel %vm702_vm0, %v2564_v22, 0.0  ;;  %v2610_v22 = vrot.slane %v9818_v30, %v9086_v53 }
 0xc0c   : > { %2581 = vadd.xlane.f32.xlu1 %v2580_v23 }
 0xc83   : > { %v2567_v36 = vpop.xlane.xlu0 %2566 }
 0xc84   : > { %v2583_v32 = vmul.f32 0.015625, %v2567_v36  ;;  %v6576_v36 = vld [vmem:[%s11170_s7 + $0x130] sm:$0xff] }
 0xc86   : > { %v2589_v60 = vadd.f32 1e-05, %v2583_v32  ;;  %v6577_v32 = vld [vmem:[%s11170_s7 + $0x138] sm:$0xff] }
 0xc87   : > { %v2570_v16 = vpop.xlane.xlu1 %2569 }
 0xc88   : > { %8599 = vrsqrt.f32 %v2589_v60  ;;  %v2584_v26 = vmul.f32 0.015625, %v2570_v16  ;;  %v8097_v16 = vpack.c.bf16 %v6577_v32, %v6576_v36 }
 0xc8a   : > { %v2590_v18 = vadd.f32 1e-05, %v2584_v26 }
 0xc8b   : > { %v2573_v63 = vpop.xlane.xlu0 %2572 }
 0xc8c   : > { %8601 = vrsqrt.f32 %v2590_v18  ;;  %v2585_v46 = vmul.f32 0.015625, %v2573_v63 }
 0xc8e   : > { %v2591_v54 = vadd.f32 1e-05, %v2585_v46 }
 0xc90   : > { %8603 = vrsqrt.f32 %v2591_v54 }
 0xc91   : > { %v2576_v23 = vpop.xlane.xlu1 %2575 }
 0xc92   : > { %v8600_v24 = vpop.eup %8599  ;;  %v2586_v34 = vmul.f32 0.015625, %v2576_v23 }
 0xc93   : > { %v2601_v27 = vmul.f32 %v8600_v24, %v9725_v45 }
 0xc94   : > { %v2592_v28 = vadd.f32 1e-05, %v2586_v34 }
 0xc95   : > { %v2579_v0 = vpop.xlane.xlu0 %2578  ;;  %v2611_v52 = vmul.f32 %v2610_v22, %v2601_v27 }
 0xc96   : > { %v8602_v29 = vpop.eup %8601  ;;  %8605 = vrsqrt.f32 %v2592_v28  ;;  %v2587_v31 = vmul.f32 0.015625, %v2579_v0 }
 0xc97   : > { %v2602_v7 = vmul.f32 %v8602_v29, %v9730_v8  ;;  %v2621_v44 = vadd.f32 %v2620_v1, %v2611_v52 }
 0xc98   : > { %v2593_v38 = vadd.f32 1e-05, %v2587_v31 }
 0xc99   : > { %v2612_v56 = vmul.f32 %v2610_v22, %v2602_v7  ;;  %v2582_v45 = vpop.xlane.xlu1 %2581  ;;  %7498 = vmatprep.mubr.msk.f32.mxu0 %vm702_vm0, %v2621_v44  ;;  %7548 = vmatprep.mubr.msk.f32.mxu1 %vm702_vm0, %v2621_v44 }
 0xc9a   : > { %v8604_v41 = vpop.eup %8603  ;;  %8607 = vrsqrt.f32 %v2593_v38  ;;  %v2588_v61 = vmul.f32 0.015625, %v2582_v45 }
 0xc9b   : > { %v2622_v8 = vadd.f32 %v2620_v1, %v2612_v56  ;;  %v2603_v19 = vmul.f32 %v8604_v41, %v9736_v10  ;;  %v8093_v10 = vpack.c.bf16 %v6575_v9, %v6574_v17  ;;  %v2747_v56 = vrot.slane %v9818_v30, %v9281_v51 }
 0xc9c   : > { %v2594_v5 = vadd.f32 1e-05, %v2588_v61 }
 0xc9d   : > { %7499 = vmatmul.mubr.msk.f32.vlgmr.msra.gmra.mrb[30].mxu0 %vm702_vm0, %v2622_v8  ;;  %7549 = vmatmul.mubr.msk.f32.vlgmr.msra.gmra.mrb[54].mxu1 %vm702_vm0, %v2622_v8  ;;  %v2613_v13 = vmul.f32 %v2610_v22, %v2603_v19 }
 0xc9e   : > { %8609 = vrsqrt.f32 %v2594_v5  ;;  %8088 = vmatpush3.bf16.msra.mxu0 %v8085_v33 }
 0xc9f   : > { %v2623_v14 = vadd.f32 %v2620_v1, %v2613_v13  ;;  %8090 = vmatprep.subr.bf16.mxu0 %v8089_v62 }
 0xca0   : > { %v8606_v47 = vpop.eup %8605 }
 0xca1   : > { %7501 = vmatprep.mubr.msk.f32.mxu0 %vm702_vm0, %v2623_v14  ;;  %7551 = vmatprep.mubr.msk.f32.mxu1 %vm702_vm0, %v2623_v14  ;;  %v2604_v12 = vmul.f32 %v8606_v47, %v9743_v15 }
 0xca2   : > { %8092 = vmatpush3.bf16.msra.mxu0 %v8089_v62 }
 0xca3   : > { %v2614_v33 = vmul.f32 %v2610_v22, %v2604_v12  ;;  %8094 = vmatprep.subr.bf16.mxu0 %v8093_v10  ;;  %v2630_v12 = vrot.slane %v9818_v30, %v9296_v4 }
 0xca4   : > { %v8608_v60 = vpop.eup %8607 }
 0xca5   : > { %v2624_v26 = vadd.f32 %v2620_v1, %v2614_v33  ;;  %v2605_v18 = vmul.f32 %v8608_v60, %v9748_v35 }
 0xca6   : > { %8096 = vmatpush3.bf16.msra.mxu0 %v8093_v10 }
 0xca7   : > { %7502 = vmatmul.mubr.msk.f32.gmra.mrb[32].mxu0 %vm702_vm0, %v2624_v26  ;;  %7552 = vmatmul.mubr.msk.f32.gmra.mrb[56].mxu1 %vm702_vm0, %v2624_v26  ;;  %v2615_v15 = vmul.f32 %v2610_v22, %v2605_v18 }
 0xca8   : > { %v8610_v63 = vpop.eup %8609  ;;  %8098 = vmatprep.subr.bf16.mxu0 %v8097_v16 }
 0xca9   : > { %v2625_v46 = vadd.f32 %v2620_v1, %v2615_v15  ;;  %v2606_v54 = vmul.f32 %v8610_v63, %v9754_v21  ;;  %v2846_v21 = vrot.slane %v9818_v30, %v1330_v6 }
 0xcaa   : > { %8100 = vmatpush3.bf16.msra.mxu0 %v8097_v16 }
 0xcab   : > { %7504 = vmatprep.mubr.msk.f32.mxu0 %vm702_vm0, %v2625_v46  ;;  %7554 = vmatprep.mubr.msk.f32.mxu1 %vm702_vm0, %v2625_v46  ;;  %v2616_v23 = vmul.f32 %v2610_v22, %v2606_v54 }
 0xcac   : > { %8117 = vmatprep.subr.bf16.mxu0 %v8777_v3 }
 0xcad   : > { %v2626_v35 = vadd.f32 %v2620_v1, %v2616_v23 }
 0xcaf   : > { %7505 = vmatmul.mubr.msk.f32.gmra.mrb[34].mxu0 %vm702_vm0, %v2626_v35  ;;  %7555 = vmatmul.mubr.msk.f32.gmra.mrb[58].mxu1 %vm702_vm0, %v2626_v35 }
 0xcb0   : > { %7523 = vmatprep.mubr.msk.f32.mxu0 %vm702_vm0, %v2621_v44  ;;  %7578 = vmatprep.mubr.msk.f32.mxu1 %vm8778_vm1, %v8779_v43 }
 0xcb3   : > { %7524 = vmatmul.mubr.msk.f32.vlgmr.msra.gmra.mrb[36].mxu0 %vm702_vm0, %v2622_v8 }
 0xcb4   : > { %7526 = vmatprep.mubr.msk.f32.mxu0 %vm702_vm0, %v2623_v14 }
 0xcb7   : > { %7527 = vmatmul.mubr.msk.f32.gmra.mrb[38].mxu0 %vm702_vm0, %v2624_v26 }
 0xcb8   : > { %7529 = vmatprep.mubr.msk.f32.mxu0 %vm702_vm0, %v2625_v46 }
 0xcbb   : > { %7530 = vmatmul.mubr.msk.f32.gmra.mrb[40].mxu0 %vm702_vm0, %v2626_v35 }
 0xcbc   : > { %7563 = vmatprep.mubr.msk.f32.mxu0 %vm8778_vm1, %v8779_v43 }
 0xd70   : > { %v7500_v22 = vpop.f32.mrb[30].mxu0  ;;  %v7550_v24 = vpop.f32.mrb[54].mxu1 }
 0xd71   : > { %v2919_v34 = vadd.f32 %v7550_v24, %v2846_v21  ;;  %v2715_v1 = vpop.f32.mrb[31].mxu0  ;;  %v2913_v27 = vpop.f32.mrb[55].mxu1  ;;  %v2721_v60 = vadd.f32 %v7500_v22, %v2630_v12 }
 0xd72   : > { %v2914_v28 = vadd.f32 %v2913_v27, %v2846_v21  ;;  %v2716_v33 = vadd.f32 %v2715_v1, %v2630_v12 }
 0xd74   : > { %v8126_v0 = vpack.c.bf16 %v2919_v34, %v2914_v28 }
 0xd7a   : > { %v7503_v52 = vpop.f32.mrb[32].mxu0  ;;  %v7553_v29 = vpop.f32.mrb[56].mxu1 }
 0xd7b   : > { %v2725_v31 = vpop.f32.mrb[33].mxu0  ;;  %v2923_v7 = vpop.f32.mrb[57].mxu1  ;;  %v2929_v45 = vadd.f32 %v7553_v29, %v2846_v21  ;;  %v2731_v37 = vadd.f32 %v7503_v52, %v2630_v12 }
 0xd7c   : > { %v2924_v16 = vadd.f32 %v2923_v7, %v2846_v21  ;;  %v2726_v18 = vadd.f32 %v2725_v31, %v2630_v12 }
 0xd82   : > { %v7506_v44 = vpop.f32.mrb[34].mxu0  ;;  %v7556_v38 = vpop.f32.mrb[58].mxu1 }
 0xd83   : > { %v2735_v39 = vpop.f32.mrb[35].mxu0  ;;  %v2933_v50 = vpop.f32.mrb[59].mxu1  ;;  %v2939_v63 = vadd.f32 %v7556_v38, %v2846_v21  ;;  %v2741_v46 = vadd.f32 %v7506_v44, %v2630_v12 }
 0xd84   : > { %v2934_v6 = vadd.f32 %v2933_v50, %v2846_v21  ;;  %v2736_v15 = vadd.f32 %v2735_v39, %v2630_v12 }
 0xd86   : > { %v8129_v41 = vpack.c.bf16 %v2934_v6, %v2929_v45  ;;  %v7525_v61 = vpop.f32.mrb[36].mxu0 }
 0xd87   : > { %v2820_v8 = vadd.f32 %v7525_v61, %v2747_v56  ;;  %v2814_v19 = vpop.f32.mrb[37].mxu0 }
 0xd88   : > { %v2815_v62 = vadd.f32 %v2814_v19, %v2747_v56 }
 0xd8a   : > { %v8118_v5 = vpack.c.bf16 %v2820_v8, %v2815_v62  ;;  %v7528_v17 = vpop.f32.mrb[38].mxu0 }
 0xd8b   : > { %v2824_v9 = vpop.f32.mrb[39].mxu0  ;;  %v2830_v10 = vadd.f32 %v7528_v17, %v2747_v56 }
 0xd8c   : > { %8120 = vmatpush3.bf16.xpose.msk.msra.mxu0 %vm9289_vm2, %v8118_v5  ;;  %v2825_v36 = vadd.f32 %v2824_v9, %v2747_v56 }
 0xd8d   : > { %7561 = vmatprep.subr.mxu0 %v8779_v43 }
 0xd8e   : > { %v7531_v13 = vpop.f32.mrb[40].mxu0 }
 0xd8f   : > { %v2834_v14 = vpop.f32.mrb[41].mxu0  ;;  %v2840_v26 = vadd.f32 %v7531_v13, %v2747_v56 }
 0xd90   : > { %v2835_v47 = vadd.f32 %v2834_v14, %v2747_v56 }
 0xd92   : > { %v8122_v32 = vpack.c.bf16 %v2835_v47, %v2830_v10 }
 0xd94   : > { %7562 = vmatpush3.xpose.msk.msra.mxu0 %vm702_vm0, %v2825_v36  ;;  %8124 = vmatpush3.bf16.xpose.msk.msra.mxu1 %vm9289_vm2, %v8122_v32 }
 0xd95   : > { %8125 = vmatprep.subr.bf16.mxu0 %v8777_v3  ;;  %7576 = vmatprep.subr.mxu1 %v8779_v43 }
 0xd97   : > { %7564 = vmatmul.mubr.msk.f32.vlgmr.msra.gmra.mrb[42].mxu0 %vm702_vm0, %v2716_v33 }
 0xd98   : > { %8127 = vmatpush3.bf16.msra.mxu0 %v8126_v0  ;;  %7566 = vmatprep.mubr.msk.f32.mxu0 %vm8778_vm1, %v8779_v43 }
 0xd99   : > { %7591 = vmatprep.subr.mxu0 %v8779_v43 }
 0xd9b   : > { %7567 = vmatmul.mubr.msk.f32.gmra.mrb[44].mxu0 %vm702_vm0, %v2721_v60 }
 0xd9c   : > { %7577 = vmatpush3.xpose.msk.msra.mxu1 %vm702_vm0, %v2840_v26  ;;  %7592 = vmatpush3.msra.mxu0 %v2924_v16 }
 0xd9d   : > { %7569 = vmatprep.mubr.msk.f32.mxu0 %vm8778_vm1, %v8779_v43  ;;  %8128 = vmatprep.subr.bf16.mxu1 %v8777_v3 }
 0xd9f   : > { %7570 = vmatmul.mubr.msk.f32.gmra.mrb[46].mxu0 %vm702_vm0, %v2726_v18  ;;  %7579 = vmatmul.mubr.msk.f32.vlgmr.msra.gmra.mrb[60].mxu1 %vm702_vm0, %v2731_v37 }
 0xda0   : > { %8130 = vmatpush3.bf16.msra.mxu1 %v8129_v41  ;;  %7581 = vmatprep.mubr.msk.f32.mxu1 %vm8778_vm1, %v8779_v43 }
 0xda1   : > { %7606 = vmatprep.subr.mxu1 %v8779_v43  ;;  %7593 = vmatprep.mubr.msk.f32.mxu0 %vm8778_vm1, %v8779_v43 }
 0xda3   : > { %7582 = vmatmul.mubr.msk.f32.gmra.mrb[62].mxu1 %vm702_vm0, %v2736_v15 }
 0xda4   : > { %7607 = vmatpush3.msra.mxu1 %v2939_v63  ;;  %7584 = vmatprep.mubr.msk.f32.mxu1 %vm8778_vm1, %v8779_v43 }
 0xda7   : > { %7585 = vmatmul.mubr.msk.f32.gmra.mrb[64].mxu1 %vm702_vm0, %v2741_v46 }
 0xda8   : > { %7608 = vmatprep.mubr.msk.f32.mxu1 %vm8778_vm1, %v8779_v43 }
 0xe6a   : > { %v3026_v54 = vpop.f32.mrb[42].mxu0 }
 0xe6b   : > { %v3138_v23 = vmul.f32 0.125, %v3026_v54  ;;  %v7565_v35 = vpop.f32.mrb[43].mxu0 }
 0xe6d   : > { %v3144_v22 = vadd.f32 %v3138_v23, %v9334_v42 }
 0xe6e   : > { %v3031_v24 = vpop.f32.mrb[44].mxu0 }
 0xe6f   : > { %v3139_v34 = vmul.f32 0.125, %v3031_v24  ;;  %v7568_v21 = vpop.f32.mrb[45].mxu0  ;;  %v3150_v1 = vsel %vm1635_vm4, %v3144_v22, -inf }
 0xe70   : > { %3151 = vmax.xlane.f32.xlu0 %v3150_v1 }
 0xe71   : > { %v3145_v27 = vadd.f32 %v3139_v34, %v9334_v42 }
 0xe72   : > { %v3036_v28 = vpop.f32.mrb[46].mxu0  ;;  %v3124_v0 = vpop.f32.mrb[60].mxu1 }
 0xe73   : > { %v3140_v52 = vmul.f32 0.125, %v3036_v28  ;;  %v3141_v29 = vmul.f32 0.125, %v3124_v0  ;;  %v7571_v31 = vpop.f32.mrb[47].mxu0  ;;  %v7580_v7 = vpop.f32.mrb[61].mxu1  ;;  %v3153_v44 = vsel %vm1635_vm4, %v3145_v27, -inf }
 0xe74   : > { %3154 = vmax.xlane.f32.xlu1 %v3153_v44 }
 0xe75   : > { %v3147_v38 = vadd.f32 %v3141_v29, %v9334_v42  ;;  %v3146_v39 = vadd.f32 %v3140_v52, %v9334_v42 }
 0xe76   : > { %v3129_v50 = vpop.f32.mrb[62].mxu1 }
 0xe77   : > { %v7583_v56 = vpop.f32.mrb[63].mxu1  ;;  %v3159_v45 = vsel %vm1635_vm4, %v3147_v38, -inf  ;;  %v3156_v6 = vsel %vm1635_vm4, %v3146_v39, -inf  ;;  %v3142_v37 = vmul.f32 0.125, %v3129_v50 }
 0xe78   : > { %3160 = vmax.xlane.f32.xlu1 %v3159_v45  ;;  %3157 = vmax.xlane.f32.xlu0 %v3156_v6 }
 0xe79   : > { %v3148_v23 = vadd.f32 %v3142_v37, %v9334_v42 }
 0xe7a   : > { %v3134_v41 = vpop.f32.mrb[64].mxu1 }
 0xe7b   : > { %v7586_v61 = vpop.f32.mrb[65].mxu1  ;;  %v3143_v16 = vmul.f32 0.125, %v3134_v41 }
 0xe7d   : > { %v3149_v46 = vadd.f32 %v3143_v16, %v9334_v42 }
 0xe7f   : > { %v3165_v35 = vsel %vm1635_vm4, %v3149_v46, -inf }
 0xefd   : > { %v3152_v8 = vpop.xlane.xlu0 %3151 }
 0xefe   : > { %v3168_v19 = vsub.f32 %v3144_v22, %v3152_v8  ;;  %v3162_v22 = vsel %vm1635_vm4, %v3148_v23, -inf }
 0xf00   : > { %v3174_v62 = vmul.f32 1.442695, %v3168_v19  ;;  %v6586_v19 = vld [vmem:[%s11132_s8 + $0x40] sm:$0xff] }
 0xf01   : > { %v3155_v5 = vpop.xlane.xlu1 %3154 }
 0xf02   : > { %8611 = vpow2.f32 %v3174_v62  ;;  %v3169_v17 = vsub.f32 %v3145_v27, %v3155_v5  ;;  %v6587_v62 = vld [vmem:[%s11132_s8 + $0x48] sm:$0xff]  ;;  %v6588_v5 = vld [vmem:[%s11132_s8 + $0x50] sm:$0xff] }
 0xf04   : > { %v3176_v9 = vmul.f32 1.442695, %v3169_v17  ;;  %v8131_v17 = vpack.c.bf16 %v6587_v62, %v6586_v19 }
 0xf05   : > { %v3161_v13 = vpop.xlane.xlu1 %3160  ;;  %v3158_v14 = vpop.xlane.xlu0 %3157 }
 0xf06   : > { %8613 = vpow2.f32 %v3176_v9  ;;  %v3171_v10 = vsub.f32 %v3147_v38, %v3161_v13  ;;  %v3170_v47 = vsub.f32 %v3146_v39, %v3158_v14  ;;  %v6589_v9 = vld [vmem:[%s11132_s8 + $0x58] sm:$0xff]  ;;  %v6590_v14 = vld [vmem:[%s11132_s8 + $0x60] sm:$0xff]  ;;  %8132 = vmatprep.subr.bf16.mxu0 %v8131_v17 }
 0xf07   : > { %v8135_v13 = vpack.c.bf16 %v6589_v9, %v6588_v5 }
 0xf08   : > { %v3180_v12 = vmul.f32 1.442695, %v3171_v10  ;;  %v3178_v36 = vmul.f32 1.442695, %v3170_v47  ;;  %v6591_v10 = vld [vmem:[%s11132_s8 + $0x68] sm:$0xff] }
 0xf09   : > { %v8139_v47 = vpack.c.bf16 %v6591_v10, %v6590_v14 }
 0xf0a   : > { %8615 = vpow2.f32 %v3180_v12  ;;  %v6592_v12 = vld [vmem:[%s11132_s8 + $0x70] sm:$0xff] }
 0xf0b   : > { %8617 = vpow2.f32 %v3178_v36  ;;  %v6593_v36 = vld [vmem:[%s11132_s8 + $0x78] sm:$0xff] }
 0xf0c   : > { %v8612_v32 = vpop.eup %8611 }
 0xf0d   : > { %v3186_v33 = vsel %vm1635_vm4, %v8612_v32, 0.0 }
 0xf0e   : > { %3187 = vadd.xlane.f32.xlu0 %v3186_v33 }
 0xf10   : > { %v8614_v60 = vpop.eup %8613 }
 0xf11   : > { %v3189_v26 = vsel %vm1635_vm4, %v8614_v60, 0.0 }
 0xf12   : > { %3190 = vadd.xlane.f32.xlu1 %v3189_v26 }
 0xf14   : > { %v8616_v18 = vpop.eup %8615 }
 0xf15   : > { %v8618_v15 = vpop.eup %8617  ;;  %v3195_v63 = vsel %vm1635_vm4, %v8616_v18, 0.0 }
 0xf16   : > { %3196 = vadd.xlane.f32.xlu1 %v3195_v63  ;;  %v3192_v54 = vsel %vm1635_vm4, %v8618_v15, 0.0 }
 0xf17   : > { %3193 = vadd.xlane.f32.xlu0 %v3192_v54 }
 0xf1a   : > { %3166 = vmax.xlane.f32.xlu1 %v3165_v35 }
 0xf1b   : > { %3163 = vmax.xlane.f32.xlu0 %v3162_v22 }
 0xf9b   : > { %v3188_v24 = vpop.xlane.xlu0 %3187 }
 0xf9c   : > { %8619 = vrcp.f32 %v3188_v24 }
 0xf9f   : > { %v3191_v34 = vpop.xlane.xlu1 %3190 }
 0xfa0   : > { %8621 = vrcp.f32 %v3191_v34 }
 0xfa3   : > { %v3197_v21 = vpop.xlane.xlu1 %3196 }
 0xfa4   : > { %8623 = vrcp.f32 %v3197_v21  ;;  %v3194_v1 = vpop.xlane.xlu0 %3193 }
 0xfa5   : > { %8625 = vrcp.f32 %v3194_v1 }
 0xfa6   : > { %v8620_v27 = vpop.eup %8619 }
 0xfa7   : > { %v3210_v28 = vmul.f32 %v8620_v27, %v8612_v32  ;;  %v3167_v0 = vpop.xlane.xlu1 %3166  ;;  %v8143_v32 = vpack.c.bf16 %v6593_v36, %v6592_v12 }
 0xfa8   : > { %v3164_v52 = vpop.xlane.xlu0 %3163  ;;  %v3173_v42 = vsub.f32 %v3149_v46, %v3167_v0 }
 0xfa9   : > { %v3172_v29 = vsub.f32 %v3148_v23, %v3164_v52  ;;  %7594 = vmatmul.mubr.msk.f32.vlgmr.msra.gmra.mrb[48].mxu0 %vm1635_vm4, %v3210_v28  ;;  %v3516_v28 = vrot.slane %v9818_v30, %v2001_v58 }
 0xfaa   : > { %v8622_v31 = vpop.eup %8621  ;;  %v3184_v7 = vmul.f32 1.442695, %v3173_v42  ;;  %7596 = vmatprep.mubr.msk.f32.mxu0 %vm8778_vm1, %v8779_v43  ;;  %8134 = vmatpush3.bf16.msra.mxu0 %v8131_v17 }
 0xfab   : > { %v3182_v44 = vmul.f32 1.442695, %v3172_v29  ;;  %v3211_v38 = vmul.f32 %v8622_v31, %v8614_v60  ;;  %8136 = vmatprep.subr.bf16.mxu0 %v8135_v13 }
 0xfac   : > { %8627 = vpow2.f32 %v3184_v7 }
 0xfad   : > { %8629 = vpow2.f32 %v3182_v44  ;;  %7597 = vmatmul.mubr.msk.f32.gmra.mrb[50].mxu0 %vm1635_vm4, %v3211_v38 }
 0xfae   : > { %v8624_v39 = vpop.eup %8623  ;;  %7599 = vmatprep.mubr.msk.f32.mxu0 %vm8778_vm1, %v8779_v43  ;;  %8138 = vmatpush3.bf16.msra.mxu0 %v8135_v13 }
 0xfaf   : > { %v8626_v50 = vpop.eup %8625  ;;  %v3213_v56 = vmul.f32 %v8624_v39, %v8616_v18  ;;  %8140 = vmatprep.subr.bf16.mxu0 %v8139_v47 }
 0xfb0   : > { %v3212_v45 = vmul.f32 %v8626_v50, %v8618_v15 }
 0xfb1   : > { %7609 = vmatmul.mubr.msk.f32.vlgmr.msra.gmra.mrb[66].mxu1 %vm1635_vm4, %v3213_v56 }
 0xfb2   : > { %7600 = vmatmul.mubr.msk.f32.gmra.mrb[52].mxu0 %vm1635_vm4, %v3212_v45  ;;  %7611 = vmatprep.mubr.msk.f32.mxu1 %vm8778_vm1, %v8779_v43 }
 0xfb3   : > { %8142 = vmatpush3.bf16.msra.mxu0 %v8139_v47 }
 0xfb4   : > { %8144 = vmatprep.subr.bf16.mxu0 %v8143_v32 }
 0xfb6   : > { %v8628_v6 = vpop.eup %8627 }
 0xfb7   : > { %v8630_v41 = vpop.eup %8629  ;;  %v3201_v61 = vsel %vm1635_vm4, %v8628_v6, 0.0  ;;  %8146 = vmatpush3.bf16.msra.mxu0 %v8143_v32 }
 0xfb8   : > { %v3198_v8 = vsel %vm1635_vm4, %v8630_v41, 0.0  ;;  %3202 = vadd.xlane.f32.xlu1 %v3201_v61 }
 0xfb9   : > { %3199 = vadd.xlane.f32.xlu0 %v3198_v8 }
0x1045   : > { %v3203_v60 = vpop.xlane.xlu1 %3202 }
0x1046   : > { %v3200_v33 = vpop.xlane.xlu0 %3199 }
0x1047   : > { %8631 = vrcp.f32 %v3200_v33 }
0x1048   : > { %8633 = vrcp.f32 %v3203_v60 }
0x1051   : > { %v8632_v16 = vpop.eup %8631 }
0x1052   : > { %v3214_v26 = vmul.f32 %v8632_v16, %v8630_v41  ;;  %v8634_v37 = vpop.eup %8633 }
0x1053   : > { %v3215_v18 = vmul.f32 %v8634_v37, %v8628_v6 }
0x1054   : > { %7612 = vmatmul.mubr.msk.f32.gmra.mrb[68].mxu1 %vm1635_vm4, %v3214_v26 }
0x1055   : > { %7614 = vmatprep.mubr.msk.f32.mxu1 %vm8778_vm1, %v8779_v43 }
0x1058   : > { %7615 = vmatmul.mubr.msk.f32.gmra.mrb[70].mxu1 %vm1635_vm4, %v3215_v18 }
0x1059   : > { %3714 = vmatprep.mubr.f32.mxu1 %v8779_v43 }
0x107c   : > { %v3291_v15 = vpop.f32.mrb[48].mxu0 }
0x107d   : > { %v7595_v63 = vpop.f32.mrb[49].mxu0  ;;  %7633 = vmatprep.mubr.msk.f32.mxu0 %vm702_vm0, %v3291_v15 }
0x107e   : > { %v6595_v63 = vld [vmem:[%s11133_s9 + $0x88] sm:$0xff] }
0x1080   : > { %v3296_v46 = vpop.f32.mrb[50].mxu0 }
0x1081   : > { %v7598_v54 = vpop.f32.mrb[51].mxu0  ;;  %7634 = vmatmul.mubr.msk.f32.vlgmr.msra.gmra.mrb[54].mxu0 %vm702_vm0, %v3296_v46  ;;  %v6597_v46 = vld [vmem:[%s11133_s9 + $0x98] sm:$0xff] }
0x1084   : > { %v3380_v23 = vpop.f32.mrb[66].mxu1 }
0x1085   : > { %v3301_v35 = vpop.f32.mrb[52].mxu0  ;;  %v7610_v22 = vpop.f32.mrb[67].mxu1 }
0x1086   : > { %v7601_v24 = vpop.f32.mrb[53].mxu0  ;;  %7636 = vmatprep.mubr.msk.f32.mxu0 %vm702_vm0, %v3301_v35  ;;  %v6594_v35 = vld [vmem:[%s11133_s9 + $0x80] sm:$0xff] }
0x1087   : > { %7637 = vmatmul.mubr.msk.f32.gmra.mrb[56].mxu0 %vm702_vm0, %v3380_v23  ;;  %v8147_v23 = vpack.c.bf16 %v6597_v46, %v6595_v63 }
0x1089   : > { %8148 = vmatprep.subr.bf16.mxu1 %v8147_v23 }
0x1127   : > { %v3385_v34 = vpop.f32.mrb[68].mxu1 }
0x1128   : > { %v7613_v21 = vpop.f32.mrb[69].mxu1  ;;  %7639 = vmatprep.mubr.msk.f32.mxu0 %vm702_vm0, %v3385_v34 }
0x1129   : > { %v6599_v21 = vld [vmem:[%s11133_s9 + $0xa8] sm:$0xff] }
0x112b   : > { %v3390_v1 = vpop.f32.mrb[70].mxu1 }
0x112c   : > { %v7616_v27 = vpop.f32.mrb[71].mxu1  ;;  %7640 = vmatmul.mubr.msk.f32.gmra.mrb[58].mxu0 %vm702_vm0, %v3390_v1  ;;  %v6601_v1 = vld [vmem:[%s11133_s9 + $0xb8] sm:$0xff] }
0x112d   : > { %v8151_v27 = vpack.c.bf16 %v6601_v1, %v6599_v21 }
0x1154   : > { %v7635_v0 = vpop.f32.mrb[54].mxu0 }
0x1155   : > { %v3508_v52 = vadd.f32 %v7635_v0, %v9700_v20  ;;  %v3478_v42 = vpop.f32.mrb[55].mxu0  ;;  %v6600_v0 = vld [vmem:[%s11133_s9 + $0xb0] sm:$0xff] }
0x1156   : > { %v3507_v29 = vadd.f32 %v3478_v42, %v9695_v25  ;;  %v6603_v42 = vld [vmem:[%s11133_s9 + $0xc8] sm:$0xff] }
0x1157   : > { %v3518_v31 = vadd.f32 %v3516_v28, %v3508_v52 }
0x1158   : > { %v9976_v7 = vadd.f32 %v3516_v28, %v3507_v29  ;;  %v6605_v29 = vld [vmem:[%s11133_s9 + $0xd8] sm:$0xff] }
0x1159   : > { %v3526_v44 = vsel %vm702_vm0, %v3518_v31, 0.0 }
0x115a   : > { %v7638_v38 = vpop.f32.mrb[56].mxu0  ;;  %3527 = vadd.xlane.f32.xlu1 %v3526_v44  ;;  %v3523_v39 = vsel %vm702_vm0, %v9976_v7, 0.0  ;;  %v6602_v44 = vld [vmem:[%s11133_s9 + $0xc0] sm:$0xff] }
0x115b   : > { %v3510_v50 = vadd.f32 %v7638_v38, %v9710_v55  ;;  %v3488_v56 = vpop.f32.mrb[57].mxu0  ;;  %3524 = vadd.xlane.f32.xlu0 %v3523_v39  ;;  %v6604_v38 = vld [vmem:[%s11133_s9 + $0xd0] sm:$0xff] }
0x115c   : > { %v3509_v58 = vadd.f32 %v3488_v56, %v9705_v2  ;;  %v8157_v39 = vpack.c.bf16 %v6604_v38, %v6602_v44  ;;  %v6609_v56 = vld [vmem:[%s11133_s9 + $0xf8] sm:$0xff] }
0x115d   : > { %v9983_v20 = vadd.f32 %v3516_v28, %v3510_v50  ;;  %v6607_v50 = vld [vmem:[%s11133_s9 + $0xe8] sm:$0xff]  ;;  %v6629_v44 = vld [vmem:[%s11134_s10 + $0x198] sm:$0xff] }
0x115e   : > { %v3519_v45 = vadd.f32 %v3516_v28, %v3509_v58  ;;  %v8159_v58 = vpack.c.bf16 %v6609_v56, %v6607_v50  ;;  %v6613_v50 = vld [vmem:[%s11134_s10 + $0x118] sm:$0xff] }
0x115f   : > { %v3532_v25 = vsel %vm702_vm0, %v9983_v20, 0.0 }
0x1160   : > { %3533 = vadd.xlane.f32.xlu1 %v3532_v25  ;;  %v3529_v6 = vsel %vm702_vm0, %v3519_v45, 0.0  ;;  %v6608_v25 = vld [vmem:[%s11133_s9 + $0xf0] sm:$0xff] }
0x1161   : > { %3530 = vadd.xlane.f32.xlu0 %v3529_v6 }
0x11e7   : > { %v3528_v41 = vpop.xlane.xlu1 %3527 }
0x11e8   : > { %v3542_v61 = vmul.f32 0.015625, %v3528_v41  ;;  %v3525_v8 = vpop.xlane.xlu0 %3524 }
0x11e9   : > { %v3541_v19 = vmul.f32 0.015625, %v3525_v8 }
0x11ea   : > { %v9988_v62 = vsub.f32 %v3518_v31, %v3542_v61  ;;  %v8155_v31 = vpack.c.bf16 %v6605_v29, %v6603_v42  ;;  %v6611_v42 = vld [vmem:[%s11134_s10 + $0x108] sm:$0xff] }
0x11eb   : > { %v9991_v55 = vsub.f32 %v9976_v7, %v3541_v19 }
0x11ec   : > { %v3554_v2 = vmul.f32 %v9988_v62, %v9988_v62 }
0x11ed   : > { %v3534_v5 = vpop.xlane.xlu1 %3533  ;;  %v3553_v17 = vmul.f32 %v9991_v55, %v9991_v55 }
0x11ee   : > { %v3544_v9 = vmul.f32 0.015625, %v3534_v5  ;;  %v3531_v13 = vpop.xlane.xlu0 %3530  ;;  %v3562_v14 = vsel %vm702_vm0, %v3554_v2, 0.0 }
0x11ef   : > { %v3543_v10 = vmul.f32 0.015625, %v3531_v13  ;;  %3563 = vadd.xlane.f32.xlu1 %v3562_v14  ;;  %v3559_v47 = vsel %vm702_vm0, %v3553_v17, 0.0 }
0x11f0   : > { %v10000_v12 = vsub.f32 %v9983_v20, %v3544_v9  ;;  %3560 = vadd.xlane.f32.xlu0 %v3559_v47 }
0x11f1   : > { %v10002_v36 = vsub.f32 %v3519_v45, %v3543_v10  ;;  %v6606_v45 = vld [vmem:[%s11133_s9 + $0xe0] sm:$0xff] }
0x11f2   : > { %v3556_v32 = vmul.f32 %v10000_v12, %v10000_v12  ;;  %v8161_v6 = vpack.c.bf16 %v6608_v25, %v6606_v45  ;;  %v6631_v45 = vld [vmem:[%s11134_s10 + $0x1a8] sm:$0xff] }
0x11f3   : > { %v3555_v33 = vmul.f32 %v10002_v36, %v10002_v36 }
0x11f4   : > { %v3568_v60 = vsel %vm702_vm0, %v3556_v32, 0.0 }
0x11f5   : > { %3569 = vadd.xlane.f32.xlu1 %v3568_v60  ;;  %v3565_v16 = vsel %vm702_vm0, %v3555_v33, 0.0  ;;  %v10072_v33 = vrot.slane %v9818_v30, %v2089_v48 }
0x11f6   : > { %3566 = vadd.xlane.f32.xlu0 %v3565_v16  ;;  %v10077_v16 = vrot.slane %v9818_v30, %v2099_v59 }
0x11ff   : > { %v7641_v26 = vpop.f32.mrb[58].mxu0 }
0x1200   : > { %v3512_v37 = vadd.f32 %v7641_v26, %v9720_v11  ;;  %v3498_v18 = vpop.f32.mrb[59].mxu0  ;;  %v6596_v11 = vld [vmem:[%s11133_s9 + $0x90] sm:$0xff] }
0x1201   : > { %v3511_v15 = vadd.f32 %v3498_v18, %v9715_v40  ;;  %v8149_v22 = vpack.c.bf16 %v6596_v11, %v6594_v35 }
0x1202   : > { %v10018_v54 = vadd.f32 %v3516_v28, %v3512_v37 }
0x1203   : > { %v10026_v40 = vadd.f32 %v3516_v28, %v3511_v15  ;;  %8150 = vmatpush1.bf16.msra.mxu1 %v8149_v22  ;;  %v6598_v28 = vld [vmem:[%s11133_s9 + $0xa0] sm:$0xff] }
0x1204   : > { %v3538_v24 = vsel %vm702_vm0, %v10018_v54, 0.0  ;;  %v8153_v52 = vpack.c.bf16 %v6600_v0, %v6598_v28  ;;  %8152 = vmatprep.subr.bf16.mxu1 %v8151_v27  ;;  %v6626_v27 = vld [vmem:[%s11134_s10 + $0x180] sm:$0xff]  ;;  %v6627_v28 = vld [vmem:[%s11134_s10 + $0x188] sm:$0xff] }
0x1205   : > { %3539 = vadd.xlane.f32.xlu1 %v3538_v24  ;;  %v3535_v34 = vsel %vm702_vm0, %v10026_v40, 0.0  ;;  %v8163_v0 = vpack.c.bf16 %v6627_v28, %v6626_v27 }
0x1206   : > { %3536 = vadd.xlane.f32.xlu0 %v3535_v34 }
0x1207   : > { %8154 = vmatpush1.bf16.msra.mxu1 %v8153_v52  ;;  %v6610_v52 = vld [vmem:[%s11134_s10 + $0x100] sm:$0xff]  ;;  %8164 = vmatprep.subr.bf16.mxu0 %v8163_v0 }
0x1208   : > { %8156 = vmatprep.subr.bf16.mxu1 %v8155_v31  ;;  %v8165_v29 = vpack.c.bf16 %v6611_v42, %v6610_v52  ;;  %v6628_v31 = vld [vmem:[%s11134_s10 + $0x190] sm:$0xff] }
0x1209   : > { %v8167_v38 = vpack.c.bf16 %v6629_v44, %v6628_v31 }
0x120a   : > { %8166 = vmatpush3.bf16.msra.mxu0 %v8165_v29 }
0x120b   : > { %8158 = vmatpush1.bf16.msra.mxu1 %v8157_v39  ;;  %v6612_v39 = vld [vmem:[%s11134_s10 + $0x110] sm:$0xff]  ;;  %8168 = vmatprep.subr.bf16.mxu0 %v8167_v38 }
0x120c   : > { %8160 = vmatprep.subr.bf16.mxu1 %v8159_v58  ;;  %v8169_v56 = vpack.c.bf16 %v6613_v50, %v6612_v39  ;;  %v6630_v58 = vld [vmem:[%s11134_s10 + $0x1a0] sm:$0xff] }
0x120d   : > { %v8171_v25 = vpack.c.bf16 %v6631_v45, %v6630_v58 }
0x120e   : > { %8170 = vmatpush3.bf16.msra.mxu0 %v8169_v56 }
0x120f   : > { %8162 = vmatpush1.bf16.msra.mxu1 %v8161_v6  ;;  %v6614_v6 = vld [vmem:[%s11134_s10 + $0x120] sm:$0xff]  ;;  %8172 = vmatprep.subr.bf16.mxu0 %v8171_v25 }
0x1210   : > { %8195 = vmatprep.subr.bf16.mxu1 %v8777_v3 }
0x127c   : > { %v3564_v41 = vpop.xlane.xlu1 %3563 }
0x127d   : > { %v3578_v61 = vmul.f32 0.015625, %v3564_v41  ;;  %v3561_v8 = vpop.xlane.xlu0 %3560  ;;  %v6615_v41 = vld [vmem:[%s11134_s10 + $0x128] sm:$0xff] }
0x127e   : > { %v3577_v19 = vmul.f32 0.015625, %v3561_v8  ;;  %v6632_v8 = vld [vmem:[%s11134_s10 + $0x1b0] sm:$0xff] }
0x127f   : > { %v3584_v2 = vadd.f32 1e-05, %v3578_v61  ;;  %v8173_v61 = vpack.c.bf16 %v6615_v41, %v6614_v6 }
0x1280   : > { %v3583_v5 = vadd.f32 1e-05, %v3577_v19  ;;  %v6633_v19 = vld [vmem:[%s11134_s10 + $0x1b8] sm:$0xff] }
0x1281   : > { %8635 = vrsqrt.f32 %v3584_v2  ;;  %8174 = vmatpush3.bf16.msra.mxu0 %v8173_v61  ;;  %v8175_v2 = vpack.c.bf16 %v6633_v19, %v6632_v8 }
0x1282   : > { %8637 = vrsqrt.f32 %v3583_v5  ;;  %v3570_v17 = vpop.xlane.xlu1 %3569  ;;  %v6616_v5 = vld [vmem:[%s11134_s10 + $0x130] sm:$0xff] }
0x1283   : > { %v3580_v9 = vmul.f32 0.015625, %v3570_v17  ;;  %v3567_v13 = vpop.xlane.xlu0 %3566  ;;  %v6617_v17 = vld [vmem:[%s11134_s10 + $0x138] sm:$0xff]  ;;  %8176 = vmatprep.subr.bf16.mxu0 %v8175_v2 }
0x1284   : > { %v3579_v14 = vmul.f32 0.015625, %v3567_v13  ;;  %v6634_v13 = vld [vmem:[%s11134_s10 + $0x1c0] sm:$0xff] }
0x1285   : > { %v3586_v10 = vadd.f32 1e-05, %v3580_v9  ;;  %v8177_v9 = vpack.c.bf16 %v6617_v17, %v6616_v5 }
0x1286   : > { %v3585_v47 = vadd.f32 1e-05, %v3579_v14  ;;  %v6635_v14 = vld [vmem:[%s11134_s10 + $0x1c8] sm:$0xff] }
0x1287   : > { %8639 = vrsqrt.f32 %v3586_v10  ;;  %8178 = vmatpush3.bf16.msra.mxu0 %v8177_v9  ;;  %v8179_v10 = vpack.c.bf16 %v6635_v14, %v6634_v13 }
0x1288   : > { %8641 = vrsqrt.f32 %v3585_v47  ;;  %v6618_v47 = vld [vmem:[%s11134_s10 + $0x140] sm:$0xff] }
0x1289   : > { %8180 = vmatprep.subr.bf16.mxu0 %v8179_v10 }
0x128b   : > { %v8636_v32 = vpop.eup %8635 }
0x128c   : > { %v8638_v60 = vpop.eup %8637  ;;  %v3596_v37 = vmul.f32 %v8636_v32, %v9988_v62  ;;  %v6619_v32 = vld [vmem:[%s11134_s10 + $0x148] sm:$0xff] }
0x128d   : > { %v3595_v26 = vmul.f32 %v8638_v60, %v9991_v55  ;;  %v8181_v60 = vpack.c.bf16 %v6619_v32, %v6618_v47 }
0x128e   : > { %v3606_v46 = vmul.f32 %v10072_v33, %v3596_v37  ;;  %v6637_v37 = vld [vmem:[%s11134_s10 + $0x1d8] sm:$0xff] }
0x128f   : > { %v3605_v18 = vmul.f32 %v10072_v33, %v3595_v26  ;;  %8182 = vmatpush3.bf16.msra.mxu0 %v8181_v60  ;;  %v6636_v26 = vld [vmem:[%s11134_s10 + $0x1d0] sm:$0xff] }
0x1290   : > { %v3616_v62 = vadd.f32 %v10077_v16, %v3606_v46 }
0x1291   : > { %v8640_v15 = vpop.eup %8639  ;;  %v3615_v63 = vadd.f32 %v10077_v16, %v3605_v18  ;;  %v8183_v18 = vpack.c.bf16 %v6637_v37, %v6636_v26 }
0x1292   : > { %v8642_v23 = vpop.eup %8641  ;;  %v3540_v48 = vpop.xlane.xlu1 %3539  ;;  %v3598_v22 = vmul.f32 %v8640_v15, %v10000_v12  ;;  %v6620_v15 = vld [vmem:[%s11134_s10 + $0x150] sm:$0xff] }
0x1293   : > { %v3546_v35 = vmul.f32 0.015625, %v3540_v48  ;;  %v3537_v11 = vpop.xlane.xlu0 %3536  ;;  %6684 = vmatmul.mubr.msk.f32.vlgmr.msra.gmra.mrb[72].mxu1 %vm702_vm0, %v3615_v63  ;;  %v3597_v49 = vmul.f32 %v8642_v23, %v10002_v36  ;;  %v6621_v63 = vld [vmem:[%s11134_s10 + $0x158] sm:$0xff]  ;;  %8184 = vmatprep.subr.bf16.mxu0 %v8183_v18  ;;  %v6638_v23 = vld [vmem:[%s11134_s10 + $0x1e0] sm:$0xff]  ;;  %v6639_v48 = vld [vmem:[%s11134_s10 + $0x1e8] sm:$0xff] }
0x1294   : > { %v3545_v59 = vmul.f32 0.015625, %v3537_v11  ;;  %3720 = vmatprep.mubr.f32.mxu1 %v8779_v43  ;;  %v3608_v1 = vmul.f32 %v10072_v33, %v3598_v22  ;;  %v8185_v46 = vpack.c.bf16 %v6621_v63, %v6620_v15  ;;  %v6622_v11 = vld [vmem:[%s11134_s10 + $0x160] sm:$0xff] }
0x1295   : > { %v10088_v30 = vsub.f32 %v10018_v54, %v3546_v35  ;;  %v3607_v55 = vmul.f32 %v10072_v33, %v3597_v49  ;;  %v8187_v35 = vpack.c.bf16 %v6639_v48, %v6638_v23  ;;  %v6623_v49 = vld [vmem:[%s11134_s10 + $0x168] sm:$0xff] }
0x1296   : > { %v10094_v24 = vsub.f32 %v10026_v40, %v3545_v59  ;;  %v3618_v40 = vadd.f32 %v10077_v16, %v3608_v1  ;;  %8186 = vmatpush3.bf16.msra.mxu0 %v8185_v46  ;;  %v8189_v59 = vpack.c.bf16 %v6623_v49, %v6622_v11 }
0x1297   : > { %6685 = vmatmul.mubr.msk.f32.gmra.mrb[74].mxu1 %vm702_vm0, %v3616_v62  ;;  %v3558_v36 = vmul.f32 %v10088_v30, %v10088_v30  ;;  %v3617_v21 = vadd.f32 %v10077_v16, %v3607_v55  ;;  %8188 = vmatprep.subr.bf16.mxu0 %v8187_v35  ;;  %v6640_v62 = vld [vmem:[%s11134_s10 + $0x1f0] sm:$0xff]  ;;  %v6641_v55 = vld [vmem:[%s11134_s10 + $0x1f8] sm:$0xff] }
0x1298   : > { %3726 = vmatprep.mubr.f32.mxu1 %v8779_v43  ;;  %v3557_v54 = vmul.f32 %v10094_v24, %v10094_v24  ;;  %v8191_v22 = vpack.c.bf16 %v6641_v55, %v6640_v62 }
0x1299   : > { %v3574_v34 = vsel %vm702_vm0, %v3558_v36, 0.0  ;;  %v6624_v36 = vld [vmem:[%s11134_s10 + $0x170] sm:$0xff] }
0x129a   : > { %3575 = vadd.xlane.f32.xlu1 %v3574_v34  ;;  %v3571_v12 = vsel %vm702_vm0, %v3557_v54, 0.0  ;;  %8190 = vmatpush3.bf16.msra.mxu0 %v8189_v59  ;;  %v6625_v54 = vld [vmem:[%s11134_s10 + $0x178] sm:$0xff] }
0x129b   : > { %3572 = vadd.xlane.f32.xlu0 %v3571_v12  ;;  %6686 = vmatmul.mubr.msk.f32.gmra.mrb[76].mxu1 %vm702_vm0, %v3617_v21  ;;  %v8193_v34 = vpack.c.bf16 %v6625_v54, %v6624_v36 }
0x129c   : > { %3732 = vmatprep.mubr.f32.mxu1 %v8779_v43  ;;  %8192 = vmatprep.subr.bf16.mxu0 %v8191_v22 }
0x129e   : > { %8194 = vmatpush3.bf16.msra.mxu0 %v8193_v34 }
0x129f   : > { %6687 = vmatmul.mubr.msk.f32.gmra.mrb[78].mxu1 %vm702_vm0, %v3618_v40 }
0x12a0   : > { %3738 = vmatprep.mubr.f32.mxu1 %v8779_v43 }
0x1327   : > { %v3576_v21 = vpop.xlane.xlu1 %3575 }
0x1328   : > { %v3582_v1 = vmul.f32 0.015625, %v3576_v21  ;;  %v3573_v12 = vpop.xlane.xlu0 %3572 }
0x1329   : > { %v3581_v40 = vmul.f32 0.015625, %v3573_v12 }
0x132a   : > { %v3588_v27 = vadd.f32 1e-05, %v3582_v1 }
0x132b   : > { %v3587_v28 = vadd.f32 1e-05, %v3581_v40 }
0x132c   : > { %8643 = vrsqrt.f32 %v3588_v27 }
0x132d   : > { %8645 = vrsqrt.f32 %v3587_v28 }
0x1336   : > { %v8644_v0 = vpop.eup %8643 }
0x1337   : > { %v8646_v52 = vpop.eup %8645  ;;  %v3600_v29 = vmul.f32 %v8644_v0, %v10088_v30  ;;  %v6561_v30 = vld [vmem:[%s11174_s24 + $0x2] sm:$0x3] }
0x1338   : > { %v3599_v42 = vmul.f32 %v8646_v52, %v10094_v24  ;;  %v10222_v24 = vrot.slane %v6561_v30, %v9086_v53 }
0x1339   : > { %v3610_v38 = vmul.f32 %v10072_v33, %v3600_v29 }
0x133a   : > { %v3609_v31 = vmul.f32 %v10072_v33, %v3599_v42  ;;  %v10225_v33 = vrot.slane %v6561_v30, %v9092_v57 }
0x133b   : > { %v3620_v39 = vadd.f32 %v10077_v16, %v3610_v38 }
0x133c   : > { %v3619_v44 = vadd.f32 %v10077_v16, %v3609_v31 }
0x133e   : > { %6688 = vmatmul.mubr.msk.f32.gmra.mrb[80].mxu1 %vm702_vm0, %v3619_v44 }
0x133f   : > { %3744 = vmatprep.mubr.f32.mxu1 %v8779_v43 }
0x1342   : > { %6689 = vmatmul.mubr.msk.f32.gmra.mrb[82].mxu1 %vm702_vm0, %v3620_v39 }
0x1343   : > { %7658 = vmatprep.mubr.msk.f32.mxu1 %vm8778_vm1, %v8779_v43 }
0x1366   : > { %v3716_v50 = vpop.f32.mrb[72].mxu1 }
0x1367   : > { %v10228_v56 = vadd.f32 %v3716_v50, %v10222_v24  ;;  %v3718_v16 = vpop.f32.mrb[73].mxu1 }
0x1368   : > { %v3719_v58 = vadd.f32 %v3718_v16, %v10225_v33 }
0x1369   : > { %v6690_v45 = vmul.f32 -1.702, %v10228_v56 }
0x136a   : > { %v6691_v43 = vmul.f32 -1.702, %v3719_v58  ;;  %v3722_v25 = vpop.f32.mrb[74].mxu1 }
0x136b   : > { %v3775_v6 = vmul.f32 1.442695, %v6690_v45  ;;  %v10233_v41 = vadd.f32 %v3722_v25, %v10222_v24  ;;  %v3724_v53 = vpop.f32.mrb[75].mxu1 }
0x136c   : > { %v3777_v61 = vmul.f32 1.442695, %v6691_v43  ;;  %v3725_v57 = vadd.f32 %v3724_v53, %v10225_v33 }
0x136d   : > { %8647 = vpow2.f32 %v3775_v6  ;;  %v6692_v8 = vmul.f32 -1.702, %v10233_v41 }
0x136e   : > { %8649 = vpow2.f32 %v3777_v61  ;;  %v6693_v19 = vmul.f32 -1.702, %v3725_v57  ;;  %v3728_v2 = vpop.f32.mrb[76].mxu1 }
0x136f   : > { %v3779_v5 = vmul.f32 1.442695, %v6692_v8  ;;  %v3729_v17 = vadd.f32 %v3728_v2, %v10222_v24  ;;  %v3730_v9 = vpop.f32.mrb[77].mxu1 }
0x1370   : > { %v3781_v13 = vmul.f32 1.442695, %v6693_v19  ;;  %v3731_v14 = vadd.f32 %v3730_v9, %v10225_v33 }
0x1371   : > { %8651 = vpow2.f32 %v3779_v5  ;;  %v6694_v10 = vmul.f32 -1.702, %v3729_v17 }
0x1372   : > { %8653 = vpow2.f32 %v3781_v13  ;;  %v6695_v47 = vmul.f32 -1.702, %v3731_v14  ;;  %v3734_v32 = vpop.f32.mrb[78].mxu1 }
0x1373   : > { %v3783_v60 = vmul.f32 1.442695, %v6694_v10  ;;  %v3735_v26 = vadd.f32 %v3734_v32, %v10222_v24  ;;  %v3736_v37 = vpop.f32.mrb[79].mxu1 }
0x1374   : > { %v3785_v18 = vmul.f32 1.442695, %v6695_v47  ;;  %v3737_v15 = vadd.f32 %v3736_v37, %v10225_v33 }
0x1375   : > { %8655 = vpow2.f32 %v3783_v60  ;;  %v6696_v63 = vmul.f32 -1.702, %v3735_v26 }
0x1376   : > { %8657 = vpow2.f32 %v3785_v18  ;;  %v6697_v46 = vmul.f32 -1.702, %v3737_v15 }
0x1377   : > { %v8648_v23 = vpop.eup %8647  ;;  %v3787_v48 = vmul.f32 1.442695, %v6696_v63 }
0x1378   : > { %v8650_v35 = vpop.eup %8649  ;;  %v3799_v11 = vadd.f32 1.0, %v8648_v23  ;;  %v3789_v49 = vmul.f32 1.442695, %v6697_v46 }
0x1379   : > { %v3800_v59 = vadd.f32 1.0, %v8650_v35  ;;  %8659 = vpow2.f32 %v3787_v48 }
0x137a   : > { %8661 = vrcp.f32 %v3799_v11 }
0x137b   : > { %v8652_v62 = vpop.eup %8651  ;;  %8663 = vrcp.f32 %v3800_v59 }
0x137c   : > { %v8654_v55 = vpop.eup %8653  ;;  %v3801_v22 = vadd.f32 1.0, %v8652_v62  ;;  %8665 = vpow2.f32 %v3789_v49 }
0x137d   : > { %v3802_v36 = vadd.f32 1.0, %v8654_v55 }
0x137e   : > { %8667 = vrcp.f32 %v3801_v22  ;;  %v6702_v22 = vld [vmem:[%s11171_s4 + $0x18] ss:$0 sm:$0xff] }
0x137f   : > { %v8656_v54 = vpop.eup %8655  ;;  %8669 = vrcp.f32 %v3802_v36 }
0x1380   : > { %v8658_v34 = vpop.eup %8657  ;;  %v3803_v21 = vadd.f32 1.0, %v8656_v54 }
0x1381   : > { %v3804_v1 = vadd.f32 1.0, %v8658_v34 }
0x1382   : > { %8671 = vrcp.f32 %v3803_v21 }
0x1383   : > { %v8660_v12 = vpop.eup %8659  ;;  %8673 = vrcp.f32 %v3804_v1 }
0x1384   : > { %v8662_v40 = vpop.eup %8661  ;;  %v3805_v27 = vadd.f32 1.0, %v8660_v12 }
0x1385   : > { %v8664_v28 = vpop.eup %8663  ;;  %v3835_v42 = vmul.f32 %v8662_v40, %v10228_v56 }
0x1386   : > { %v8666_v0 = vpop.eup %8665  ;;  %v3836_v52 = vmul.f32 %v8664_v28, %v3719_v58  ;;  %8675 = vrcp.f32 %v3805_v27 }
0x1387   : > { %v3806_v29 = vadd.f32 1.0, %v8666_v0 }
0x1388   : > { %v8668_v31 = vpop.eup %8667  ;;  %3915 = vmatprep.mubr.f32.mxu0 %v3836_v52 }
0x1389   : > { %v8670_v44 = vpop.eup %8669  ;;  %8677 = vrcp.f32 %v3806_v29  ;;  %3916 = vmatmul.mubr.f32.vlgmr.msra.gmra.mrb[60].mxu0 %v3835_v42  ;;  %v3837_v39 = vmul.f32 %v8668_v31, %v10233_v41 }
0x138a   : > { %v3838_v38 = vmul.f32 %v8670_v44, %v3725_v57 }
0x138c   : > { %v8672_v30 = vpop.eup %8671  ;;  %3920 = vmatprep.mubr.f32.mxu0 %v3838_v38 }
0x138d   : > { %v8674_v50 = vpop.eup %8673  ;;  %3921 = vmatmul.mubr.f32.gmra.mrb[62].mxu0 %v3837_v39  ;;  %v3839_v45 = vmul.f32 %v8672_v30, %v3729_v17 }
0x138e   : > { %v3840_v16 = vmul.f32 %v8674_v50, %v3731_v14 }
0x1390   : > { %3924 = vmatprep.mubr.f32.mxu0 %v3840_v16  ;;  %v8676_v58 = vpop.eup %8675 }
0x1391   : > { %3925 = vmatmul.mubr.f32.gmra.mrb[64].mxu0 %v3839_v45  ;;  %v3841_v25 = vmul.f32 %v8676_v58, %v3735_v26 }
0x1393   : > { %v8678_v56 = vpop.eup %8677 }
0x1394   : > { %v3842_v43 = vmul.f32 %v8678_v56, %v3737_v15 }
0x1396   : > { %3928 = vmatprep.mubr.f32.mxu0 %v3842_v43 }
0x1397   : > { %3929 = vmatmul.mubr.f32.gmra.mrb[66].mxu0 %v3841_v25 }
0x1411   : > { %v3740_v6 = vpop.f32.mrb[80].mxu1 }
0x1412   : > { %v3741_v53 = vadd.f32 %v3740_v6, %v10222_v24  ;;  %v3742_v61 = vpop.f32.mrb[81].mxu1 }
0x1413   : > { %v3743_v41 = vadd.f32 %v3742_v61, %v10225_v33  ;;  %v3982_v61 = vld [vmem:[%s11175_s6] sm:$0xff] }
0x1414   : > { %v6698_v57 = vmul.f32 -1.702, %v3741_v53 }
0x1415   : > { %v6699_v8 = vmul.f32 -1.702, %v3743_v41  ;;  %v3746_v19 = vpop.f32.mrb[82].mxu1 }
0x1416   : > { %v3791_v2 = vmul.f32 1.442695, %v6698_v57  ;;  %v3747_v5 = vadd.f32 %v3746_v19, %v10222_v24  ;;  %v3748_v17 = vpop.f32.mrb[83].mxu1  ;;  %v3985_v19 = vld [vmem:[%s11175_s6 + $0x18] sm:$0xff] }
0x1417   : > { %v3793_v9 = vmul.f32 1.442695, %v6699_v8  ;;  %v3749_v13 = vadd.f32 %v3748_v17, %v10225_v33  ;;  %v3984_v8 = vld [vmem:[%s11175_s6 + $0x10] sm:$0xff]  ;;  %v3987_v17 = vld [vmem:[%s11175_s6 + $0x28] sm:$0xff] }
0x1418   : > { %8679 = vpow2.f32 %v3791_v2  ;;  %v6700_v14 = vmul.f32 -1.702, %v3747_v5  ;;  %v8199_v2 = vpack.c.bf16 %v3985_v19, %v3984_v8 }
0x1419   : > { %8681 = vpow2.f32 %v3793_v9  ;;  %v6701_v10 = vmul.f32 -1.702, %v3749_v13 }
0x141a   : > { %v3795_v47 = vmul.f32 1.442695, %v6700_v14  ;;  %v3989_v14 = vld [vmem:[%s11175_s6 + $0x38] sm:$0xff] }
0x141b   : > { %v3797_v32 = vmul.f32 1.442695, %v6701_v10 }
0x141c   : > { %8683 = vpow2.f32 %v3795_v47 }
0x141d   : > { %8685 = vpow2.f32 %v3797_v32 }
0x1422   : > { %v8680_v60 = vpop.eup %8679 }
0x1423   : > { %v8682_v26 = vpop.eup %8681  ;;  %v3807_v37 = vadd.f32 1.0, %v8680_v60 }
0x1424   : > { %v3808_v18 = vadd.f32 1.0, %v8682_v26 }
0x1425   : > { %8687 = vrcp.f32 %v3807_v37 }
0x1426   : > { %v8684_v15 = vpop.eup %8683  ;;  %8689 = vrcp.f32 %v3808_v18 }
0x1427   : > { %v8686_v24 = vpop.eup %8685  ;;  %v3809_v63 = vadd.f32 1.0, %v8684_v15 }
0x1428   : > { %v3810_v46 = vadd.f32 1.0, %v8686_v24  ;;  %v8699_v24 = vld [vmem:[%s11169_s1] sm:$0xf] }
0x1429   : > { %8691 = vrcp.f32 %v3809_v63  ;;  %v3973_v63 = vrot.slane %v8699_v24, %v9296_v4 }
0x142a   : > { %8693 = vrcp.f32 %v3810_v46 }
0x142f   : > { %v8688_v33 = vpop.eup %8687 }
0x1430   : > { %v8690_v23 = vpop.eup %8689  ;;  %v3843_v35 = vmul.f32 %v8688_v33, %v3741_v53 }
0x1431   : > { %v3844_v48 = vmul.f32 %v8690_v23, %v3743_v41  ;;  %v3983_v41 = vld [vmem:[%s11175_s6 + $0x8] sm:$0xff] }
0x1432   : > { %v8196_v57 = vpack.c.bf16 %v3983_v41, %v3982_v61 }
0x1433   : > { %v8692_v11 = vpop.eup %8691  ;;  %3933 = vmatprep.mubr.f32.mxu0 %v3844_v48 }
0x1434   : > { %v8694_v49 = vpop.eup %8693  ;;  %3934 = vmatmul.mubr.f32.gmra.mrb[68].mxu0 %v3843_v35  ;;  %v3845_v62 = vmul.f32 %v8692_v11, %v3747_v5  ;;  %8197 = vmatpush3.bf16.msra.mxu1 %v8196_v57  ;;  %v3986_v5 = vld [vmem:[%s11175_s6 + $0x20] sm:$0xff]  ;;  %v3979_v35 = vrot.slane %v8699_v24, %v9281_v51 }
0x1435   : > { %v3846_v59 = vmul.f32 %v8694_v49, %v3749_v13  ;;  %8198 = vmatprep.subr.bf16.mxu1 %v8777_v3  ;;  %v8202_v9 = vpack.c.bf16 %v3987_v17, %v3986_v5  ;;  %v3988_v13 = vld [vmem:[%s11175_s6 + $0x30] sm:$0xff] }
0x1436   : > { %v8205_v10 = vpack.c.bf16 %v3989_v14, %v3988_v13 }
0x1437   : > { %3937 = vmatprep.mubr.f32.mxu0 %v3846_v59 }
0x1438   : > { %3938 = vmatmul.mubr.f32.gmra.mrb[70].mxu0 %v3845_v62  ;;  %8200 = vmatpush3.bf16.msra.mxu1 %v8199_v2 }
0x1439   : > { %8201 = vmatprep.subr.bf16.mxu1 %v8777_v3 }
0x143c   : > { %8203 = vmatpush3.bf16.msra.mxu1 %v8202_v9 }
0x143d   : > { %8204 = vmatprep.subr.bf16.mxu1 %v8777_v3 }
0x1440   : > { %8206 = vmatpush3.bf16.msra.mxu1 %v8205_v10 }
0x145c   : > { %v7096_v55 = vpop.f32.mrb[60].mxu0 }
0x145d   : > { %v7097_v36 = vpop.f32.mrb[61].mxu0 }
0x145e   : > { %v7098_v54 = vadd.f32 %v7097_v36, %v7096_v55 }
0x1460   : > { %v3918_v34 = vadd.f32 %v7098_v54, %v6702_v22  ;;  %v7099_v21 = vpop.f32.mrb[62].mxu0 }
0x1461   : > { %v7100_v1 = vpop.f32.mrb[63].mxu0 }
0x1462   : > { %v3942_v12 = vadd.f32 %v3918_v34, %v9976_v7 }
0x1464   : > { %v7102_v40 = vpop.f32.mrb[64].mxu0  ;;  %v3944_v27 = vsel %vm702_vm0, %v3942_v12, 0.0 }
0x1465   : > { %v7103_v28 = vpop.f32.mrb[65].mxu0  ;;  %3945 = vadd.xlane.f32.xlu1 %v3944_v27 }
0x146a   : > { %v7105_v0 = vpop.f32.mrb[66].mxu0 }
0x146b   : > { %v7106_v52 = vpop.f32.mrb[67].mxu0 }
0x146c   : > { %v7107_v42 = vadd.f32 %v7106_v52, %v7105_v0 }
0x146e   : > { %v3931_v29 = vadd.f32 %v7107_v42, %v6702_v22 }
0x1470   : > { %v3943_v31 = vadd.f32 %v3931_v29, %v9983_v20 }
0x1472   : > { %v3947_v44 = vsel %vm702_vm0, %v3943_v31, 0.0 }
0x1473   : > { %3948 = vadd.xlane.f32.xlu0 %v3947_v44 }
0x14f2   : > { %v3946_v38 = vpop.xlane.xlu1 %3945 }
0x14f3   : > { %v3950_v39 = vmul.f32 0.015625, %v3946_v38 }
0x14f5   : > { %v3952_v30 = vsub.f32 %v3942_v12, %v3950_v39 }
0x14f7   : > { %v3954_v50 = vmul.f32 %v3952_v30, %v3952_v30 }
0x14f9   : > { %v3956_v7 = vsel %vm702_vm0, %v3954_v50, 0.0 }
0x14fa   : > { %3957 = vadd.xlane.f32.xlu1 %v3956_v7 }
0x1500   : > { %v3949_v16 = vpop.xlane.xlu0 %3948 }
0x1501   : > { %v3951_v45 = vmul.f32 0.015625, %v3949_v16 }
0x1503   : > { %v3953_v58 = vsub.f32 %v3943_v31, %v3951_v45 }
0x1505   : > { %v3955_v56 = vmul.f32 %v3953_v58, %v3953_v58 }
0x1507   : > { %v7108_v43 = vpop.f32.mrb[68].mxu0  ;;  %v3959_v25 = vsel %vm702_vm0, %v3955_v56, 0.0 }
0x1508   : > { %3960 = vadd.xlane.f32.xlu0 %v3959_v25  ;;  %v7109_v6 = vpop.f32.mrb[69].mxu0 }
0x150b   : > { %v7111_v20 = vpop.f32.mrb[70].mxu0 }
0x150c   : > { %v7112_v53 = vpop.f32.mrb[71].mxu0 }
0x1587   : > { %v3958_v47 = vpop.xlane.xlu1 %3957 }
0x1588   : > { %v3962_v32 = vmul.f32 0.015625, %v3958_v47 }
0x158a   : > { %v3964_v60 = vadd.f32 1e-05, %v3962_v32 }
0x158c   : > { %8695 = vrsqrt.f32 %v3964_v60 }
0x1595   : > { %v3961_v26 = vpop.xlane.xlu0 %3960 }
0x1596   : > { %v3963_v37 = vmul.f32 0.015625, %v3961_v26  ;;  %v8696_v15 = vpop.eup %8695 }
0x1597   : > { %v3968_v46 = vmul.f32 %v8696_v15, %v3952_v30 }
0x1598   : > { %v3965_v18 = vadd.f32 1e-05, %v3963_v37 }
0x1599   : > { %v3974_v23 = vmul.f32 %v3973_v63, %v3968_v46 }
0x159a   : > { %8697 = vrsqrt.f32 %v3965_v18 }
0x159b   : > { %v3980_v49 = vadd.f32 %v3979_v35, %v3974_v23 }
0x15a4   : > { %v8698_v3 = vpop.eup %8697 }
0x15a5   : > { %v3969_v33 = vmul.f32 %v8698_v3, %v3953_v58 }
0x15a7   : > { %v3975_v48 = vmul.f32 %v3973_v63, %v3969_v33 }
0x15a9   : > { %v3981_v11 = vadd.f32 %v3979_v35, %v3975_v48 }
0x15ab   : > { %v3992_v59 = vrot.slane %v3981_v11, 7 }
0x15ad   : > { %v3994_v62 = vsel %vm3993_vm5, %v3992_v59, %v3980_v49 }
0x15ae   : > { %7659 = vmatmul.mubr.msk.f32.vlgmr.msra.gmra.mrb[84].mxu1 %vm702_vm0, %v3994_v62 }
0x1681   : > { %v4063_v55 = vpop.f32.mrb[84].mxu1 }
0x1682   : > { %4067 = vst [vmem:[%s8915_s23] sm:$0x3] %v4063_v55  ;;  %v7660_v22 = vpop.f32.mrb[85].mxu1 }
0x1683 PF: > { %p6704_p5 = scmp.ne.s32.totalorder %s8906_s28, 1 }
0x1684   : > { %v4073_v4 = vlaneseq (!%p6704_p5)  ;;  %v4095_v36 = vld [vmem:[%s11136_s12] sm:$0xff] (!%p6704_p5)  ;;  %v4096_v51 = vld [vmem:[%s11136_s12 + $0x8] sm:$0xff] (!%p6704_p5)  ;;  %v4097_v34 = vld [vmem:[%s11136_s12 + $0x10] sm:$0xff] (!%p6704_p5)  ;;  %v8781_v57 = vmov (!%p6704_p5), 1.0   ;;  %vm4278_vm8 = vcmask (!%p6704_p5), 523264   ;;  %vm8783_vm9 = vmmov (!%p6704_p5), 0  }
0x1685   : > { %4071 = sbr.rel (%p6704_p5) target bundleno = 11237 (0x2be5), region = 116  ;;  %v8207_v54 = vpack.c.bf16 (!%p6704_p5), %v4096_v51, %v4095_v36  ;;  %v4098_v21 = vld [vmem:[%s11136_s12 + $0x18] sm:$0xff] (!%p6704_p5)  ;;  %v4099_v40 = vld [vmem:[%s11136_s12 + $0x20] sm:$0xff] (!%p6704_p5)  ;;  %v4100_v27 = vld [vmem:[%s11136_s12 + $0x28] sm:$0xff] (!%p6704_p5)  ;;  %vm4717_vm11 = vcmask (!%p6704_p5), 64512   ;;  %vm6289_vm12 = vcmask (!%p6704_p5), 58368  }
0x1686   : > { %v10303_v1 = vshrl.u32 (!%p6704_p5), %v4073_v4, 7  ;;  %v8211_v12 = vpack.c.bf16 (!%p6704_p5), %v4098_v21, %v4097_v34  ;;  %v4072_v28 = vld [vmem:[%s11135_s11] sm:$0x3] (!%p6704_p5)  ;;  %v8215_v42 = vpack.c.bf16 (!%p6704_p5), %v4100_v27, %v4099_v40  ;;  %v4101_v31 = vld [vmem:[%s11136_s12 + $0x30] sm:$0xff] (!%p6704_p5)  ;;  %v4102_v44 = vld [vmem:[%s11136_s12 + $0x38] sm:$0xff] (!%p6704_p5)  ;;  %v10352_v61 = vand.u32 (!%p6704_p5), 127, %v4073_v4 }
0x1687   : > { %8208 = vmatprep.subr.bf16.mxu0 (!%p6704_p5), %v8207_v54  ;;  %v8219_v39 = vpack.c.bf16 (!%p6704_p5), %v4102_v44, %v4101_v31  ;;  %v4103_v30 = vld [vmem:[%s11136_s12 + $0x40] sm:$0xff] (!%p6704_p5)  ;;  %v4104_v50 = vld [vmem:[%s11136_s12 + $0x48] sm:$0xff] (!%p6704_p5)  ;;  %v4105_v16 = vld [vmem:[%s11136_s12 + $0x50] sm:$0xff] (!%p6704_p5)  ;;  %vm6354_vm0 = vcmask (!%p6704_p5), 1041409  }
0x1688   : > { %v10315_v0 = vsub.s32 (!%p6704_p5), 0, %v10303_v1  ;;  %v10318_v52 = vsub.s32 (!%p6704_p5), 1, %v10303_v1  ;;  %8210 = vmatpush3.bf16.msra.mxu0 (!%p6704_p5), %v8207_v54  ;;  %v8223_v7 = vpack.c.bf16 (!%p6704_p5), %v4104_v50, %v4103_v30  ;;  %v4106_v45 = vld [vmem:[%s11136_s12 + $0x58] sm:$0xff] (!%p6704_p5)  ;;  %v4107_v56 = vld [vmem:[%s11136_s12 + $0x60] sm:$0xff] (!%p6704_p5)  ;;  %v4108_v43 = vld [vmem:[%s11136_s12 + $0x68] sm:$0xff] (!%p6704_p5)  ;;  %vm4191_vm10 = vcmp.gt.s32.totalorder (!%p6704_p5), %v10352_v61, %v10303_v1 }
0x1689   : > { %8212 = vmatprep.subr.bf16.mxu0 (!%p6704_p5), %v8211_v12  ;;  %v8227_v58 = vpack.c.bf16 (!%p6704_p5), %v4106_v45, %v4105_v16  ;;  %v8231_v25 = vpack.c.bf16 (!%p6704_p5), %v4108_v43, %v4107_v56  ;;  %v4109_v6 = vld [vmem:[%s11136_s12 + $0x70] sm:$0xff] (!%p6704_p5)  ;;  %v4110_v20 = vld [vmem:[%s11136_s12 + $0x78] sm:$0xff] (!%p6704_p5)  ;;  %v4186_v19 = vld [vmem:[%s11137_s13] sm:$0xff] (!%p6704_p5) }
0x168a   : > { %v4078_v29 = vrot.slane (!%p6704_p5), %v4072_v28, %v10315_v0  ;;  %v4085_v38 = vrot.slane (!%p6704_p5), %v4072_v28, %v10318_v52  ;;  %v8235_v53 = vpack.c.bf16 (!%p6704_p5), %v4110_v20, %v4109_v6  ;;  %v4196_v46 = vld [vmem:[%s11142_s18] sm:$0xff] (!%p6704_p5)  ;;  %v4197_v3 = vld [vmem:[%s11142_s18 + $0x8] sm:$0xff] (!%p6704_p5)  ;;  %v4198_v23 = vld [vmem:[%s11142_s18 + $0x10] sm:$0xff] (!%p6704_p5) }
0x168b   : > { %v8239_v33 = vpack.c.bf16 (!%p6704_p5), %v4197_v3, %v4196_v46  ;;  %v4199_v48 = vld [vmem:[%s11142_s18 + $0x18] sm:$0xff] (!%p6704_p5)  ;;  %v4200_v35 = vld [vmem:[%s11142_s18 + $0x20] sm:$0xff] (!%p6704_p5)  ;;  %v4201_v49 = vld [vmem:[%s11142_s18 + $0x28] sm:$0xff] (!%p6704_p5) }
0x168c   : > { %4080 = vbcast.lane.b32.xlu0 %v4078_v29, 256  ;;  %8214 = vmatpush3.bf16.msra.mxu0 %v8211_v12  ;;  %v8243_v11 = vpack.c.bf16 %v4199_v48, %v4198_v23  ;;  %v8247_v59 = vpack.c.bf16 %v4201_v49, %v4200_v35  ;;  %v4202_v62 = vld [vmem:[%s11142_s18 + $0x30] sm:$0xff]  ;;  %v4203_v55 = vld [vmem:[%s11142_s18 + $0x38] sm:$0xff]  ;;  %v6709_v4 = vld [vmem:[%s11142_s18 + $0x40] sm:$0xff] }
0x168d   : > { %8216 = vmatprep.subr.bf16.mxu0 %v8215_v42  ;;  %8240 = vmatprep.subr.bf16.mxu1 %v8239_v33  ;;  %v8251_v22 = vpack.c.bf16 %v4203_v55, %v4202_v62  ;;  %v6710_v36 = vld [vmem:[%s11142_s18 + $0x48] sm:$0xff]  ;;  %v10404_v28 = vld [vmem:[%s11140_s16] sm:$0xff]  ;;  %v6712_v16 = vld [vmem:[%s11142_s18 + $0x58] sm:$0xff] }
0x168e   : > { %8242 = vmatpush3.bf16.msra.mxu1 %v8239_v33  ;;  %v8255_v51 = vpack.c.bf16 %v6710_v36, %v6709_v4  ;;  %v4315_v44 = vrot.slane %v10404_v28, %v10318_v52  ;;  %v6713_v43 = vld [vmem:[%s11142_s18 + $0x60] sm:$0xff]  ;;  %v6715_v20 = vld [vmem:[%s11142_s18 + $0x70] sm:$0xff] }
0x168f   : > { %8244 = vmatprep.subr.bf16.mxu1 %v8243_v11 }
0x1690   : > { %4087 = vbcast.lane.b32.xlu0 %v4085_v38, 256  ;;  %8218 = vmatpush3.bf16.msra.mxu0 %v8215_v42  ;;  %v4309_v42 = vrot.slane %v10404_v28, %v10315_v0 }
0x1691   : > { %8220 = vmatprep.subr.bf16.mxu0 %v8219_v39 }
0x1692   : > { %8246 = vmatpush3.bf16.msra.mxu1 %v8243_v11 }
0x1693   : > { %8248 = vmatprep.subr.bf16.mxu1 %v8247_v59 }
0x1694   : > { %8222 = vmatpush3.bf16.msra.mxu0 %v8219_v39 }
0x1695   : > { %8224 = vmatprep.subr.bf16.mxu0 %v8223_v7 }
0x1696   : > { %8250 = vmatpush3.bf16.msra.mxu1 %v8247_v59  ;;  %v4484_v59 = vsub.s32 4, %v10303_v1 }
0x1697   : > { %8252 = vmatprep.subr.bf16.mxu1 %v8251_v22 }
0x1698   : > { %8226 = vmatpush3.bf16.msra.mxu0 %v8223_v7  ;;  %v6711_v7 = vld [vmem:[%s11142_s18 + $0x50] sm:$0xff]  ;;  %v4485_v62 = vrot.slane %v10404_v28, %v4484_v59 }
0x1699   : > { %8228 = vmatprep.subr.bf16.mxu0 %v8227_v58  ;;  %v8259_v56 = vpack.c.bf16 %v6712_v16, %v6711_v7 }
0x169a   : > { %8254 = vmatpush3.bf16.msra.mxu1 %v8251_v22 }
0x169b   : > { %8256 = vmatprep.subr.bf16.mxu1 %v8255_v51 }
0x169c   : > { %8230 = vmatpush3.bf16.msra.mxu0 %v8227_v58 }
0x169d   : > { %8232 = vmatprep.subr.bf16.mxu0 %v8231_v25 }
0x16a0   : > { %8234 = vmatpush3.bf16.msra.mxu0 %v8231_v25  ;;  %v6714_v25 = vld [vmem:[%s11142_s18 + $0x68] sm:$0xff] }
0x16a1   : > { %8236 = vmatprep.subr.bf16.mxu0 %v8235_v53  ;;  %v8263_v6 = vpack.c.bf16 %v6714_v25, %v6713_v43  ;;  %v4222_v25 = vld [vmem:[%s11143_s19] sm:$0xff] }
0x16a4   : > { %8238 = vmatpush3.bf16.msra.mxu0 %v8235_v53  ;;  %v6716_v53 = vld [vmem:[%s11142_s18 + $0x78] sm:$0xff] }
0x16fe   : > { %v4081_v41 = vpop.permute.xlu0 %4080 }
0x16ff   : > { %vm4089_vm6 = vcmp.eq.s32.totalorder %v10352_v61, %v4081_v41  ;;  %v8267_v41 = vpack.c.bf16 %v6716_v53, %v6715_v20  ;;  %v4224_v20 = vld [vmem:[%s11143_s19 + $0x10] sm:$0xff] }
0x1700   : > { %7693 = vmatprep.mubr.msk.f32.mxu0 %vm4089_vm6, %v8781_v57 }
0x1702   : > { %v4088_v8 = vpop.permute.xlu0 %4087 }
0x1703   : > { %vm4090_vm7 = vcmp.eq.s32.totalorder %v10352_v61, %v4088_v8  ;;  %v6718_v8 = vld [vmem:[%s11142_s18 + $0x88] sm:$0xff] }
0x1704   : > { %7694 = vmatmul.mubr.msk.f32.vlgmr.msra.gmra.mrb[0].mxu0 %vm4090_vm7, %v8781_v57  ;;  %v6717_v57 = vld [vmem:[%s11142_s18 + $0x80] sm:$0xff] }
0x17d7   : > { %v7695_v2 = vpop.f32.mrb[0].mxu0 }
0x17d8   : > { %v4177_v5 = vpop.f32.mrb[1].mxu0  ;;  %v10361_v9 = vadd.f32 %v7695_v2, %v4186_v19  ;;  %v6719_v2 = vld [vmem:[%s11142_s18 + $0x90] sm:$0xff] }
0x17d9   : > { %v10359_v17 = vadd.f32 %v4186_v19, %v4177_v5  ;;  %v8271_v19 = vpack.c.bf16 %v6718_v8, %v6717_v57  ;;  %v6720_v5 = vld [vmem:[%s11142_s18 + $0x98] sm:$0xff]  ;;  %v4226_v8 = vld [vmem:[%s11143_s19 + $0x20] sm:$0xff] }
0x17da   : > { %v4282_v14 = vsel %vm4278_vm8, %v10361_v9, 0.0 }
0x17db   : > { %v4279_v13 = vsel %vm4278_vm8, %v10359_v17, 0.0 }
0x17dc   : > { %4280 = vadd.xlane.f32.xlu1 %v4279_v13  ;;  %v8275_v13 = vpack.c.bf16 %v6720_v5, %v6719_v2 }
0x17e0   : > { %4283 = vadd.xlane.f32.xlu1 %v4282_v14  ;;  %v6721_v14 = vld [vmem:[%s11142_s18 + $0xa0] sm:$0xff] }
0x1869   : > { %v4281_v10 = vpop.xlane.xlu1 %4280 }
0x186a   : > { %v4286_v47 = vmul.f32 0.015625, %v4281_v10  ;;  %v6722_v10 = vld [vmem:[%s11142_s18 + $0xa8] sm:$0xff] }
0x186c   : > { %v4288_v32 = vsub.f32 %v10359_v17, %v4286_v47  ;;  %v8279_v47 = vpack.c.bf16 %v6722_v10, %v6721_v14 }
0x186d   : > { %v4284_v60 = vpop.xlane.xlu1 %4283 }
0x186e   : > { %v4287_v26 = vmul.f32 0.015625, %v4284_v60  ;;  %v4290_v37 = vmul.f32 %v4288_v32, %v4288_v32  ;;  %v6724_v60 = vld [vmem:[%s11142_s18 + $0xb8] sm:$0xff] }
0x1870   : > { %v4289_v18 = vsub.f32 %v10361_v9, %v4287_v26  ;;  %v4292_v15 = vsel %vm4278_vm8, %v4290_v37, 0.0  ;;  %v8782_v37 = vmov 0.0  }
0x1871   : > { %4293 = vadd.xlane.f32.xlu0 %v4292_v15  ;;  %7753 = vmatprep.subr.mxu0 %v8782_v37 }
0x1872   : > { %v4291_v24 = vmul.f32 %v4289_v18, %v4289_v18  ;;  %7755 = vmatprep.mubr.msk.f32.mxu0 %vm8783_vm9, %v8782_v37 }
0x1874   : > { %v4295_v63 = vsel %vm4278_vm8, %v4291_v24, 0.0  ;;  %v4405_v24 = vsub.s32 3, %v10303_v1 }
0x1875   : > { %4296 = vadd.xlane.f32.xlu1 %v4295_v63  ;;  %v4320_v63 = vsub.s32 2, %v10303_v1 }
0x1876   : > { %v4406_v46 = vrot.slane %v10404_v28, %v4405_v24 }
0x1877   : > { %v4321_v3 = vrot.slane %v10404_v28, %v4320_v63 }
0x18fe   : > { %v4294_v54 = vpop.xlane.xlu0 %4293 }
0x18ff   : > { %v4298_v34 = vmul.f32 0.015625, %v4294_v54 }
0x1901   : > { %v4300_v21 = vadd.f32 1e-05, %v4298_v34 }
0x1902   : > { %v4297_v12 = vpop.xlane.xlu1 %4296 }
0x1903   : > { %8700 = vrsqrt.f32 %v4300_v21  ;;  %v4299_v40 = vmul.f32 0.015625, %v4297_v12  ;;  %v10487_v21 = vsel %vm4191_vm10, -1e+09, %v8782_v37 }
0x1905   : > { %v4301_v27 = vadd.f32 1e-05, %v4299_v40 }
0x1907   : > { %8702 = vrsqrt.f32 %v4301_v27 }
0x190d   : > { %v8701_v29 = vpop.eup %8700 }
0x190e   : > { %v4304_v31 = vmul.f32 %v8701_v29, %v4288_v32  ;;  %v6723_v32 = vld [vmem:[%s11142_s18 + $0xb0] sm:$0xff] }
0x190f   : > { %v8283_v26 = vpack.c.bf16 %v6724_v60, %v6723_v32  ;;  %v4228_v60 = vld [vmem:[%s11143_s19 + $0x30] sm:$0xff] }
0x1910   : > { %v4310_v38 = vmul.f32 %v4309_v42, %v4304_v31 }
0x1911   : > { %v8703_v39 = vpop.eup %8702 }
0x1912   : > { %v4316_v30 = vadd.f32 %v4315_v44, %v4310_v38  ;;  %v4305_v50 = vmul.f32 %v8703_v39, %v4289_v18 }
0x1914   : > { %7712 = vmatprep.mubr.msk.f32.mxu1 %vm4278_vm8, %v4316_v30  ;;  %v4311_v45 = vmul.f32 %v4309_v42, %v4305_v50 }
0x1916   : > { %v4317_v58 = vadd.f32 %v4315_v44, %v4311_v45 }
0x1918   : > { %7713 = vmatmul.mubr.msk.f32.vlgmr.msra.gmra.mrb[0].mxu1 %vm4278_vm8, %v4317_v58 }
0x1919   : > { %8258 = vmatpush3.bf16.msra.mxu1 %v8255_v51  ;;  %7731 = vmatprep.mubr.msk.f32.mxu1 %vm4278_vm8, %v4316_v30 }
0x191a   : > { %8260 = vmatprep.subr.bf16.mxu1 %v8259_v56 }
0x191d   : > { %8262 = vmatpush3.bf16.msra.mxu1 %v8259_v56 }
0x191e   : > { %8264 = vmatprep.subr.bf16.mxu1 %v8263_v6 }
0x1921   : > { %8266 = vmatpush3.bf16.msra.mxu1 %v8263_v6  ;;  %v4223_v6 = vld [vmem:[%s11143_s19 + $0x8] sm:$0xff] }
0x1922   : > { %8268 = vmatprep.subr.bf16.mxu1 %v8267_v41  ;;  %v8287_v53 = vpack.c.bf16 %v4223_v6, %v4222_v25  ;;  %v4239_v25 = vld [vmem:[%s11144_s20 + $0x48] sm:$0xff]  ;;  %v4241_v6 = vld [vmem:[%s11144_s20 + $0x58] sm:$0xff] }
0x1925   : > { %8270 = vmatpush3.bf16.msra.mxu1 %v8267_v41  ;;  %v4225_v41 = vld [vmem:[%s11143_s19 + $0x18] sm:$0xff] }
0x1926   : > { %8272 = vmatprep.subr.bf16.mxu1 %v8271_v19  ;;  %v8291_v57 = vpack.c.bf16 %v4225_v41, %v4224_v20  ;;  %v8311_v20 = vpack.c.bf16 %v4241_v6, %v4239_v25  ;;  %v4240_v41 = vld [vmem:[%s11144_s20 + $0x50] sm:$0xff]  ;;  %v4253_v25 = vld [vmem:[%s11145_s21 + $0x38] sm:$0xff] }
0x1928   : > { %7732 = vmatmul.mubr.msk.f32.vlgmr.msra.gmra.mrb[2].mxu1 %vm4278_vm8, %v4317_v58 }
0x1929   : > { %8274 = vmatpush3.bf16.msra.mxu1 %v8271_v19  ;;  %7750 = vmatprep.mubr.msk.f32.mxu1 %vm4278_vm8, %v4316_v30  ;;  %v4227_v19 = vld [vmem:[%s11143_s19 + $0x28] sm:$0xff] }
0x192a   : > { %8276 = vmatprep.subr.bf16.mxu1 %v8275_v13  ;;  %v8295_v2 = vpack.c.bf16 %v4227_v19, %v4226_v8  ;;  %v4243_v8 = vld [vmem:[%s11144_s20 + $0x68] sm:$0xff]  ;;  %v4245_v19 = vld [vmem:[%s11144_s20 + $0x78] sm:$0xff] }
0x192d   : > { %8278 = vmatpush3.bf16.msra.mxu1 %v8275_v13 }
0x192e   : > { %8280 = vmatprep.subr.bf16.mxu1 %v8279_v47 }
0x1931   : > { %8282 = vmatpush3.bf16.msra.mxu1 %v8279_v47 }
0x1932   : > { %8284 = vmatprep.subr.bf16.mxu1 %v8283_v26 }
0x1935   : > { %8286 = vmatpush3.bf16.msra.mxu1 %v8283_v26  ;;  %v4229_v26 = vld [vmem:[%s11143_s19 + $0x38] sm:$0xff] }
0x1936   : > { %7758 = vmatprep.subr.mxu1 %v8782_v37 }
0x1938   : > { %7751 = vmatmul.mubr.msk.f32.vlgmr.msra.gmra.mrb[4].mxu1 %vm4278_vm8, %v4317_v58 }
0x1939   : > { %7760 = vmatprep.mubr.msk.f32.mxu1 %vm8783_vm9, %v8782_v37 }
0x19eb   : > { %v7714_v18 = vpop.f32.mrb[0].mxu1 }
0x19ec   : > { %v4394_v15 = vpop.f32.mrb[1].mxu1  ;;  %v4400_v11 = vadd.f32 %v7714_v18, %v4321_v3  ;;  %v8299_v18 = vpack.c.bf16 %v4229_v26, %v4228_v60 }
0x19ed   : > { %v4395_v49 = vadd.f32 %v4394_v15, %v4321_v3 }
0x19fb   : > { %v7733_v33 = vpop.f32.mrb[2].mxu1 }
0x19fc   : > { %v4479_v23 = vadd.f32 %v7733_v33, %v4406_v46  ;;  %v4473_v48 = vpop.f32.mrb[3].mxu1 }
0x19fd   : > { %v4474_v35 = vadd.f32 %v4473_v48, %v4406_v46 }
0x19fe   : > { %7759 = vmatpush3.xpose.msk.msra.mxu1 %vm4278_vm8, %v4479_v23  ;;  %v4971_v23 = vsub.s32 5, %v10303_v1 }
0x19ff   : > { %7754 = vmatpush3.xpose.msk.msra.mxu0 %vm4278_vm8, %v4474_v35  ;;  %7763 = vmatprep.subr.mxu1 %v8782_v37 }
0x1a00   : > { %8288 = vmatprep.subr.bf16.mxu0 %v8287_v53  ;;  %v4972_v35 = vrot.slane %v10404_v28, %v4971_v23 }
0x1a01   : > { %7761 = vmatmul.mubr.msk.f32.vlgmr.msra.gmra.mrb[6].mxu1 %vm4278_vm8, %v4400_v11 }
0x1a02   : > { %7756 = vmatmul.mubr.msk.f32.vlgmr.msra.gmra.mrb[2].mxu0 %vm4278_vm8, %v4395_v49  ;;  %7765 = vmatprep.mubr.msk.f32.mxu1 %vm8783_vm9, %v8782_v37 }
0x1a03   : > { %8290 = vmatpush3.bf16.msra.mxu0 %v8287_v53  ;;  %v4238_v53 = vld [vmem:[%s11144_s20 + $0x40] sm:$0xff] }
0x1a04   : > { %8292 = vmatprep.subr.bf16.mxu0 %v8291_v57 }
0x1a07   : > { %8294 = vmatpush3.bf16.msra.mxu0 %v8291_v57  ;;  %v8313_v57 = vpack.c.bf16 %v4240_v41, %v4238_v53  ;;  %v4271_v53 = vld [vmem:[%s11145_s21 + $0xc8] sm:$0xff] }
0x1a08   : > { %8296 = vmatprep.subr.bf16.mxu0 %v8295_v2 }
0x1a0b   : > { %v7752_v55 = vpop.f32.mrb[4].mxu1  ;;  %8298 = vmatpush3.bf16.msra.mxu0 %v8295_v2  ;;  %v4242_v2 = vld [vmem:[%s11144_s20 + $0x60] sm:$0xff] }
0x1a0c   : > { %v4558_v22 = vadd.f32 %v7752_v55, %v4485_v62  ;;  %v4552_v4 = vpop.f32.mrb[5].mxu1  ;;  %8300 = vmatprep.subr.bf16.mxu0 %v8299_v18 }
0x1a0d   : > { %v4553_v36 = vadd.f32 %v4552_v4, %v4485_v62 }
0x1a0f   : > { %7764 = vmatpush3.msra.mxu1 %v4553_v36  ;;  %8302 = vmatpush3.bf16.msra.mxu0 %v8299_v18 }
0x1a10   : > { %7768 = vmatprep.subr.mxu1 %v8782_v37 }
0x1ad4   : > { %v4709_v51 = vpop.f32.mrb[6].mxu1 }
0x1ad5   : > { %v4633_v54 = vpop.f32.mrb[2].mxu0  ;;  %v7762_v34 = vpop.f32.mrb[7].mxu1  ;;  %v4714_v12 = vmul.f32 0.125, %v4709_v51 }
0x1ad6   : > { %v4713_v40 = vmul.f32 0.125, %v4633_v54  ;;  %v7757_v27 = vpop.f32.mrb[3].mxu0 }
0x1ad7   : > { %v4716_v31 = vadd.f32 %v4714_v12, %v10487_v21 }
0x1ad8   : > { %v4715_v42 = vadd.f32 %v4713_v40, %v10487_v21 }
0x1ad9   : > { %v4721_v44 = vsel %vm4717_vm11, %v4716_v31, -inf }
0x1ada   : > { %v4718_v29 = vsel %vm4717_vm11, %v4715_v42, -inf }
0x1adb   : > { %4719 = vmax.xlane.f32.xlu1 %v4718_v29 }
0x1adf   : > { %4722 = vmax.xlane.f32.xlu1 %v4721_v44  ;;  %v4233_v44 = vld [vmem:[%s11144_s20 + $0x18] sm:$0xff] }
0x1b68   : > { %v4720_v38 = vpop.xlane.xlu1 %4719 }
0x1b69   : > { %v4724_v39 = vsub.f32 %v4715_v42, %v4720_v38 }
0x1b6b   : > { %v4726_v30 = vmul.f32 1.442695, %v4724_v39  ;;  %v4230_v39 = vld [vmem:[%s11144_s20] sm:$0xff] }
0x1b6c   : > { %v4723_v50 = vpop.xlane.xlu1 %4722 }
0x1b6d   : > { %8704 = vpow2.f32 %v4726_v30  ;;  %v4725_v7 = vsub.f32 %v4716_v31, %v4723_v50  ;;  %v4231_v31 = vld [vmem:[%s11144_s20 + $0x8] sm:$0xff]  ;;  %v4232_v30 = vld [vmem:[%s11144_s20 + $0x10] sm:$0xff] }
0x1b6e   : > { %v8303_v38 = vpack.c.bf16 %v4233_v44, %v4231_v31  ;;  %v8305_v50 = vpack.c.bf16 %v4232_v30, %v4230_v39  ;;  %v4249_v31 = vld [vmem:[%s11145_s21 + $0x18] sm:$0xff]  ;;  %v4267_v39 = vld [vmem:[%s11145_s21 + $0xa8] sm:$0xff] }
0x1b6f   : > { %v4728_v16 = vmul.f32 1.442695, %v4725_v7  ;;  %v4235_v7 = vld [vmem:[%s11144_s20 + $0x28] sm:$0xff] }
0x1b71   : > { %8706 = vpow2.f32 %v4728_v16  ;;  %v4237_v16 = vld [vmem:[%s11144_s20 + $0x38] sm:$0xff] }
0x1b77   : > { %v8705_v45 = vpop.eup %8704 }
0x1b78   : > { %v4730_v58 = vsel %vm4717_vm11, %v8705_v45, 0.0 }
0x1b79   : > { %4731 = vadd.xlane.f32.xlu1 %v4730_v58  ;;  %v4234_v58 = vld [vmem:[%s11144_s20 + $0x20] sm:$0xff] }
0x1b7b   : > { %v8707_v56 = vpop.eup %8706 }
0x1b7c   : > { %v4733_v43 = vsel %vm4717_vm11, %v8707_v56, 0.0 }
0x1b7d   : > { %4734 = vadd.xlane.f32.xlu1 %v4733_v43 }
0x1c06   : > { %v4732_v5 = vpop.xlane.xlu1 %4731 }
0x1c07   : > { %8708 = vrcp.f32 %v4732_v5  ;;  %v8315_v5 = vpack.c.bf16 %v4245_v19, %v4243_v8  ;;  %v4255_v8 = vld [vmem:[%s11145_s21 + $0x48] sm:$0xff] }
0x1c0a   : > { %v4735_v13 = vpop.xlane.xlu1 %4734 }
0x1c0b   : > { %8710 = vrcp.f32 %v4735_v13  ;;  %v4244_v13 = vld [vmem:[%s11144_s20 + $0x70] sm:$0xff] }
0x1c11   : > { %v8709_v14 = vpop.eup %8708 }
0x1c12   : > { %v4738_v10 = vmul.f32 %v8709_v14, %v8705_v45  ;;  %v8307_v45 = vpack.c.bf16 %v4237_v16, %v4235_v7  ;;  %v8317_v14 = vpack.c.bf16 %v4244_v13, %v4242_v2  ;;  %v4251_v7 = vld [vmem:[%s11145_s21 + $0x28] sm:$0xff]  ;;  %v4272_v2 = vld [vmem:[%s11145_s21 + $0xd0] sm:$0xff] }
0x1c14   : > { %7766 = vmatmul.mubr.msk.f32.vlgmr.msra.gmra.mrb[8].mxu1 %vm4717_vm11, %v4738_v10 }
0x1c15   : > { %v8711_v47 = vpop.eup %8710  ;;  %7769 = vmatpush3.msra.mxu1 %v4558_v22  ;;  %7770 = vmatprep.mubr.msk.f32.mxu1 %vm8783_vm9, %v8782_v37 }
0x1c16   : > { %v4739_v32 = vmul.f32 %v8711_v47, %v8707_v56  ;;  %8304 = vmatprep.subr.bf16.mxu1 %v8303_v38  ;;  %v4236_v56 = vld [vmem:[%s11144_s20 + $0x30] sm:$0xff]  ;;  %v4266_v38 = vld [vmem:[%s11145_s21 + $0xa0] sm:$0xff] }
0x1c17   : > { %v8309_v43 = vpack.c.bf16 %v4236_v56, %v4234_v58  ;;  %v8327_v30 = vpack.c.bf16 %v4267_v39, %v4266_v38  ;;  %v4269_v58 = vld [vmem:[%s11145_s21 + $0xb8] sm:$0xff] }
0x1c18   : > { %7771 = vmatmul.mubr.msk.f32.vlgmr.msra.gmra.mrb[10].mxu1 %vm4717_vm11, %v4739_v32 }
0x1c19   : > { %5094 = vmatprep.mubr.f32.mxu1 %v8782_v37  ;;  %8306 = vmatpush1.bf16.msra.mxu1 %v8305_v50  ;;  %v4250_v50 = vld [vmem:[%s11145_s21 + $0x20] sm:$0xff] }
0x1c1a   : > { %8308 = vmatprep.subr.bf16.mxu1 %v8307_v45  ;;  %v8329_v16 = vpack.c.bf16 %v4251_v7, %v4250_v50  ;;  %v4268_v45 = vld [vmem:[%s11145_s21 + $0xb0] sm:$0xff] }
0x1c1b   : > { %v8331_v56 = vpack.c.bf16 %v4269_v58, %v4268_v45 }
0x1c1d   : > { %8310 = vmatpush1.bf16.msra.mxu1 %v8309_v43  ;;  %v4252_v43 = vld [vmem:[%s11145_s21 + $0x30] sm:$0xff] }
0x1c1e   : > { %8312 = vmatprep.subr.bf16.mxu1 %v8311_v20  ;;  %v8333_v6 = vpack.c.bf16 %v4253_v25, %v4252_v43  ;;  %v4270_v20 = vld [vmem:[%s11145_s21 + $0xc0] sm:$0xff] }
0x1c1f   : > { %v8335_v41 = vpack.c.bf16 %v4271_v53, %v4270_v20 }
0x1c21   : > { %8314 = vmatpush1.bf16.msra.mxu1 %v8313_v57  ;;  %v4254_v57 = vld [vmem:[%s11145_s21 + $0x40] sm:$0xff] }
0x1c22   : > { %8316 = vmatprep.subr.bf16.mxu1 %v8315_v5  ;;  %v8337_v19 = vpack.c.bf16 %v4255_v8, %v4254_v57  ;;  %v4273_v5 = vld [vmem:[%s11145_s21 + $0xd8] sm:$0xff] }
0x1c23   : > { %v8339_v13 = vpack.c.bf16 %v4273_v5, %v4272_v2 }
0x1c25   : > { %8318 = vmatpush1.bf16.msra.mxu1 %v8317_v14  ;;  %v4256_v14 = vld [vmem:[%s11145_s21 + $0x50] sm:$0xff] }
0x1ce7   : > { %v4809_v15 = vpop.f32.mrb[8].mxu1 }
0x1ce8   : > { %v7767_v46 = vpop.f32.mrb[9].mxu1  ;;  %7789 = vmatprep.mubr.msk.f32.mxu0 %vm4278_vm8, %v4809_v15  ;;  %v5003_v15 = vsub.s32 6, %v10303_v1 }
0x1ce9   : > { %v5009_v46 = vsub.s32 7, %v10303_v1  ;;  %v6813_v1 = vld [vmem:[%s11145_s21 + $0x180] sm:$0xff] }
0x1ceb   : > { %v4882_v3 = vpop.f32.mrb[10].mxu1 }
0x1cec   : > { %v7772_v33 = vpop.f32.mrb[11].mxu1  ;;  %7790 = vmatmul.mubr.msk.f32.vlgmr.msra.gmra.mrb[4].mxu0 %vm4278_vm8, %v4882_v3  ;;  %v5004_v3 = vrot.slane %v10404_v28, %v5003_v15 }
0x1dbf   : > { %v7791_v48 = vpop.f32.mrb[4].mxu0 }
0x1dc0   : > { %v4958_v11 = vpop.f32.mrb[5].mxu0  ;;  %v4968_v49 = vadd.f32 %v7791_v48, %v10361_v9 }
0x1dc1   : > { %v4967_v62 = vadd.f32 %v4958_v11, %v10359_v17 }
0x1dc2   : > { %v10534_v22 = vadd.f32 %v4972_v35, %v4968_v49 }
0x1dc3   : > { %v10532_v55 = vadd.f32 %v4972_v35, %v4967_v62  ;;  %v5010_v35 = vrot.slane %v10404_v28, %v5009_v46  ;;  %v4263_v28 = vld [vmem:[%s11145_s21 + $0x88] sm:$0xff] }
0x1dc4   : > { %v4978_v36 = vsel %vm4278_vm8, %v10534_v22, 0.0 }
0x1dc5   : > { %v4975_v4 = vsel %vm4278_vm8, %v10532_v55, 0.0 }
0x1dc6   : > { %4976 = vadd.xlane.f32.xlu1 %v4975_v4 }
0x1dca   : > { %4979 = vadd.xlane.f32.xlu1 %v4978_v36 }
0x1e53   : > { %v4977_v51 = vpop.xlane.xlu1 %4976 }
0x1e54   : > { %v4981_v54 = vmul.f32 0.015625, %v4977_v51 }
0x1e56   : > { %v4983_v34 = vsub.f32 %v10532_v55, %v4981_v54  ;;  %v4262_v54 = vld [vmem:[%s11145_s21 + $0x80] sm:$0xff] }
0x1e57   : > { %v4980_v12 = vpop.xlane.xlu1 %4979 }
0x1e58   : > { %v4982_v9 = vmul.f32 0.015625, %v4980_v12  ;;  %v4985_v40 = vmul.f32 %v4983_v34, %v4983_v34  ;;  %v4246_v12 = vld [vmem:[%s11145_s21] sm:$0xff] }
0x1e5a   : > { %v4984_v17 = vsub.f32 %v10534_v22, %v4982_v9  ;;  %v4987_v27 = vsel %vm4278_vm8, %v4985_v40, 0.0  ;;  %v4247_v9 = vld [vmem:[%s11145_s21 + $0x8] sm:$0xff] }
0x1e5b   : > { %4988 = vadd.xlane.f32.xlu1 %v4987_v27  ;;  %v8321_v40 = vpack.c.bf16 %v4247_v9, %v4246_v12  ;;  %v4265_v27 = vld [vmem:[%s11145_s21 + $0x98] sm:$0xff] }
0x1e5c   : > { %v4986_v42 = vmul.f32 %v4984_v17, %v4984_v17 }
0x1e5e   : > { %v4990_v29 = vsel %vm4278_vm8, %v4986_v42, 0.0 }
0x1e5f   : > { %4991 = vadd.xlane.f32.xlu0 %v4990_v29  ;;  %v4248_v29 = vld [vmem:[%s11145_s21 + $0x10] sm:$0xff] }
0x1e60   : > { %v8325_v44 = vpack.c.bf16 %v4249_v31, %v4248_v29 }
0x1ee8   : > { %v4989_v10 = vpop.xlane.xlu1 %4988 }
0x1ee9   : > { %v4993_v47 = vmul.f32 0.015625, %v4989_v10  ;;  %v4257_v10 = vld [vmem:[%s11145_s21 + $0x58] sm:$0xff] }
0x1eeb   : > { %v4995_v32 = vadd.f32 1e-05, %v4993_v47  ;;  %v8341_v47 = vpack.c.bf16 %v4257_v10, %v4256_v14  ;;  %v6745_v10 = vld [vmem:[%s11140_s16 + $0x8] ss:$0 sm:$0xff] }
0x1eec   : > { %v4992_v60 = vpop.xlane.xlu0 %4991 }
0x1eed   : > { %8712 = vrsqrt.f32 %v4995_v32  ;;  %v4994_v26 = vmul.f32 0.015625, %v4992_v60  ;;  %v4274_v32 = vld [vmem:[%s11145_s21 + $0xe0] sm:$0xff]  ;;  %v4275_v60 = vld [vmem:[%s11145_s21 + $0xe8] sm:$0xff] }
0x1eef   : > { %v4996_v18 = vadd.f32 1e-05, %v4994_v26  ;;  %v8343_v26 = vpack.c.bf16 %v4275_v60, %v4274_v32 }
0x1ef1   : > { %8714 = vrsqrt.f32 %v4996_v18  ;;  %v4258_v18 = vld [vmem:[%s11145_s21 + $0x60] sm:$0xff] }
0x1ef7   : > { %v8713_v33 = vpop.eup %8712 }
0x1ef8   : > { %v4999_v48 = vmul.f32 %v8713_v33, %v4983_v34  ;;  %v8319_v34 = vpack.c.bf16 %v4263_v28, %v4262_v54 }
0x1efa   : > { %v5005_v11 = vmul.f32 %v5004_v3, %v4999_v48  ;;  %8320 = vmatprep.subr.bf16.mxu0 %v8319_v34  ;;  %v4276_v48 = vld [vmem:[%s11145_s21 + $0xf0] sm:$0xff] }
0x1efb   : > { %v8715_v49 = vpop.eup %8714  ;;  %8322 = vmatpush3.bf16.msra.mxu0 %v8321_v40 }
0x1efc   : > { %v5011_v62 = vadd.f32 %v5010_v35, %v5005_v11  ;;  %v5000_v4 = vmul.f32 %v8715_v49, %v4984_v17  ;;  %v4264_v17 = vld [vmem:[%s11145_s21 + $0x90] sm:$0xff] }
0x1efd   : > { %v8323_v42 = vpack.c.bf16 %v4265_v27, %v4264_v17  ;;  %v4260_v49 = vld [vmem:[%s11145_s21 + $0x70] sm:$0xff] }
0x1efe   : > { %6739 = vmatmul.mubr.msk.f32.vlgmr.msra.gmra.mrb[12].mxu1 %vm4278_vm8, %v5011_v62  ;;  %v5006_v36 = vmul.f32 %v5004_v3, %v5000_v4  ;;  %v4259_v3 = vld [vmem:[%s11145_s21 + $0x68] sm:$0xff]  ;;  %v4261_v62 = vld [vmem:[%s11145_s21 + $0x78] sm:$0xff] }
0x1eff   : > { %5100 = vmatprep.mubr.f32.mxu1 %v8782_v37  ;;  %8324 = vmatprep.subr.bf16.mxu0 %v8323_v42  ;;  %v8345_v33 = vpack.c.bf16 %v4259_v3, %v4258_v18  ;;  %v8349_v4 = vpack.c.bf16 %v4261_v62, %v4260_v49 }
0x1f00   : > { %v5012_v51 = vadd.f32 %v5010_v35, %v5006_v36  ;;  %8326 = vmatpush3.bf16.msra.mxu0 %v8325_v44  ;;  %v4277_v35 = vld [vmem:[%s11145_s21 + $0xf8] sm:$0xff]  ;;  %v4195_v36 = vld [vmem:[%s11141_s17] sm:$0x3] }
0x1f01   : > { %8328 = vmatprep.subr.bf16.mxu0 %v8327_v30  ;;  %v8347_v11 = vpack.c.bf16 %v4277_v35, %v4276_v48  ;;  %v5021_v54 = vrot.slane %v4195_v36, %v10318_v52 }
0x1f02   : > { %6740 = vmatmul.mubr.msk.f32.gmra.mrb[14].mxu1 %vm4278_vm8, %v5012_v51  ;;  %v5017_v51 = vrot.slane %v4195_v36, %v10315_v0 }
0x1f04   : > { %8330 = vmatpush3.bf16.msra.mxu0 %v8329_v16 }
0x1f05   : > { %8332 = vmatprep.subr.bf16.mxu0 %v8331_v56 }
0x1f08   : > { %8334 = vmatpush3.bf16.msra.mxu0 %v8333_v6 }
0x1f09   : > { %8336 = vmatprep.subr.bf16.mxu0 %v8335_v41 }
0x1f0c   : > { %8338 = vmatpush3.bf16.msra.mxu0 %v8337_v19 }
0x1f0d   : > { %8340 = vmatprep.subr.bf16.mxu0 %v8339_v13 }
0x1f10   : > { %8342 = vmatpush3.bf16.msra.mxu0 %v8341_v47 }
0x1f11   : > { %8344 = vmatprep.subr.bf16.mxu0 %v8343_v26 }
0x1f14   : > { %8346 = vmatpush3.bf16.msra.mxu0 %v8345_v33 }
0x1f15   : > { %8348 = vmatprep.subr.bf16.mxu0 %v8347_v11 }
0x1f18   : > { %8350 = vmatpush3.bf16.msra.mxu0 %v8349_v4 }
0x1fd1   : > { %v5096_v28 = vpop.f32.mrb[12].mxu1 }
0x1fd2   : > { %v5097_v34 = vadd.f32 %v5096_v28, %v5017_v51  ;;  %v5098_v12 = vpop.f32.mrb[13].mxu1 }
0x1fd3   : > { %v5099_v9 = vadd.f32 %v5098_v12, %v5021_v54 }
0x1fd4   : > { %v6741_v40 = vmul.f32 -1.702, %v5097_v34 }
0x1fd5   : > { %v6742_v17 = vmul.f32 -1.702, %v5099_v9  ;;  %v5102_v27 = vpop.f32.mrb[14].mxu1 }
0x1fd6   : > { %v5115_v42 = vmul.f32 1.442695, %v6741_v40  ;;  %v5103_v29 = vadd.f32 %v5102_v27, %v5017_v51  ;;  %v5104_v31 = vpop.f32.mrb[15].mxu1  ;;  %v6750_v40 = vld [vmem:[%s11142_s18 + $0xc8] sm:$0xff]  ;;  %v6765_v27 = vld [vmem:[%s11142_s18 + $0x140] sm:$0xff] }
0x1fd7   : > { %v5117_v44 = vmul.f32 1.442695, %v6742_v17  ;;  %v5105_v38 = vadd.f32 %v5104_v31, %v5021_v54  ;;  %v6751_v31 = vld [vmem:[%s11142_s18 + $0xd0] sm:$0xff] }
0x1fd8   : > { %8716 = vpow2.f32 %v5115_v42  ;;  %v6743_v39 = vmul.f32 -1.702, %v5103_v29  ;;  %v6766_v42 = vld [vmem:[%s11142_s18 + $0x148] sm:$0xff] }
0x1fd9   : > { %8718 = vpow2.f32 %v5117_v44  ;;  %v6744_v30 = vmul.f32 -1.702, %v5105_v38  ;;  %v6752_v44 = vld [vmem:[%s11142_s18 + $0xd8] sm:$0xff] }
0x1fda   : > { %v5119_v50 = vmul.f32 1.442695, %v6743_v39  ;;  %v6767_v39 = vld [vmem:[%s11142_s18 + $0x150] sm:$0xff] }
0x1fdb   : > { %v5121_v7 = vmul.f32 1.442695, %v6744_v30  ;;  %v6768_v30 = vld [vmem:[%s11142_s18 + $0x158] sm:$0xff] }
0x1fdc   : > { %8720 = vpow2.f32 %v5119_v50  ;;  %v8387_v50 = vpack.c.bf16 %v6768_v30, %v6767_v39 }
0x1fdd   : > { %8722 = vpow2.f32 %v5121_v7  ;;  %v6753_v7 = vld [vmem:[%s11142_s18 + $0xe0] sm:$0xff] }
0x1fe2   : > { %v8717_v16 = vpop.eup %8716 }
0x1fe3   : > { %v8719_v45 = vpop.eup %8718  ;;  %v5123_v58 = vadd.f32 1.0, %v8717_v16  ;;  %v6754_v16 = vld [vmem:[%s11142_s18 + $0xe8] sm:$0xff] }
0x1fe4   : > { %v5124_v56 = vadd.f32 1.0, %v8719_v45  ;;  %v8359_v45 = vpack.c.bf16 %v6754_v16, %v6753_v7 }
0x1fe5   : > { %8724 = vrcp.f32 %v5123_v58  ;;  %v6769_v58 = vld [vmem:[%s11142_s18 + $0x160] sm:$0xff] }
0x1fe6   : > { %v8721_v43 = vpop.eup %8720  ;;  %8726 = vrcp.f32 %v5124_v56  ;;  %v6770_v56 = vld [vmem:[%s11142_s18 + $0x168] sm:$0xff] }
0x1fe7   : > { %v8723_v25 = vpop.eup %8722  ;;  %v5125_v6 = vadd.f32 1.0, %v8721_v43  ;;  %v8391_v43 = vpack.c.bf16 %v6770_v56, %v6769_v58 }
0x1fe8   : > { %v5126_v20 = vadd.f32 1.0, %v8723_v25  ;;  %v6755_v25 = vld [vmem:[%s11142_s18 + $0xf0] sm:$0xff] }
0x1fe9   : > { %8728 = vrcp.f32 %v5125_v6  ;;  %v6756_v6 = vld [vmem:[%s11142_s18 + $0xf8] sm:$0xff] }
0x1fea   : > { %8730 = vrcp.f32 %v5126_v20  ;;  %v8363_v20 = vpack.c.bf16 %v6756_v6, %v6755_v25 }
0x1fef   : > { %v8725_v53 = vpop.eup %8724 }
0x1ff0   : > { %v8727_v41 = vpop.eup %8726  ;;  %v5135_v8 = vmul.f32 %v8725_v53, %v5097_v34  ;;  %v6771_v53 = vld [vmem:[%s11142_s18 + $0x170] sm:$0xff] }
0x1ff1   : > { %v5136_v57 = vmul.f32 %v8727_v41, %v5099_v9  ;;  %v6749_v9 = vld [vmem:[%s11142_s18 + $0xc0] sm:$0xff]  ;;  %v6772_v41 = vld [vmem:[%s11142_s18 + $0x178] sm:$0xff] }
0x1ff2   : > { %v8351_v17 = vpack.c.bf16 %v6750_v40, %v6749_v9  ;;  %v6763_v9 = vld [vmem:[%s11142_s18 + $0x130] sm:$0xff]  ;;  %v6764_v40 = vld [vmem:[%s11142_s18 + $0x138] sm:$0xff] }
0x1ff3   : > { %v8729_v19 = vpop.eup %8728  ;;  %5207 = vmatprep.mubr.f32.mxu0 %v5136_v57  ;;  %v8395_v57 = vpack.c.bf16 %v6772_v41, %v6771_v53 }
0x1ff4   : > { %v8731_v2 = vpop.eup %8730  ;;  %5208 = vmatmul.mubr.f32.vlgmr.msra.gmra.mrb[6].mxu0 %v5135_v8  ;;  %v5137_v13 = vmul.f32 %v8729_v19, %v5103_v29  ;;  %v8383_v29 = vpack.c.bf16 %v6766_v42, %v6765_v27  ;;  %8352 = vmatprep.subr.bf16.mxu1 %v8351_v17  ;;  %v6757_v8 = vld [vmem:[%s11142_s18 + $0x100] sm:$0xff]  ;;  %v6758_v19 = vld [vmem:[%s11142_s18 + $0x108] sm:$0xff] }
0x1ff5   : > { %v5138_v5 = vmul.f32 %v8731_v2, %v5105_v38  ;;  %8354 = vmatpush3.bf16.msra.mxu1 %v8351_v17  ;;  %v8355_v38 = vpack.c.bf16 %v6752_v44, %v6751_v31  ;;  %v8367_v2 = vpack.c.bf16 %v6758_v19, %v6757_v8  ;;  %v8379_v17 = vpack.c.bf16 %v6764_v40, %v6763_v9  ;;  %v6779_v9 = vld [vmem:[%s11143_s19 + $0x70] sm:$0xff]  ;;  %v6780_v40 = vld [vmem:[%s11143_s19 + $0x78] sm:$0xff] }
0x1ff6   : > { %8384 = vmatprep.subr.bf16.mxu0 %v8383_v29 }
0x1ff7   : > { %5212 = vmatprep.mubr.f32.mxu0 %v5138_v5  ;;  %8386 = vmatpush3.bf16.msra.mxu0 %v8383_v29 }
0x1ff8   : > { %5213 = vmatmul.mubr.f32.gmra.mrb[8].mxu0 %v5137_v13  ;;  %8356 = vmatprep.subr.bf16.mxu1 %v8355_v38 }
0x1ff9   : > { %8358 = vmatpush3.bf16.msra.mxu1 %v8355_v38  ;;  %8388 = vmatprep.subr.bf16.mxu0 %v8387_v50 }
0x1ffa   : > { %8360 = vmatprep.subr.bf16.mxu1 %v8359_v45 }
0x1ffb   : > { %8390 = vmatpush3.bf16.msra.mxu0 %v8387_v50 }
0x1ffc   : > { %8392 = vmatprep.subr.bf16.mxu0 %v8391_v43 }
0x1ffd   : > { %8362 = vmatpush3.bf16.msra.mxu1 %v8359_v45 }
0x1ffe   : > { %8364 = vmatprep.subr.bf16.mxu1 %v8363_v20 }
0x1fff   : > { %8394 = vmatpush3.bf16.msra.mxu0 %v8391_v43 }
0x2000   : > { %8396 = vmatprep.subr.bf16.mxu0 %v8395_v57 }
0x2001   : > { %8366 = vmatpush3.bf16.msra.mxu1 %v8363_v20 }
0x2002   : > { %8368 = vmatprep.subr.bf16.mxu1 %v8367_v2 }
0x2003   : > { %8398 = vmatpush3.bf16.msra.mxu0 %v8395_v57 }
0x20c7   : > { %v7221_v14 = vpop.f32.mrb[6].mxu0 }
0x20c8   : > { %v7222_v47 = vpop.f32.mrb[7].mxu0 }
0x20c9   : > { %v7223_v32 = vadd.f32 %v7222_v47, %v7221_v14 }
0x20cb   : > { %v5210_v60 = vadd.f32 %v7223_v32, %v6745_v10  ;;  %v7224_v26 = vpop.f32.mrb[8].mxu0 }
0x20cc   : > { %v7225_v18 = vpop.f32.mrb[9].mxu0 }
0x20cd   : > { %v10708_v3 = vadd.f32 %v5210_v60, %v10532_v55  ;;  %v7226_v33 = vadd.f32 %v7225_v18, %v7224_v26  ;;  %v10786_v60 = vld [vmem:[%s11140_s16 + $0x10] sm:$0xff] }
0x20ce   : > { %v5340_v26 = vrot.slane %v10786_v60, %v10315_v0  ;;  %v5516_v27 = vrot.slane %v10786_v60, %v4484_v59  ;;  %v5437_v39 = vrot.slane %v10786_v60, %v4405_v24  ;;  %v5352_v50 = vrot.slane %v10786_v60, %v4320_v63 }
0x20cf   : > { %v5215_v48 = vadd.f32 %v7226_v33, %v6745_v10  ;;  %v5311_v35 = vsel %vm4278_vm8, %v10708_v3, 0.0 }
0x20d0   : > { %5312 = vadd.xlane.f32.xlu1 %v5311_v35 }
0x20d1   : > { %v10713_v11 = vadd.f32 %v5215_v48, %v10534_v22  ;;  %v5346_v48 = vrot.slane %v10786_v60, %v10318_v52 }
0x20d3   : > { %v5314_v49 = vsel %vm4278_vm8, %v10713_v11, 0.0 }
0x20d4   : > { %5315 = vadd.xlane.f32.xlu0 %v5314_v49 }
0x215d   : > { %v5313_v62 = vpop.xlane.xlu1 %5312 }
0x215e   : > { %v5317_v4 = vmul.f32 0.015625, %v5313_v62 }
0x2160   : > { %v10718_v36 = vsub.f32 %v10708_v3, %v5317_v4 }
0x2161   : > { %v5316_v55 = vpop.xlane.xlu0 %5315 }
0x2162   : > { %v5318_v51 = vmul.f32 0.015625, %v5316_v55  ;;  %v5321_v54 = vmul.f32 %v10718_v36, %v10718_v36  ;;  %v6759_v55 = vld [vmem:[%s11142_s18 + $0x110] sm:$0xff] }
0x2164   : > { %v10723_v28 = vsub.f32 %v10713_v11, %v5318_v51  ;;  %v5323_v22 = vsel %vm4278_vm8, %v5321_v54, 0.0  ;;  %v6760_v51 = vld [vmem:[%s11142_s18 + $0x118] sm:$0xff] }
0x2165   : > { %5324 = vadd.xlane.f32.xlu1 %v5323_v22  ;;  %v8371_v22 = vpack.c.bf16 %v6760_v51, %v6759_v55  ;;  %v6778_v55 = vld [vmem:[%s11143_s19 + $0x68] sm:$0xff] }
0x2166   : > { %v5322_v34 = vmul.f32 %v10723_v28, %v10723_v28 }
0x2168   : > { %v5326_v12 = vsel %vm4278_vm8, %v5322_v34, 0.0  ;;  %v6762_v34 = vld [vmem:[%s11142_s18 + $0x128] sm:$0xff] }
0x2169   : > { %5327 = vadd.xlane.f32.xlu0 %v5326_v12 }
0x21f2   : > { %v5325_v5 = vpop.xlane.xlu1 %5324 }
0x21f3   : > { %v5329_v13 = vmul.f32 0.015625, %v5325_v5 }
0x21f5   : > { %v5331_v14 = vadd.f32 1e-05, %v5329_v13 }
0x21f6   : > { %v5328_v10 = vpop.xlane.xlu0 %5327 }
0x21f7   : > { %8732 = vrsqrt.f32 %v5331_v14  ;;  %v5330_v47 = vmul.f32 0.015625, %v5328_v10 }
0x21f9   : > { %v5332_v32 = vadd.f32 1e-05, %v5330_v47 }
0x21fb   : > { %8734 = vrsqrt.f32 %v5332_v32 }
0x2201   : > { %v8733_v18 = vpop.eup %8732 }
0x2202   : > { %v5335_v33 = vmul.f32 %v8733_v18, %v10718_v36 }
0x2204   : > { %v5341_v35 = vmul.f32 %v5340_v26, %v5335_v33  ;;  %v6774_v33 = vld [vmem:[%s11143_s19 + $0x48] sm:$0xff] }
0x2205   : > { %v8735_v49 = vpop.eup %8734 }
0x2206   : > { %v5336_v62 = vmul.f32 %v8735_v49, %v10723_v28  ;;  %v5347_v4 = vadd.f32 %v5346_v48, %v5341_v35  ;;  %v6761_v28 = vld [vmem:[%s11142_s18 + $0x120] sm:$0xff]  ;;  %v6776_v49 = vld [vmem:[%s11143_s19 + $0x58] sm:$0xff] }
0x2207   : > { %v8375_v12 = vpack.c.bf16 %v6762_v34, %v6761_v28 }
0x2208   : > { %v5342_v54 = vmul.f32 %v5340_v26, %v5336_v62  ;;  %7808 = vmatprep.mubr.msk.f32.mxu1 %vm4278_vm8, %v5347_v4  ;;  %7846 = vmatprep.mubr.msk.f32.mxu0 %vm4278_vm8, %v5347_v4 }
0x220a   : > { %v5348_v36 = vadd.f32 %v5346_v48, %v5342_v54  ;;  %v6775_v48 = vld [vmem:[%s11143_s19 + $0x50] sm:$0xff] }
0x220b   : > { %v8403_v62 = vpack.c.bf16 %v6776_v49, %v6775_v48  ;;  %v6796_v49 = vld [vmem:[%s11144_s20 + $0xf8] sm:$0xff] }
0x220c   : > { %7809 = vmatmul.mubr.msk.f32.vlgmr.msra.gmra.mrb[16].mxu1 %vm4278_vm8, %v5348_v36  ;;  %7847 = vmatmul.mubr.msk.f32.vlgmr.msra.gmra.mrb[10].mxu0 %vm4278_vm8, %v5348_v36 }
0x220d   : > { %8370 = vmatpush3.bf16.msra.mxu1 %v8367_v2  ;;  %7827 = vmatprep.mubr.msk.f32.mxu1 %vm4278_vm8, %v5347_v4  ;;  %v6777_v4 = vld [vmem:[%s11143_s19 + $0x60] sm:$0xff] }
0x220e   : > { %8372 = vmatprep.subr.bf16.mxu1 %v8371_v22  ;;  %v8407_v51 = vpack.c.bf16 %v6778_v55, %v6777_v4  ;;  %v6795_v55 = vld [vmem:[%s11144_s20 + $0xf0] sm:$0xff] }
0x2211   : > { %8374 = vmatpush3.bf16.msra.mxu1 %v8371_v22 }
0x2212   : > { %8376 = vmatprep.subr.bf16.mxu1 %v8375_v12 }
0x2215   : > { %8378 = vmatpush3.bf16.msra.mxu1 %v8375_v12 }
0x2216   : > { %8380 = vmatprep.subr.bf16.mxu1 %v8379_v17 }
0x2219   : > { %8382 = vmatpush3.bf16.msra.mxu1 %v8379_v17  ;;  %v8411_v17 = vpack.c.bf16 %v6780_v40, %v6779_v9 }
0x221a   : > { %7849 = vmatprep.subr.mxu1 %v8782_v37 }
0x221c   : > { %7828 = vmatmul.mubr.msk.f32.vlgmr.msra.gmra.mrb[18].mxu1 %vm4278_vm8, %v5348_v36 }
0x221d   : > { %7851 = vmatprep.mubr.msk.f32.mxu1 %vm8783_vm9, %v8782_v37 }
0x22df   : > { %v7810_v42 = vpop.f32.mrb[16].mxu1  ;;  %v7848_v29 = vpop.f32.mrb[10].mxu0 }
0x22e0   : > { %v10824_v31 = vadd.f32 %v7848_v29, %v5516_v27  ;;  %v5425_v44 = vpop.f32.mrb[17].mxu1  ;;  %v5583_v38 = vpop.f32.mrb[11].mxu0  ;;  %v5431_v24 = vadd.f32 %v7810_v42, %v5352_v50 }
0x22e1   : > { %v5426_v59 = vadd.f32 %v5425_v44, %v5352_v50  ;;  %v5584_v58 = vadd.f32 %v5583_v38, %v5516_v27  ;;  %v6002_v44 = vrot.slane %v10786_v60, %v4971_v23 }
0x22ef   : > { %v7829_v30 = vpop.f32.mrb[18].mxu1 }
0x22f0   : > { %v5504_v7 = vpop.f32.mrb[19].mxu1  ;;  %v5510_v45 = vadd.f32 %v7829_v30, %v5437_v39 }
0x22f1   : > { %v5505_v16 = vadd.f32 %v5504_v7, %v5437_v39 }
0x22f3   : > { %7850 = vmatpush3.xpose.msk.msra.mxu1 %vm4278_vm8, %v5505_v16 }
0x22f4   : > { %7854 = vmatprep.subr.mxu1 %v8782_v37 }
0x22f6   : > { %7852 = vmatmul.mubr.msk.f32.vlgmr.msra.gmra.mrb[20].mxu1 %vm4278_vm8, %v5426_v59 }
0x22f7   : > { %7855 = vmatpush3.xpose.msk.msra.mxu1 %vm4278_vm8, %v5510_v45  ;;  %7856 = vmatprep.mubr.msk.f32.mxu1 %vm8783_vm9, %v8782_v37 }
0x22f8   : > { %7859 = vmatprep.subr.mxu1 %v8782_v37 }
0x22fa   : > { %7857 = vmatmul.mubr.msk.f32.vlgmr.msra.gmra.mrb[22].mxu1 %vm4278_vm8, %v5431_v24 }
0x22fb   : > { %7860 = vmatpush3.msra.mxu1 %v5584_v58  ;;  %7861 = vmatprep.mubr.msk.f32.mxu1 %vm8783_vm9, %v8782_v37 }
0x22fc   : > { %7864 = vmatprep.subr.mxu1 %v8782_v37 }
0x23c9   : > { %v5664_v63 = vpop.f32.mrb[20].mxu1 }
0x23ca   : > { %v5744_v56 = vmul.f32 0.125, %v5664_v63  ;;  %v7853_v43 = vpop.f32.mrb[21].mxu1 }
0x23cc   : > { %v5746_v25 = vadd.f32 %v5744_v56, %v10487_v21 }
0x23cd   : > { %v5740_v6 = vpop.f32.mrb[22].mxu1 }
0x23ce   : > { %v5745_v20 = vmul.f32 0.125, %v5740_v6  ;;  %v7858_v53 = vpop.f32.mrb[23].mxu1  ;;  %v5748_v41 = vsel %vm4717_vm11, %v5746_v25, -inf }
0x23cf   : > { %5749 = vmax.xlane.f32.xlu1 %v5748_v41  ;;  %v6784_v53 = vld [vmem:[%s11144_s20 + $0x98] sm:$0xff] }
0x23d0   : > { %v5747_v57 = vadd.f32 %v5745_v20, %v10487_v21  ;;  %v6773_v21 = vld [vmem:[%s11143_s19 + $0x40] sm:$0xff]  ;;  %v6782_v20 = vld [vmem:[%s11144_s20 + $0x88] sm:$0xff] }
0x23d1   : > { %v8399_v35 = vpack.c.bf16 %v6774_v33, %v6773_v21  ;;  %v8415_v41 = vpack.c.bf16 %v6784_v53, %v6782_v20  ;;  %v6789_v21 = vld [vmem:[%s11144_s20 + $0xc0] sm:$0xff]  ;;  %v6791_v33 = vld [vmem:[%s11144_s20 + $0xd0] sm:$0xff] }
0x23d2   : > { %v5751_v8 = vsel %vm4717_vm11, %v5747_v57, -inf  ;;  %v8425_v48 = vpack.c.bf16 %v6791_v33, %v6789_v21  ;;  %v6801_v53 = vld [vmem:[%s11145_s21 + $0x120] sm:$0xff] }
0x23d3   : > { %5752 = vmax.xlane.f32.xlu0 %v5751_v8  ;;  %8400 = vmatprep.subr.bf16.mxu0 %v8399_v35  ;;  %v6783_v8 = vld [vmem:[%s11144_s20 + $0x90] sm:$0xff]  ;;  %v6805_v33 = vld [vmem:[%s11145_s21 + $0x140] sm:$0xff] }
0x23d4   : > { %8402 = vmatpush3.bf16.msra.mxu0 %v8399_v35  ;;  %v6794_v35 = vld [vmem:[%s11144_s20 + $0xe8] sm:$0xff] }
0x23d5   : > { %8404 = vmatprep.subr.bf16.mxu0 %v8403_v62  ;;  %v8427_v4 = vpack.c.bf16 %v6796_v49, %v6794_v35 }
0x23d8   : > { %8406 = vmatpush3.bf16.msra.mxu0 %v8403_v62  ;;  %v6793_v62 = vld [vmem:[%s11144_s20 + $0xe0] sm:$0xff] }
0x23d9   : > { %8408 = vmatprep.subr.bf16.mxu0 %v8407_v51 }
0x23dc   : > { %8410 = vmatpush3.bf16.msra.mxu0 %v8407_v51  ;;  %v8429_v51 = vpack.c.bf16 %v6795_v55, %v6793_v62  ;;  %v6823_v62 = vld [vmem:[%s11145_s21 + $0x1d0] sm:$0xff] }
0x23dd   : > { %8412 = vmatprep.subr.bf16.mxu0 %v8411_v17 }
0x23e0   : > { %8414 = vmatpush3.bf16.msra.mxu0 %v8411_v17 }
0x245c   : > { %v5750_v19 = vpop.xlane.xlu1 %5749 }
0x245d   : > { %v5754_v2 = vsub.f32 %v5746_v25, %v5750_v19 }
0x245f   : > { %v5756_v5 = vmul.f32 1.442695, %v5754_v2  ;;  %v6786_v2 = vld [vmem:[%s11144_s20 + $0xa8] sm:$0xff] }
0x2460   : > { %v5753_v13 = vpop.xlane.xlu0 %5752 }
0x2461   : > { %8736 = vpow2.f32 %v5756_v5  ;;  %v5755_v14 = vsub.f32 %v5747_v57, %v5753_v13  ;;  %v6781_v57 = vld [vmem:[%s11144_s20 + $0x80] sm:$0xff]  ;;  %v6788_v5 = vld [vmem:[%s11144_s20 + $0xb8] sm:$0xff] }
0x2462   : > { %v8417_v19 = vpack.c.bf16 %v6783_v8, %v6781_v57  ;;  %v8419_v13 = vpack.c.bf16 %v6788_v5, %v6786_v2  ;;  %v6819_v8 = vld [vmem:[%s11145_s21 + $0x1b0] sm:$0xff] }
0x2463   : > { %v5758_v10 = vmul.f32 1.442695, %v5755_v14  ;;  %v6785_v14 = vld [vmem:[%s11144_s20 + $0xa0] sm:$0xff]  ;;  %v6803_v5 = vld [vmem:[%s11145_s21 + $0x130] sm:$0xff] }
0x2465   : > { %8738 = vpow2.f32 %v5758_v10  ;;  %v6787_v10 = vld [vmem:[%s11144_s20 + $0xb0] sm:$0xff] }
0x246b   : > { %v8737_v47 = vpop.eup %8736 }
0x246c   : > { %v5760_v32 = vsel %vm4717_vm11, %v8737_v47, 0.0 }
0x246d   : > { %5761 = vadd.xlane.f32.xlu1 %v5760_v32  ;;  %v6790_v32 = vld [vmem:[%s11144_s20 + $0xc8] sm:$0xff] }
0x246f   : > { %v8739_v26 = vpop.eup %8738 }
0x2470   : > { %v5763_v18 = vsel %vm4717_vm11, %v8739_v26, 0.0 }
0x2471   : > { %5764 = vadd.xlane.f32.xlu0 %v5763_v18 }
0x24fa   : > { %v5762_v54 = vpop.xlane.xlu1 %5761 }
0x24fb   : > { %8740 = vrcp.f32 %v5762_v54  ;;  %v10949_v54 = vld [vmem:[%s11135_s11] sm:$0x3] }
0x24fe   : > { %v5765_v36 = vpop.xlane.xlu0 %5764 }
0x24ff   : > { %8742 = vrcp.f32 %v5765_v36  ;;  %v6290_v36 = vsel %vm6289_vm12, %v10949_v54, 2147483648 }
0x2505   : > { %v8741_v22 = vpop.eup %8740 }
0x2506   : > { %v5768_v28 = vmul.f32 %v8741_v22, %v8737_v47  ;;  %v8421_v47 = vpack.c.bf16 %v6787_v10, %v6785_v14  ;;  %v6292_v22 = vshra.s32 %v6290_v36, 16  ;;  %v6291_v10 = vand.u32 65535, %v6290_v36  ;;  %v6808_v36 = vld [vmem:[%s11145_s21 + $0x158] sm:$0xff] }
0x2508   : > { %7862 = vmatmul.mubr.msk.f32.vlgmr.msra.gmra.mrb[24].mxu1 %vm4717_vm11, %v5768_v28  ;;  %v10953_v28 = vcvt.s32.f32 %v6292_v22 }
0x2509   : > { %v8743_v34 = vpop.eup %8742  ;;  %7865 = vmatpush3.msra.mxu1 %v10824_v31  ;;  %7866 = vmatprep.mubr.msk.f32.mxu1 %vm8783_vm9, %v8782_v37 }
0x250a   : > { %v5769_v12 = vmul.f32 %v8743_v34, %v8739_v26  ;;  %8416 = vmatprep.subr.bf16.mxu1 %v8415_v41  ;;  %v6792_v26 = vld [vmem:[%s11144_s20 + $0xd8] sm:$0xff]  ;;  %v6802_v41 = vld [vmem:[%s11145_s21 + $0x128] sm:$0xff] }
0x250b   : > { %v8423_v18 = vpack.c.bf16 %v6792_v26, %v6790_v32  ;;  %v8441_v57 = vpack.c.bf16 %v6802_v41, %v6801_v53  ;;  %v6821_v32 = vld [vmem:[%s11145_s21 + $0x1c0] sm:$0xff]  ;;  %v6822_v26 = vld [vmem:[%s11145_s21 + $0x1c8] sm:$0xff] }
0x250c   : > { %7867 = vmatmul.mubr.msk.f32.vlgmr.msra.gmra.mrb[26].mxu1 %vm4717_vm11, %v5769_v12  ;;  %v8447_v21 = vpack.c.bf16 %v6822_v26, %v6821_v32 }
0x250d   : > { %6124 = vmatprep.mubr.f32.mxu1 %v8782_v37  ;;  %8418 = vmatpush1.bf16.msra.mxu1 %v8417_v19  ;;  %v6820_v19 = vld [vmem:[%s11145_s21 + $0x1b8] sm:$0xff] }
0x250e   : > { %8420 = vmatprep.subr.bf16.mxu1 %v8419_v13  ;;  %v8443_v2 = vpack.c.bf16 %v6820_v19, %v6819_v8  ;;  %v6804_v13 = vld [vmem:[%s11145_s21 + $0x138] sm:$0xff] }
0x250f   : > { %v8445_v14 = vpack.c.bf16 %v6804_v13, %v6803_v5 }
0x2511   : > { %8422 = vmatpush1.bf16.msra.mxu1 %v8421_v47 }
0x2512   : > { %8424 = vmatprep.subr.bf16.mxu1 %v8423_v18  ;;  %v6293_v18 = vcvt.s32.f32 %v6291_v10 }
0x2515   : > { %8426 = vmatpush1.bf16.msra.mxu1 %v8425_v48  ;;  %v6806_v48 = vld [vmem:[%s11145_s21 + $0x148] sm:$0xff] }
0x2516   : > { %8428 = vmatprep.subr.bf16.mxu1 %v8427_v4  ;;  %v8449_v35 = vpack.c.bf16 %v6806_v48, %v6805_v33  ;;  %v6824_v4 = vld [vmem:[%s11145_s21 + $0x1d8] sm:$0xff] }
0x2517   : > { %v8451_v55 = vpack.c.bf16 %v6824_v4, %v6823_v62 }
0x2519   : > { %8430 = vmatpush1.bf16.msra.mxu1 %v8429_v51  ;;  %v6807_v51 = vld [vmem:[%s11145_s21 + $0x150] sm:$0xff] }
0x251a   : > { %v8453_v22 = vpack.c.bf16 %v6808_v36, %v6807_v51 }
0x25db   : > { %v5839_v27 = vpop.f32.mrb[24].mxu1 }
0x25dc   : > { %v7863_v42 = vpop.f32.mrb[25].mxu1  ;;  %7885 = vmatprep.mubr.msk.f32.mxu0 %vm4278_vm8, %v5839_v27 }
0x25df   : > { %v5912_v29 = vpop.f32.mrb[26].mxu1 }
0x25e0   : > { %v7868_v31 = vpop.f32.mrb[27].mxu1  ;;  %7886 = vmatmul.mubr.msk.f32.vlgmr.msra.gmra.mrb[12].mxu0 %vm4278_vm8, %v5912_v29  ;;  %v6034_v29 = vrot.slane %v10786_v60, %v5003_v15  ;;  %v6814_v15 = vld [vmem:[%s11145_s21 + $0x188] sm:$0xff] }
0x26b3   : > { %v7887_v38 = vpop.f32.mrb[12].mxu0 }
0x26b4   : > { %v5998_v39 = vadd.f32 %v7887_v38, %v10713_v11  ;;  %v5988_v30 = vpop.f32.mrb[13].mxu0  ;;  %v6040_v38 = vrot.slane %v10786_v60, %v5009_v46  ;;  %v8431_v46 = vpack.c.bf16 %v6814_v15, %v6813_v1  ;;  %v6797_v60 = vld [vmem:[%s11145_s21 + $0x100] sm:$0xff] }
0x26b5   : > { %v5997_v50 = vadd.f32 %v5988_v30, %v10708_v3 }
0x26b6   : > { %v10886_v7 = vadd.f32 %v6002_v44, %v5998_v39  ;;  %8432 = vmatprep.subr.bf16.mxu0 %v8431_v46 }
0x26b7   : > { %v10888_v16 = vadd.f32 %v6002_v44, %v5997_v50 }
0x26b8   : > { %v6008_v59 = vsel %vm4278_vm8, %v10886_v7, 0.0 }
0x26b9   : > { %6009 = vadd.xlane.f32.xlu0 %v6008_v59  ;;  %v6005_v45 = vsel %vm4278_vm8, %v10888_v16, 0.0 }
0x26ba   : > { %6006 = vadd.xlane.f32.xlu1 %v6005_v45 }
0x2746   : > { %v6010_v24 = vpop.xlane.xlu0 %6009 }
0x2747   : > { %v6012_v23 = vmul.f32 0.015625, %v6010_v24  ;;  %v6007_v58 = vpop.xlane.xlu1 %6006  ;;  %v6798_v24 = vld [vmem:[%s11145_s21 + $0x108] sm:$0xff] }
0x2748   : > { %v6011_v63 = vmul.f32 0.015625, %v6007_v58  ;;  %v6815_v58 = vld [vmem:[%s11145_s21 + $0x190] sm:$0xff] }
0x2749   : > { %v6014_v11 = vsub.f32 %v10886_v7, %v6012_v23  ;;  %v8433_v23 = vpack.c.bf16 %v6798_v24, %v6797_v60 }
0x274a   : > { %v6013_v3 = vsub.f32 %v10888_v16, %v6011_v63  ;;  %v6816_v63 = vld [vmem:[%s11145_s21 + $0x198] sm:$0xff] }
0x274b   : > { %v6016_v56 = vmul.f32 %v6014_v11, %v6014_v11  ;;  %8434 = vmatpush3.bf16.msra.mxu0 %v8433_v23 }
0x274c   : > { %v6015_v43 = vmul.f32 %v6013_v3, %v6013_v3 }
0x274d   : > { %v6020_v25 = vsel %vm4278_vm8, %v6016_v56, 0.0  ;;  %v6800_v56 = vld [vmem:[%s11145_s21 + $0x118] sm:$0xff] }
0x274e   : > { %6021 = vadd.xlane.f32.xlu0 %v6020_v25  ;;  %v6017_v6 = vsel %vm4278_vm8, %v6015_v43, 0.0  ;;  %v6817_v25 = vld [vmem:[%s11145_s21 + $0x1a0] sm:$0xff] }
0x274f   : > { %6018 = vadd.xlane.f32.xlu1 %v6017_v6  ;;  %v6818_v6 = vld [vmem:[%s11145_s21 + $0x1a8] sm:$0xff] }
0x2750   : > { %v8439_v20 = vpack.c.bf16 %v6818_v6, %v6817_v25 }
0x2753   : > { %6295 = vmax.xlane.f32.xlu1 %v10953_v28 }
0x27db   : > { %v6022_v34 = vpop.xlane.xlu0 %6021 }
0x27dc   : > { %v6024_v12 = vmul.f32 0.015625, %v6022_v34  ;;  %v6019_v9 = vpop.xlane.xlu1 %6018  ;;  %v6826_v34 = vld [vmem:[%s11145_s21 + $0x1e8] sm:$0xff] }
0x27dd   : > { %v6023_v40 = vmul.f32 0.015625, %v6019_v9  ;;  %v6809_v9 = vld [vmem:[%s11145_s21 + $0x160] sm:$0xff] }
0x27de   : > { %v6026_v17 = vadd.f32 1e-05, %v6024_v12 }
0x27df   : > { %v6025_v27 = vadd.f32 1e-05, %v6023_v40  ;;  %v6810_v40 = vld [vmem:[%s11145_s21 + $0x168] sm:$0xff] }
0x27e0   : > { %8744 = vrsqrt.f32 %v6026_v17  ;;  %v11015_v47 = vpop.xlane.xlu1 %6295  ;;  %v8457_v17 = vpack.c.bf16 %v6810_v40, %v6809_v9  ;;  %v6305_v9 = vcvt.s32.f32 %v10352_v61 }
0x27e1   : > { %8746 = vrsqrt.f32 %v6025_v27  ;;  %vm6297_vm13 = vcmp.eq.f32.partialorder %v10953_v28, %v11015_v47  ;;  %v6825_v28 = vld [vmem:[%s11145_s21 + $0x1e0] sm:$0xff]  ;;  %v6827_v27 = vld [vmem:[%s11145_s21 + $0x1f0] sm:$0xff]  ;;  %v6302_v48 = vcvt.f32.s32 %v11015_v47 }
0x27e2   : > { %v6298_v49 = vsel %vm6297_vm13, %v6293_v18, -inf  ;;  %v8455_v12 = vpack.c.bf16 %v6826_v34, %v6825_v28 }
0x27e3   : > { %6299 = vmax.xlane.f32.xlu0 %v6298_v49  ;;  %v6303_v49 = vshll.u32 %v6302_v48, 16 }
0x27ea   : > { %v8745_v42 = vpop.eup %8744 }
0x27eb   : > { %v8747_v31 = vpop.eup %8746  ;;  %v6030_v39 = vmul.f32 %v8745_v42, %v6014_v11  ;;  %v8435_v11 = vpack.c.bf16 %v6816_v63, %v6815_v58  ;;  %v6828_v42 = vld [vmem:[%s11145_s21 + $0x1f8] sm:$0xff] }
0x27ec   : > { %v6029_v44 = vmul.f32 %v8747_v31, %v6013_v3  ;;  %v6799_v3 = vld [vmem:[%s11145_s21 + $0x110] sm:$0xff] }
0x27ed   : > { %v6036_v59 = vmul.f32 %v6034_v29, %v6030_v39  ;;  %v8437_v43 = vpack.c.bf16 %v6800_v56, %v6799_v3  ;;  %8436 = vmatprep.subr.bf16.mxu0 %v8435_v11  ;;  %v6811_v31 = vld [vmem:[%s11145_s21 + $0x170] sm:$0xff]  ;;  %v6748_v39 = vld [vmem:[%s11141_s17 + $0x2] sm:$0x3] }
0x27ee   : > { %v6035_v30 = vmul.f32 %v6034_v29, %v6029_v44  ;;  %v8459_v29 = vpack.c.bf16 %v6828_v42, %v6827_v27  ;;  %v6812_v44 = vld [vmem:[%s11145_s21 + $0x178] sm:$0xff] }
0x27ef   : > { %v6042_v45 = vadd.f32 %v6040_v38, %v6036_v59  ;;  %8438 = vmatpush3.bf16.msra.mxu0 %v8437_v43 }
0x27f0   : > { %v6041_v50 = vadd.f32 %v6040_v38, %v6035_v30  ;;  %8440 = vmatprep.subr.bf16.mxu0 %v8439_v20  ;;  %v8461_v38 = vpack.c.bf16 %v6812_v44, %v6811_v31  ;;  %v6047_v30 = vrot.slane %v6748_v39, %v10315_v0 }
0x27f2   : > { %6843 = vmatmul.mubr.msk.f32.vlgmr.msra.gmra.mrb[28].mxu1 %vm4278_vm8, %v6041_v50  ;;  %v6051_v50 = vrot.slane %v6748_v39, %v10318_v52 }
0x27f3   : > { %6130 = vmatprep.mubr.f32.mxu1 %v8782_v37  ;;  %8442 = vmatpush3.bf16.msra.mxu0 %v8441_v57 }
0x27f4   : > { %8444 = vmatprep.subr.bf16.mxu0 %v8443_v2 }
0x27f6   : > { %6844 = vmatmul.mubr.msk.f32.gmra.mrb[30].mxu1 %vm4278_vm8, %v6042_v45 }
0x27f7   : > { %7904 = vmatprep.mubr.msk.f32.mxu1 %vm8783_vm9, %v8782_v37  ;;  %8446 = vmatpush3.bf16.msra.mxu0 %v8445_v14 }
0x27f8   : > { %8448 = vmatprep.subr.bf16.mxu0 %v8447_v21 }
0x27fb   : > { %8450 = vmatpush3.bf16.msra.mxu0 %v8449_v35 }
0x27fc   : > { %8452 = vmatprep.subr.bf16.mxu0 %v8451_v55  ;;  %v6849_v55 = vld [vmem:[%s11140_s16 + $0x18] ss:$0 sm:$0xff] }
0x27ff   : > { %8454 = vmatpush3.bf16.msra.mxu0 %v8453_v22 }
0x2800   : > { %8456 = vmatprep.subr.bf16.mxu0 %v8455_v12 }
0x2803   : > { %8458 = vmatpush3.bf16.msra.mxu0 %v8457_v17 }
0x2804   : > { %8460 = vmatprep.subr.bf16.mxu0 %v8459_v29 }
0x2807   : > { %8462 = vmatpush3.bf16.msra.mxu0 %v8461_v38 }
0x2870   : > { %v6300_v35 = vpop.xlane.xlu0 %6299 }
0x2871   : > { %v6301_v62 = vcvt.f32.s32 %v6300_v35 }
0x2873   : > { %v6304_v36 = vadd.s32 %v6303_v49, %v6301_v62 }
0x2875   : > { %vm6306_vm14 = vcmp.eq.s32.totalorder %v10949_v54, %v6304_v36 }
0x2876   : > { %v6307_v42 = vsel %vm6306_vm14, %v6305_v9, 8.0 }
0x2877   : > { %v6308_v44 = vsel %vm6289_vm12, %v6307_v42, inf }
0x28c5   : > { %v6126_v59 = vpop.f32.mrb[28].mxu1 }
0x28c6   : > { %v6127_v45 = vadd.f32 %v6126_v59, %v6047_v30  ;;  %v6128_v1 = vpop.f32.mrb[29].mxu1 }
0x28c7   : > { %v6129_v15 = vadd.f32 %v6128_v1, %v6051_v50 }
0x28c8   : > { %v6845_v46 = vmul.f32 -1.702, %v6127_v45 }
0x28c9   : > { %v6846_v60 = vmul.f32 -1.702, %v6129_v15  ;;  %v6132_v24 = vpop.f32.mrb[30].mxu1 }
0x28ca   : > { %v6145_v23 = vmul.f32 1.442695, %v6845_v46  ;;  %v6133_v58 = vadd.f32 %v6132_v24, %v6047_v30  ;;  %v6134_v63 = vpop.f32.mrb[31].mxu1  ;;  %v6344_v24 = vld [vmem:[%s11139_s15] sm:$0xff] }
0x28cb   : > { %v6147_v11 = vmul.f32 1.442695, %v6846_v60  ;;  %v6135_v3 = vadd.f32 %v6134_v63, %v6051_v50  ;;  %v8784_v63 = vmov 0.0|0.0  }
0x28cc   : > { %8748 = vpow2.f32 %v6145_v23  ;;  %v6847_v56 = vmul.f32 -1.702, %v6133_v58  ;;  %v6345_v23 = vld [vmem:[%s11139_s15 + $0x8] sm:$0xff]  ;;  %8463 = vmatprep.subr.bf16.mxu1 %v8784_v63 }
0x28cd   : > { %8750 = vpow2.f32 %v6147_v11  ;;  %v6848_v43 = vmul.f32 -1.702, %v6135_v3  ;;  %v6347_v11 = vld [vmem:[%s11139_s15 + $0x18] sm:$0xff] }
0x28ce   : > { %v6149_v25 = vmul.f32 1.442695, %v6847_v56  ;;  %v6348_v56 = vld [vmem:[%s11139_s15 + $0x20] sm:$0xff] }
0x28cf   : > { %v6151_v6 = vmul.f32 1.442695, %v6848_v43  ;;  %v6349_v43 = vld [vmem:[%s11139_s15 + $0x28] sm:$0xff] }
0x28d0   : > { %8752 = vpow2.f32 %v6149_v25  ;;  %v8470_v25 = vpack.c.bf16 %v6349_v43, %v6348_v56 }
0x28d1   : > { %8754 = vpow2.f32 %v6151_v6  ;;  %v6350_v6 = vld [vmem:[%s11139_s15 + $0x30] sm:$0xff] }
0x28d6   : > { %v8749_v20 = vpop.eup %8748 }
0x28d7   : > { %v8751_v53 = vpop.eup %8750  ;;  %v6153_v41 = vadd.f32 1.0, %v8749_v20  ;;  %v6351_v20 = vld [vmem:[%s11139_s15 + $0x38] sm:$0xff] }
0x28d8   : > { %v6154_v57 = vadd.f32 1.0, %v8751_v53  ;;  %v8473_v53 = vpack.c.bf16 %v6351_v20, %v6350_v6 }
0x28d9   : > { %8756 = vrcp.f32 %v6153_v41 }
0x28da   : > { %v8753_v8 = vpop.eup %8752  ;;  %8758 = vrcp.f32 %v6154_v57 }
0x28db   : > { %v8755_v19 = vpop.eup %8754  ;;  %v6155_v2 = vadd.f32 1.0, %v8753_v8 }
0x28dc   : > { %v6156_v5 = vadd.f32 1.0, %v8755_v19 }
0x28dd   : > { %8760 = vrcp.f32 %v6155_v2 }
0x28de   : > { %8762 = vrcp.f32 %v6156_v5 }
0x28e3   : > { %v8757_v13 = vpop.eup %8756 }
0x28e4   : > { %v8759_v14 = vpop.eup %8758  ;;  %v6165_v32 = vmul.f32 %v8757_v13, %v6127_v45  ;;  %v6250_v13 = vld [vmem:[%s11138_s14] sm:$0x3] }
0x28e5   : > { %v6166_v10 = vmul.f32 %v8759_v14, %v6129_v15  ;;  %v6280_v14 = vrot.slane %v6250_v13, %v10315_v0 }
0x28e7   : > { %v8761_v26 = vpop.eup %8760  ;;  %6237 = vmatprep.mubr.f32.mxu0 %v6166_v10 }
0x28e8   : > { %v8763_v18 = vpop.eup %8762  ;;  %6238 = vmatmul.mubr.f32.vlgmr.msra.gmra.mrb[14].mxu0 %v6165_v32  ;;  %v6167_v33 = vmul.f32 %v8761_v26, %v6133_v58  ;;  %v8464_v58 = vpack.c.bf16 %v6345_v23, %v6344_v24  ;;  %v6286_v26 = vrot.slane %v6250_v13, %v10318_v52 }
0x28e9   : > { %v6168_v21 = vmul.f32 %v8763_v18, %v6135_v3 }
0x28ea   : > { %8465 = vmatpush3.bf16.msra.mxu1 %v8464_v58 }
0x28eb   : > { %6242 = vmatprep.mubr.f32.mxu0 %v6168_v21  ;;  %8466 = vmatprep.subr.bf16.mxu1 %v8784_v63 }
0x28ec   : > { %6243 = vmatmul.mubr.f32.gmra.mrb[16].mxu0 %v6167_v33 }
0x29bb   : > { %v7307_v4 = vpop.f32.mrb[14].mxu0 }
0x29bc   : > { %v7308_v51 = vpop.f32.mrb[15].mxu0 }
0x29bd   : > { %v7309_v22 = vadd.f32 %v7308_v51, %v7307_v4 }
0x29bf   : > { %v6240_v28 = vadd.f32 %v7309_v22, %v6849_v55  ;;  %v7310_v34 = vpop.f32.mrb[16].mxu0 }
0x29c0   : > { %v7311_v12 = vpop.f32.mrb[17].mxu0 }
0x29c1   : > { %v7312_v40 = vadd.f32 %v7311_v12, %v7310_v34  ;;  %v6248_v17 = vadd.f32 %v6240_v28, %v10888_v16 }
0x29c3   : > { %v6245_v47 = vadd.f32 %v7312_v40, %v6849_v55  ;;  %v6251_v27 = vsel %vm4278_vm8, %v6248_v17, 0.0 }
0x29c4   : > { %6252 = vadd.xlane.f32.xlu1 %v6251_v27 }
0x29c5   : > { %v6249_v29 = vadd.f32 %v6245_v47, %v10886_v7 }
0x29c7   : > { %v6254_v31 = vsel %vm4278_vm8, %v6249_v29, 0.0 }
0x29c8   : > { %6255 = vadd.xlane.f32.xlu0 %v6254_v31  ;;  %6309 = vmin.xlane.f32.xlu1 %v6308_v44 }
0x2a51   : > { %v6253_v38 = vpop.xlane.xlu1 %6252 }
0x2a52   : > { %v6257_v61 = vmul.f32 0.015625, %v6253_v38 }
0x2a54   : > { %v6259_v39 = vsub.f32 %v6248_v17, %v6257_v61 }
0x2a55   : > { %v6256_v30 = vpop.xlane.xlu0 %6255  ;;  %v6310_v7 = vpop.xlane.xlu1 %6309 }
0x2a56   : > { %v6258_v16 = vmul.f32 0.015625, %v6256_v30  ;;  %v6261_v50 = vmul.f32 %v6259_v39, %v6259_v39  ;;  %vm6311_vm15 = vcmp.eq.f32.partialorder %v6305_v9, %v6310_v7 }
0x2a57   : > { %v6850_v15 = vsel %vm6311_vm15, 1.0, %v8782_v37  ;;  %v6346_v37 = vld [vmem:[%s11139_s15 + $0x10] sm:$0xff] }
0x2a58   : > { %v6260_v54 = vsub.f32 %v6249_v29, %v6258_v16  ;;  %v6263_v59 = vsel %vm4278_vm8, %v6261_v50, 0.0  ;;  %v6324_v46 = vrot.slane %v6850_v15, %v10318_v52  ;;  %v6317_v60 = vrot.slane %v6850_v15, %v10315_v0 }
0x2a59   : > { %6264 = vadd.xlane.f32.xlu0 %v6263_v59  ;;  %v8467_v3 = vpack.c.bf16 %v6347_v11, %v6346_v37 }
0x2a5a   : > { %v6262_v45 = vmul.f32 %v6260_v54, %v6260_v54 }
0x2a5b   : > { %8468 = vmatpush3.bf16.msra.mxu1 %v8467_v3 }
0x2a5c   : > { %v6266_v1 = vsel %vm4278_vm8, %v6262_v45, 0.0  ;;  %8469 = vmatprep.subr.bf16.mxu1 %v8784_v63 }
0x2a5d   : > { %6267 = vadd.xlane.f32.xlu1 %v6266_v1 }
0x2a5f   : > { %8471 = vmatpush3.bf16.msra.mxu1 %v8470_v25 }
0x2a60   : > { %8472 = vmatprep.subr.bf16.mxu1 %v8784_v63 }
0x2a63   : > { %8474 = vmatpush3.bf16.msra.mxu1 %v8473_v53 }
0x2a6e   : > { %6326 = vbcast.lane.b32.xlu1 %v6324_v46, 256 }
0x2a6f   : > { %6319 = vbcast.lane.b32.xlu0 %v6317_v60, 256 }
0x2ae6   : > { %v6265_v41 = vpop.xlane.xlu0 %6264 }
0x2ae7   : > { %v6269_v57 = vmul.f32 0.015625, %v6265_v41 }
0x2ae9   : > { %v6271_v8 = vadd.f32 1e-05, %v6269_v57 }
0x2aea   : > { %v6268_v19 = vpop.xlane.xlu1 %6267  ;;  %v6320_v35 = vpop.permute.xlu0 %6319 }
0x2aeb   : > { %8764 = vrsqrt.f32 %v6271_v8  ;;  %v6270_v2 = vmul.f32 0.015625, %v6268_v19 }
0x2aed   : > { %v6272_v5 = vadd.f32 1e-05, %v6270_v2 }
0x2aee   : > { %v6327_v36 = vpop.permute.xlu1 %6326 }
0x2aef   : > { %8766 = vrsqrt.f32 %v6272_v5 }
0x2af5   : > { %v8765_v10 = vpop.eup %8764 }
0x2af6   : > { %v6275_v32 = vmul.f32 %v8765_v10, %v6259_v39 }
0x2af8   : > { %v6281_v18 = vmul.f32 %v6280_v14, %v6275_v32 }
0x2af9   : > { %v8767_v21 = vpop.eup %8766 }
0x2afa   : > { %v6287_v33 = vadd.f32 %v6286_v26, %v6281_v18  ;;  %v6276_v48 = vmul.f32 %v8767_v21, %v6260_v54 }
0x2afc   : > { %v6328_v49 = vmul.f32 %v6320_v35, %v6287_v33  ;;  %v6282_v62 = vmul.f32 %v6280_v14, %v6276_v48 }
0x2afe   : > { %v6330_v4 = vsel %vm4278_vm8, %v6328_v49, 0.0  ;;  %v6288_v55 = vadd.f32 %v6286_v26, %v6282_v62 }
0x2aff   : > { %v6331_v51 = vrot.slane %v6330_v4, 4 }
0x2b00   : > { %v6329_v22 = vmul.f32 %v6327_v36, %v6288_v55 }
0x2b01   : > { %v6332_v28 = vadd.f32 %v6331_v51, %v6330_v4 }
0x2b02   : > { %v6337_v0 = vsel %vm4278_vm8, %v6329_v22, 0.0 }
0x2b03   : > { %v6333_v34 = vrot.slane %v6332_v28, 2  ;;  %v6338_v12 = vrot.slane %v6337_v0, 4 }
0x2b05   : > { %v6334_v52 = vadd.f32 %v6333_v34, %v6332_v28  ;;  %v6339_v9 = vadd.f32 %v6338_v12, %v6337_v0 }
0x2b07   : > { %v6340_v40 = vrot.slane %v6339_v9, 2  ;;  %v6335_v17 = vrot.slane %v6334_v52, 1 }
0x2b09   : > { %v6341_v47 = vadd.f32 %v6340_v40, %v6339_v9  ;;  %v6336_v42 = vadd.f32 %v6335_v17, %v6334_v52 }
0x2b0b   : > { %v6342_v27 = vrot.slane %v6341_v47, 1 }
0x2b0d   : > { %v6343_v29 = vadd.f32 %v6342_v27, %v6341_v47 }
0x2b0f   : > { %v6355_v31 = vsel %vm6354_vm0, %v6343_v29, %v6336_v42 }
0x2b10   : > { %7905 = vmatmul.mubr.msk.f32.vlgmr.msra.gmra.mrb[32].mxu1 %vm4278_vm8, %v6355_v31 }
0x2be3   : > { %v6424_v44 = vpop.f32.mrb[32].mxu1 }
0x2be4   : > { %6428 = vst [vmem:[%s8915_s23] sm:$0x3] %v6424_v44  ;;  %v7906_v38 = vpop.f32.mrb[33].mxu1 }
0x2be5 PF: > { %s32_s3 = sadd.s32 1, %s8775_s3  }
0x2be6   : > { %p29_p6 = scmp.ge.s32.totalorder %s32_s3, 4  }
0x2be8   :  { %31 = sbr.rel (!%p29_p6) target bundleno = 10 (0xa), region = 163 }

</bundles_post_ra>
